<compile_context>
chip_gen: v6e
topology: v6e:2x2x1
jax: 0.10.0
libtpu: 0.0.40
codegen_flags: <defaults>
</compile_context>

<pallas_src>
import numpy as np
import jax
import jax.numpy as jnp
from jax.experimental import pallas as pl
from jax.experimental.pallas import tpu as pltpu

# ----------------------------------------------------------------------------
# Small, self-consistent configuration (scaled down from the PyTorch module).
# ----------------------------------------------------------------------------
B            = 2
N_EVENTS     = 4        # orig 16
CONTEXT_DIM  = 16
MODEL_DIM    = 64       # encoder channels (orig 1024)
LATENT_DIM   = 32       # orig 256
CHANNELS     = 32       # orig 128
N_SAMPLES    = 1024     # orig 32768
RESONANCE    = 1024     # orig 32768
IMPULSE_SIZE = 512      # orig 16384
N_ATOMS      = 64       # orig 2048
N_PIECEWISE  = 4
N_FRAMES     = 16       # orig 128
WINDOW       = 128      # orig 512
STEP         = 64       # orig 256
N_COEFFS_WIN = WINDOW // 2 + 1        # 65  (orig 257)
COARSE       = 33                     # orig 257
STFT_WIN     = 128
STFT_HOP     = 64
T_FRAMES     = N_SAMPLES // STFT_HOP  # 16  (orig 128)
FILTER_SIZE  = 64
ENV_SIZE     = IMPULSE_SIZE // 128    # 4
SAMPLERATE   = 22050
BASE_RES     = 0.02
RES_FACTOR   = (1.0 - BASE_RES) * 0.99
N_ROOMS      = 4
START_SIZE   = 8
# TODO(synk): original dilations are [1,2,4,8,16,32,64,1]; with T_FRAMES=16 the
# larger dilations degenerate, so we keep a reduced stack.
DILATIONS    = [1, 2, 4, 8, 1]

_MOSAIC     = pltpu.CompilerParams(dimension_semantics=("arbitrary",))
_MOSAIC_PAR = pltpu.CompilerParams(dimension_semantics=("parallel",))
_ZERO2 = lambda i: (0, 0)


# ----------------------------------------------------------------------------
# Pallas kernels
# ----------------------------------------------------------------------------
def _linear_kernel(x_ref, w_ref, b_ref, o_ref):
    """Generic (M,K)@(K,N)+b; also used for K-packed k=2/k=3 convs."""
    o_ref[...] = jnp.dot(x_ref[...], w_ref[...],
                         preferred_element_type=jnp.float32) + b_ref[...]


def _acausal_kernel(xcat_ref, xres_ref, w_ref, b_ref, o_ref):
    """Anti-causal k=2 dilated conv packed into one K=128 matmul + relu + residual."""
    h = jnp.dot(xcat_ref[...], w_ref[...],
                preferred_element_type=jnp.float32) + b_ref[...]
    o_ref[...] = jnp.maximum(h, 0.0) + xres_ref[...]


def _los_kernel(x_ref, w_in_ref, b_in_ref,
                g0_ref, lb0_ref, w0_ref, b0_ref,
                g1_ref, lb1_ref, w1_ref, b1_ref,
                g2_ref, lb2_ref, w2_ref, b2_ref,
                w_out_ref, b_out_ref, o_ref):
    """Fused LinearOutputStack: in-proj, 3x(leaky_relu, layernorm, linear), out-proj."""
    def leaky(v):
        return jnp.where(v > 0, v, 0.2 * v)

    h = jnp.dot(x_ref[...], w_in_ref[...],
                preferred_element_type=jnp.float32) + b_in_ref[...]
    for g_ref, lb_ref, w_ref, b_ref in ((g0_ref, lb0_ref, w0_ref, b0_ref),
                                        (g1_ref, lb1_ref, w1_ref, b1_ref),
                                        (g2_ref, lb2_ref, w2_ref, b2_ref)):
        h = leaky(h)
        mu = jnp.mean(h, axis=-1, keepdims=True)
        var = jnp.mean((h - mu) * (h - mu), axis=-1, keepdims=True)
        h = (h - mu) * jax.lax.rsqrt(var + 1e-5) * g_ref[...] + lb_ref[...]
        h = jnp.dot(h, w_ref[...], preferred_element_type=jnp.float32) + b_ref[...]
    h = leaky(h)
    o_ref[...] = jnp.dot(h, w_out_ref[...],
                         preferred_element_type=jnp.float32) + b_out_ref[...]


def _sel_res_kernel(sel_ref, atoms_ref, decay_ref, o_ref):
    sel = jnp.maximum(sel_ref[...], 0.0)                          # fused relu
    o_ref[...] = jnp.dot(sel, atoms_ref[...],
                         preferred_element_type=jnp.float32) * decay_ref[...]


def _mix_sum_kernel(mx_ref, cv_ref, o_ref):
    o_ref[...] = jnp.sum(mx_ref[...] * cv_ref[...], axis=0)


def _unit_norm_kernel(x_ref, o_ref):
    x = x_ref[...]
    n = jnp.sqrt(jnp.sum(x * x, axis=-1, keepdims=True))
    o_ref[...] = x / (n + 1e-8)


# ----------------------------------------------------------------------------
# Pallas wrappers
# ----------------------------------------------------------------------------
def pallas_linear(x, w, b):
    """x:(M,K) @ w:(K,N) + b:(1,N). Whole tile fits VMEM at these sizes."""
    x = x.astype(jnp.float32)
    M, K = x.shape
    N = w.shape[1]
    return pl.pallas_call(
        _linear_kernel,
        grid=(1,),
        out_shape=jax.ShapeDtypeStruct((M, N), jnp.float32),
        in_specs=[pl.BlockSpec((M, K), _ZERO2),
                  pl.BlockSpec((K, N), _ZERO2),
                  pl.BlockSpec((1, N), _ZERO2)],
        out_specs=pl.BlockSpec((M, N), _ZERO2),
        compiler_params=_MOSAIC,
    )(x, w, b)


def anticausal_layer(xcat, xres, w, b):
    """xcat:(M,2C) packed [x; shifted x], w:(2C,C) packed [w0; w1]."""
    M, K2 = xcat.shape
    C = w.shape[1]
    return pl.pallas_call(
        _acausal_kernel,
        grid=(1,),
        out_shape=jax.ShapeDtypeStruct((M, C), jnp.float32),
        in_specs=[pl.BlockSpec((M, K2), _ZERO2),
                  pl.BlockSpec((M, C), _ZERO2),
                  pl.BlockSpec((K2, C), _ZERO2),
                  pl.BlockSpec((1, C), _ZERO2)],
        out_specs=pl.BlockSpec((M, C), _ZERO2),
        compiler_params=_MOSAIC,
    )(xcat, xres, w, b)


def linear_output_stack(x, p):
    """Fused LinearOutputStack: one pallas_call, all weights resident in VMEM."""
    # TODO(synk): LinearOutputStack source not provided; MLP w/ LayerNorm approximation.
    M = x.shape[0]
    dout = p['w_out'].shape[1]
    args = [x.astype(jnp.float32), p['w_in'], p['b_in']]
    for i in range(3):
        args += [p[f'ln_g{i}'], p[f'ln_b{i}'], p[f'w{i}'], p[f'b{i}']]
    args += [p['w_out'], p['b_out']]
    in_specs = [pl.BlockSpec(a.shape, _ZERO2) for a in args]
    return pl.pallas_call(
        _los_kernel,
        grid=(1,),
        out_shape=jax.ShapeDtypeStruct((M, dout), jnp.float32),
        in_specs=in_specs,
        out_specs=pl.BlockSpec((M, dout), _ZERO2),
        compiler_params=_MOSAIC,
    )(*args)


def conv1d_k3(x, p):
    """'same' conv, kernel=3, channels-last, taps packed along K.
    x: (N, L, Cin) -> (N, L, Cout). One (N*L, 3*Cin) slab, one matmul."""
    N, L, Cin = x.shape
    Cout = p['w'].shape[1]
    z = jnp.zeros((N, 1, Cin), jnp.float32)
    xm = jnp.concatenate([z, x[:, :-1]], axis=1)
    xp = jnp.concatenate([x[:, 1:], z], axis=1)
    slab = jnp.concatenate([xm, x, xp], axis=-1).reshape(N * L, 3 * Cin)
    out = pallas_linear(slab, p['w'], p['b'])
    return out.reshape(N, L, Cout)


def sel_resonance(sel, atoms, decay):
    """relu(sel) @ atoms * decay, batched over all piecewise selections."""
    M, K = sel.shape
    R = atoms.shape[1]
    tm = 8
    return pl.pallas_call(
        _sel_res_kernel,
        grid=(M // tm,),
        out_shape=jax.ShapeDtypeStruct((M, R), jnp.float32),
        in_specs=[pl.BlockSpec((tm, K), lambda i: (i, 0)),
                  pl.BlockSpec((K, R), _ZERO2),
                  pl.BlockSpec((tm, R), lambda i: (i, 0))],
        out_specs=pl.BlockSpec((tm, R), lambda i: (i, 0)),
        compiler_params=_MOSAIC_PAR,
    )(sel, atoms, decay)


def mixture_sum(mx, convs):
    """(P,M,R) mixture-weighted sum over P, tiled over R lanes (parallel)."""
    P, M, R = mx.shape
    tr = 256 if R % 256 == 0 else R
    return pl.pallas_call(
        _mix_sum_kernel,
        grid=(R // tr,),
        out_shape=jax.ShapeDtypeStruct((M, R), jnp.float32),
        in_specs=[pl.BlockSpec((P, M, tr), lambda i: (0, 0, i)),
                  pl.BlockSpec((P, M, tr), lambda i: (0, 0, i))],
        out_specs=pl.BlockSpec((M, tr), lambda i: (0, i)),
        compiler_params=_MOSAIC_PAR,
    )(mx, convs)


def unit_norm(x):
    """L2 normalize last dim. Pallas when tile-aligned, else plain XLA."""
    shape = x.shape
    x2 = x.reshape(-1, shape[-1]).astype(jnp.float32)
    M, R = x2.shape
    if M % 8 != 0 or R % 128 != 0:
        n = jnp.sqrt(jnp.sum(x2 * x2, axis=-1, keepdims=True))
        return (x2 / (n + 1e-8)).reshape(shape)
    tm = 8
    out = pl.pallas_call(
        _unit_norm_kernel,
        grid=(M // tm,),
        out_shape=jax.ShapeDtypeStruct((M, R), jnp.float32),
        in_specs=[pl.BlockSpec((tm, R), lambda i: (i, 0))],
        out_specs=pl.BlockSpec((tm, R), lambda i: (i, 0)),
        compiler_params=_MOSAIC_PAR,
    )(x2)
    return out.reshape(shape)


# ----------------------------------------------------------------------------
# Plain-JAX glue (FFT / resampling / framing -- no Pallas FFT primitive)
# ----------------------------------------------------------------------------
def layernorm(x, g, b, eps=1e-5):
    mu = jnp.mean(x, axis=-1, keepdims=True)
    var = jnp.var(x, axis=-1, keepdims=True)
    return (x - mu) / jnp.sqrt(var + eps) * g + b


def interp_linear(x, size):
    """F.interpolate(mode='linear', align_corners=False) along last axis."""
    L = x.shape[-1]
    pos = (jnp.arange(size) + 0.5) * (L / size) - 0.5
    pos = jnp.clip(pos, 0.0, L - 1.0)
    lo = jnp.floor(pos).astype(jnp.int32)
    hi = jnp.minimum(lo + 1, L - 1)
    w = (pos - lo).astype(x.dtype)
    return x[..., lo] * (1.0 - w) + x[..., hi] * w


def fft_convolve(a, b):
    # TODO(synk): FFT has no Pallas equivalent; rfft/irfft stay in XLA.
    n = a.shape[-1]
    pad_a = [(0, 0)] * (a.ndim - 1) + [(0, n)]
    pad_b = [(0, 0)] * (b.ndim - 1) + [(0, b.shape[-1])]
    spec = jnp.fft.rfft(jnp.pad(a, pad_a), axis=-1) * jnp.fft.rfft(jnp.pad(b, pad_b), axis=-1)
    return jnp.fft.irfft(spec, axis=-1)[..., :n]


def _hann(n):
    return (0.5 - 0.5 * jnp.cos(2.0 * jnp.pi * jnp.arange(n) / n)).astype(jnp.float32)


def windowed_audio(x, window, step):
    n_frames = x.shape[-1] // step
    xp = jnp.pad(x, ((0, 0), (0, 0), (0, window - step)))
    idx = jnp.arange(n_frames)[:, None] * step + jnp.arange(window)[None, :]
    return xp[..., idx] * _hann(window)


def overlap_add(frames, step):
    """Vectorized overlap-add: 2 scatter-adds instead of F sequential ones."""
    Bn, E, F, W = frames.shape
    n_chunks = W // step
    chunks = frames.reshape(Bn, E, F, n_chunks, step)
    total = F + n_chunks - 1
    out = jnp.zeros((Bn, E, total, step), jnp.float32)
    for c in range(n_chunks):
        out = out.at[:, :, c:c + F, :].add(chunks[:, :, :, c, :])
    return out.reshape(Bn, E, total * step)


def stft_features(audio):
    """audio (B,1,N) -> (B, T_FRAMES, MODEL_DIM) magnitude features."""
    x = jnp.pad(audio[:, 0, :], ((0, 0), (0, STFT_WIN)))
    idx = jnp.arange(T_FRAMES)[:, None] * STFT_HOP + jnp.arange(STFT_WIN)[None, :]
    frames = x[:, idx] * _hann(STFT_WIN)
    spec = jnp.abs(jnp.fft.rfft(frames, axis=-1))
    return spec[..., :MODEL_DIM].astype(jnp.float32)


# ----------------------------------------------------------------------------
# Module pieces
# ----------------------------------------------------------------------------
def conv_upsample(latent, p):
    # TODO(synk): ConvUpsample source not provided; linear -> (nearest x2 + conv k3) -> conv.
    N = latent.shape[0]
    h = pallas_linear(latent, p['w_lat'], p['b_lat'])               # (N, CH*START)
    h = h.reshape(N, CHANNELS, START_SIZE).transpose(0, 2, 1)       # (N, START, CH)
    n_up = int(np.log2(N_FRAMES // START_SIZE))
    for i in range(n_up):
        h = jnp.repeat(h, 2, axis=1)                                # nearest upsample x2
        h = jax.nn.leaky_relu(conv1d_k3(h, p[f'up{i}']), 0.2)
    h = conv1d_k3(h, p['final'])                                    # (N, N_FRAMES, out_ch)
    return h.transpose(0, 2, 1)                                     # (N, out_ch, N_FRAMES)


def simple_generate_impulse(x, p, batch):
    env = linear_output_stack(x, p['to_env']).reshape(batch, N_EVENTS, ENV_SIZE)
    env = jnp.abs(interp_linear(env, IMPULSE_SIZE))
    filt = linear_output_stack(x, p['to_filt']).reshape(batch, N_EVENTS, FILTER_SIZE)
    noise = jax.random.uniform(jax.random.PRNGKey(123),
                               (batch, N_EVENTS, IMPULSE_SIZE),
                               minval=-1.0, maxval=1.0, dtype=jnp.float32)
    noise = noise * env
    filt = jnp.pad(filt, ((0, 0), (0, 0), (0, IMPULSE_SIZE - FILTER_SIZE)))
    return fft_convolve(noise, filt)


def resonance_forward(latent, impulse, p, batch):
    BE = batch * N_EVENTS
    imp_pad = jnp.pad(impulse, ((0, 0), (0, 0), (0, RESONANCE - IMPULSE_SIZE)))
    imp_flat = imp_pad.reshape(BE, RESONANCE)

    # decay envelope (tiny N=16 linear -> XLA)
    dec = jax.nn.sigmoid(latent @ p['decay_w'] + p['decay_b'])
    dec = BASE_RES + dec * RES_FACTOR
    dec = jnp.exp(jnp.cumsum(jnp.log(1e-12 + dec), axis=-1))
    dec = interp_linear(dec, RESONANCE)                              # (BE, R)

    # time-varying spectral filter
    filt = conv_upsample(latent, p['to_filter']).transpose(0, 2, 1)  # (BE, F, COARSE)
    filt = jax.nn.sigmoid(filt)
    filt = interp_linear(filt, N_COEFFS_WIN)
    filt = filt.reshape(batch, N_EVENTS, N_FRAMES, N_COEFFS_WIN)

    # piecewise resonances, fully batched:
    #   one lane-dense (BE, P*N_ATOMS) selection matmul,
    #   one fused relu@atoms*decay matmul on (P*BE, N_ATOMS),
    #   one batched fft_convolve.
    sel_all = pallas_linear(latent, p['sel_w'], p['sel_b'])          # (BE, P*A)
    sel_all = sel_all.reshape(BE, N_PIECEWISE, N_ATOMS).transpose(1, 0, 2)
    sel_all = sel_all.reshape(N_PIECEWISE * BE, N_ATOMS)
    dec_t = jnp.tile(dec, (N_PIECEWISE, 1))                          # (P*BE, R)
    res_all = sel_resonance(sel_all, p['atoms'], dec_t)              # (P*BE, R)
    convs = fft_convolve(res_all, jnp.tile(imp_flat, (N_PIECEWISE, 1)))
    convs = convs.reshape(N_PIECEWISE, BE, RESONANCE)                # (P, BE, R)

    # time-based mixture over piecewise resonances
    mx = conv_upsample(latent, p['to_mixture'])                      # (BE, P, F)
    mx = interp_linear(mx, RESONANCE)
    mx = jax.nn.softmax(mx, axis=1).transpose(1, 0, 2)               # (P, BE, R)
    final_convs = mixture_sum(mx, convs).reshape(batch, N_EVENTS, RESONANCE)

    # windowed spectral filtering
    win = unit_norm(windowed_audio(final_convs, WINDOW, STEP))
    spec = jnp.fft.rfft(win, axis=-1) * filt
    win = jnp.fft.irfft(spec, axis=-1)
    fc = overlap_add(win, STEP)[..., :RESONANCE]
    fc = unit_norm(fc)

    # final dry(impulse)/wet(resonance) mix (N=2 linear -> XLA)
    fm = jax.nn.softmax(latent @ p['fm_w'] + p['fm_b'], axis=-1)
    fm = fm.reshape(batch, N_EVENTS, 2)
    return fc * fm[..., 0:1] + imp_pad * fm[..., 1:2]


def reverb_forward(context, audio, p):
    # TODO(synk): ReverbGenerator source not provided; simplified room-bank reverb.
    # All projections here are tiny / lane-sparse -> XLA.
    c = layernorm(context, p['ln_g'], p['ln_b'])
    room_sel = jax.nn.softmax(c @ p['rooms_w'] + p['rooms_b'], axis=-1)
    room = room_sel @ p['rooms']
    mix = jax.nn.softmax(c @ p['mix_w'] + p['mix_b'], axis=-1)
    dry = jnp.sum(audio, axis=1, keepdims=True)
    wet = fft_convolve(dry, room[:, None, :])
    return dry * mix[:, None, 0:1] + wet * mix[:, None, 1:2]


def encode(audio, params):
    batch = audio.shape[0]
    x = stft_features(audio)                                         # (B, T, C)
    for li, d in enumerate(DILATIONS):
        # TODO(synk): AntiCausalStack source not provided; anti-causal dilated k=2
        # conv + relu + residual approximation (taps packed -> one K=128 matmul).
        pad = jnp.zeros((batch, d, MODEL_DIM), jnp.float32)
        xs = jnp.concatenate([x[:, d:, :], pad], axis=1)
        xcat = jnp.concatenate([x, xs], axis=-1).reshape(batch * T_FRAMES, 2 * MODEL_DIM)
        pe = params['encoder'][li]
        x = anticausal_layer(xcat, x.reshape(batch * T_FRAMES, MODEL_DIM),
                             pe['w'], pe['b']).reshape(batch, T_FRAMES, MODEL_DIM)
    encoded = x
    z = jnp.mean(encoded, axis=1)                                    # (B, C)
    flat = encoded.reshape(batch * T_FRAMES, MODEL_DIM)
    # N=16 / N=1 projections -> XLA (lane-sparse, launch not worth it)
    event_vecs = (flat @ params['ev_w'] + params['ev_b']).reshape(
        batch, T_FRAMES, CONTEXT_DIM)
    switch = (flat @ params['sw_w'] + params['sw_b']).reshape(batch, T_FRAMES)
    attn = jnp.maximum(switch, 0.0)
    # TODO(synk): sparsify / sparsify_vectors source not provided; top-k gather.
    vals, idx = jax.lax.top_k(attn, N_EVENTS)
    onehot = jax.nn.one_hot(idx, T_FRAMES, dtype=jnp.float32)        # (B, E, T)
    vecs = jnp.einsum('bet,btc->bec', onehot, event_vecs)
    scheduling = onehot * vals[..., None]
    return vecs, z, scheduling, event_vecs


def generate(vecs, scheduling, dense, params):
    batch = vecs.shape[0]
    embeddings = (vecs.reshape(batch * N_EVENTS, CONTEXT_DIM) @ params['fc_w']
                  + params['fc_b'])                                  # (BE, LATENT), XLA
    amps = jnp.sum(scheduling, axis=-1, keepdims=True)
    imp = simple_generate_impulse(embeddings, params['imp'], batch)
    imp = unit_norm(imp)
    mixed = resonance_forward(embeddings, imp, params['res'], batch)
    mixed = unit_norm(mixed) * amps
    final = jnp.pad(mixed, ((0, 0), (0, 0), (0, N_SAMPLES - RESONANCE)))
    stride = N_SAMPLES // T_FRAMES
    up = jnp.zeros((batch, N_EVENTS, N_SAMPLES), jnp.float32)
    up = up.at[:, :, ::stride].set(scheduling)
    final = fft_convolve(final, up)[..., :N_SAMPLES]
    final = reverb_forward(unit_norm(dense), final, params['verb'])
    return final, imp, amps, mixed


def model_forward(audio, params):
    vecs, z, scheduling, event_vecs = encode(audio, params)
    dense = z @ params['el_w'] + params['el_b']                      # embed_latent, XLA
    final, imp, amps, mixed = generate(vecs, scheduling, dense, params)
    return final, vecs, imp, scheduling, amps, dense, mixed, event_vecs


# ----------------------------------------------------------------------------
# Deterministic parameter construction (weight_init = 0.02, biases = 0)
# ----------------------------------------------------------------------------
class ParamGen:
    def __init__(self, seed):
        self.key = jax.random.PRNGKey(seed)

    def normal(self, shape, scale=0.02):
        self.key, k = jax.random.split(self.key)
        return jax.random.normal(k, shape, jnp.float32) * scale


def _lin(pg, din, dout):
    """Plain linear (consumed by XLA): 1-D bias."""
    return pg.normal((din, dout)), jnp.zeros((dout,), jnp.float32)


def _plin(pg, din, dout):
    """Pallas-consumed linear: bias pre-shaped to (1, dout)."""
    return pg.normal((din, dout)), jnp.zeros((1, dout), jnp.float32)


def _conv3(pg, cin, cout):
    """k=3 conv with taps packed along K: w = [w0; w1; w2] -> (3*cin, cout)."""
    w = jnp.concatenate([pg.normal((cin, cout)) for _ in range(3)], axis=0)
    return {'w': w, 'b': jnp.zeros((1, cout), jnp.float32)}


def _los(pg, din, ch, dout):
    p = {}
    p['w_in'], p['b_in'] = _plin(pg, din, ch)
    for i in range(3):
        p[f'w{i}'], p[f'b{i}'] = _plin(pg, ch, ch)
        p[f'ln_g{i}'] = jnp.ones((1, ch), jnp.float32)
        p[f'ln_b{i}'] = jnp.zeros((1, ch), jnp.float32)
    p['w_out'], p['b_out'] = _plin(pg, ch, dout)
    return p


def _convup(pg, din, ch, out_ch):
    p = {}
    p['w_lat'], p['b_lat'] = _plin(pg, din, ch * START_SIZE)
    for i in range(int(np.log2(N_FRAMES // START_SIZE))):
        p[f'up{i}'] = _conv3(pg, ch, ch)
    p['final'] = _conv3(pg, ch, out_ch)
    return p


def musical_scale_hz(start_midi, stop_midi, n_steps):
    midi = np.linspace(start_midi, stop_midi, n_steps)
    return 440.0 * 2.0 ** ((midi - 69.0) / 12.0)


def _square(t):
    return np.where(np.mod(t, 2 * np.pi) < np.pi, 1.0, -1.0)


def _sawtooth(t, width=1.0):
    tm = np.mod(t / (2 * np.pi), 1.0)
    if width >= 1.0:
        return 2.0 * tm - 1.0
    up = 2.0 * tm / width - 1.0
    down = 1.0 - 2.0 * (tm - width) / (1.0 - width)
    return np.where(tm < width, up, down)


def make_waves(n_samples, f0s, samplerate):
    saws, squares, tris, sines = [], [], [], []
    for f0 in f0s:
        f0n = f0 / (samplerate // 2)
        radians = np.linspace(0, f0n * np.pi * n_samples, n_samples)
        saws.append(_sawtooth(radians)[None, ...])
        squares.append(_square(radians)[None, ...])
        tris.append(_sawtooth(radians, 0.5)[None, ...])
        sines.append(np.sin(radians)[None, ...])
    waves = np.concatenate(saws + squares + tris + sines, axis=0)
    return jnp.asarray(waves, jnp.float32)


def build_params(seed=7):
    pg = ParamGen(seed)
    params = {}

    # anti-causal encoder: per layer, w0/w1 packed along K -> (2*C, C)
    params['encoder'] = []
    for _ in DILATIONS:
        w0 = pg.normal((MODEL_DIM, MODEL_DIM))
        w1 = pg.normal((MODEL_DIM, MODEL_DIM))
        params['encoder'].append({'w': jnp.concatenate([w0, w1], axis=0),
                                  'b': jnp.zeros((1, MODEL_DIM), jnp.float32)})

    params['ev_w'], params['ev_b'] = _lin(pg, MODEL_DIM, CONTEXT_DIM)
    params['sw_w'], params['sw_b'] = _lin(pg, MODEL_DIM, 1)
    params['el_w'], params['el_b'] = _lin(pg, MODEL_DIM, CONTEXT_DIM)
    params['fc_w'], params['fc_b'] = _lin(pg, CONTEXT_DIM, LATENT_DIM)

    params['imp'] = {'to_env': _los(pg, LATENT_DIM, CHANNELS, ENV_SIZE),
                     'to_filt': _los(pg, LATENT_DIM, CHANNELS, FILTER_SIZE)}

    f0s = musical_scale_hz(21, 106, N_ATOMS // 4)
    res = {'atoms': make_waves(RESONANCE, f0s, SAMPLERATE)}
    # piecewise selection weights packed along N -> one lane-dense matmul
    sel_ws, sel_bs = [], []
    for _ in range(N_PIECEWISE):
        w, b = _lin(pg, LATENT_DIM, N_ATOMS)
        sel_ws.append(w)
        sel_bs.append(b)
    res['sel_w'] = jnp.concatenate(sel_ws, axis=1)                   # (LAT, P*A)
    res['sel_b'] = jnp.concatenate(sel_bs, axis=0).reshape(1, N_PIECEWISE * N_ATOMS)
    res['decay_w'], res['decay_b'] = _lin(pg, LATENT_DIM, N_FRAMES)
    res['to_filter'] = _convup(pg, LATENT_DIM, CHANNELS, COARSE)
    res['to_mixture'] = _convup(pg, LATENT_DIM, CHANNELS, N_PIECEWISE)
    res['fm_w'], res['fm_b'] = _lin(pg, LATENT_DIM, 2)
    params['res'] = res

    rng = np.random.RandomState(11)
    t = np.arange(N_SAMPLES)
    rooms = np.stack([rng.uniform(-1, 1, N_SAMPLES) *
                      np.exp(-t / (N_SAMPLES * 0.1 * (i + 1))) for i in range(N_ROOMS)])
    verb = {'ln_g': jnp.ones((CONTEXT_DIM,), jnp.float32),
            'ln_b': jnp.zeros((CONTEXT_DIM,), jnp.float32),
            'rooms': jnp.asarray(rooms, jnp.float32)}
    verb['rooms_w'], verb['rooms_b'] = _lin(pg, CONTEXT_DIM, N_ROOMS)
    verb['mix_w'], verb['mix_b'] = _lin(pg, CONTEXT_DIM, 2)
    params['verb'] = verb
    return params


# ----------------------------------------------------------------------------
if __name__ == "__main__":
    params = build_params()
    key = jax.random.PRNGKey(0)
    x = jax.random.normal(key, (B, 1, N_SAMPLES), jnp.float32)

    fwd = jax.jit(model_forward)
    outs = fwd(x, params)
    outs = jax.block_until_ready(outs)

    final, vecs, imp, scheduling, amps, dense, mixed, event_vecs = outs
    assert final.shape == (B, 1, N_SAMPLES)
    assert vecs.shape == (B, N_EVENTS, CONTEXT_DIM)
    assert imp.shape == (B, N_EVENTS, IMPULSE_SIZE)
    assert scheduling.shape == (B, N_EVENTS, T_FRAMES)
    assert mixed.shape == (B, N_EVENTS, RESONANCE)
    assert all(bool(jnp.all(jnp.isfinite(o))) for o in outs)
    print("KERNEL_OK")
</pallas_src>

<mosaic_0001>
module attributes {stable_mosaic.version = 11 : i64} {
  func.func @_acausal_kernel(%arg0: i32, %arg1: memref<32x128xf32, #tpu.memory_space<vmem>>, %arg2: memref<32x64xf32, #tpu.memory_space<vmem>>, %arg3: memref<128x64xf32, #tpu.memory_space<vmem>>, %arg4: memref<1x64xf32, #tpu.memory_space<vmem>>, %arg5: memref<32x64xf32, #tpu.memory_space<vmem>>) attributes {dimension_semantics = [#tpu.dimension_semantics<arbitrary>], iteration_bounds = array<i64: 1>, scalar_prefetch = 0 : i64, scratch_operands = 0 : i64, tpu.core_type = #tpu.core_type<tc>, window_params = [{pipeline_mode = #tpu.pipeline_mode<synchronous>, transform_indices = @transform_0, window_bounds = array<i64: 32, 128>}, {pipeline_mode = #tpu.pipeline_mode<synchronous>, transform_indices = @transform_1, window_bounds = array<i64: 32, 64>}, {pipeline_mode = #tpu.pipeline_mode<synchronous>, transform_indices = @transform_2, window_bounds = array<i64: 128, 64>}, {pipeline_mode = #tpu.pipeline_mode<synchronous>, transform_indices = @transform_3, window_bounds = array<i64: 1, 64>}, {pipeline_mode = #tpu.pipeline_mode<synchronous>, transform_indices = @transform_4, window_bounds = array<i64: 32, 64>}]} {
    %c0 = arith.constant 0 : index
    %c0_0 = arith.constant 0 : index
    %0 = vector.load %arg1[%c0, %c0_0] : memref<32x128xf32, #tpu.memory_space<vmem>>, vector<32x128xf32>
    %c0_1 = arith.constant 0 : index
    %c0_2 = arith.constant 0 : index
    %1 = vector.load %arg3[%c0_1, %c0_2] : memref<128x64xf32, #tpu.memory_space<vmem>>, vector<128x64xf32>
    %cst = arith.constant dense<0.000000e+00> : vector<32x64xf32>
    %2 = tpu.matmul %0, %1, %cst {dimension_numbers = #tpu.dot_dimension_numbers<[1], [0], [0], [1], [0, 0, 1, 1], [], []>} : vector<32x128xf32>, vector<128x64xf32>, vector<32x64xf32> -> vector<32x64xf32>
    %c0_3 = arith.constant 0 : index
    %c0_4 = arith.constant 0 : index
    %3 = vector.load %arg4[%c0_3, %c0_4] : memref<1x64xf32, #tpu.memory_space<vmem>>, vector<1x64xf32>
    %4 = vector.broadcast %3 : vector<1x64xf32> to vector<32x64xf32>
    %5 = arith.addf %2, %4 : vector<32x64xf32>
    %cst_5 = arith.constant 0.000000e+00 : f32
    %6 = vector.broadcast %cst_5 : f32 to vector<32x64xf32>
    %7 = arith.maximumf %5, %6 : vector<32x64xf32>
    %c0_6 = arith.constant 0 : index
    %c0_7 = arith.constant 0 : index
    %8 = vector.load %arg2[%c0_6, %c0_7] : memref<32x64xf32, #tpu.memory_space<vmem>>, vector<32x64xf32>
    %9 = arith.addf %7, %8 : vector<32x64xf32>
    %c0_8 = arith.constant 0 : index
    %c0_9 = arith.constant 0 : index
    %10 = vector.load %arg5[%c0_8, %c0_9] : memref<32x64xf32, #tpu.memory_space<vmem>>, vector<32x64xf32>
    tpu.vector_store %arg5[%c0_8, %c0_9], %9 {strides = array<i32>} : memref<32x64xf32, #tpu.memory_space<vmem>>, vector<32x64xf32>,
    return
  }
  func.func @transform_0(%arg0: i32) -> (i32, i32) {
    %c0_i32 = arith.constant 0 : i32
    %c0_i32_0 = arith.constant 0 : i32
    %c0_i32_1 = arith.constant 0 : i32
    return %c0_i32, %c0_i32_0 : i32, i32
  }
  func.func @transform_1(%arg0: i32) -> (i32, i32) {
    %c0_i32 = arith.constant 0 : i32
    %c0_i32_0 = arith.constant 0 : i32
    %c0_i32_1 = arith.constant 0 : i32
    return %c0_i32, %c0_i32_0 : i32, i32
  }
  func.func @transform_2(%arg0: i32) -> (i32, i32) {
    %c0_i32 = arith.constant 0 : i32
    %c0_i32_0 = arith.constant 0 : i32
    %c0_i32_1 = arith.constant 0 : i32
    return %c0_i32, %c0_i32_0 : i32, i32
  }
  func.func @transform_3(%arg0: i32) -> (i32, i32) {
    %c0_i32 = arith.constant 0 : i32
    %c0_i32_0 = arith.constant 0 : i32
    %c0_i32_1 = arith.constant 0 : i32
    return %c0_i32, %c0_i32_0 : i32, i32
  }
  func.func @transform_4(%arg0: i32) -> (i32, i32) {
    %c0_i32 = arith.constant 0 : i32
    %c0_i32_0 = arith.constant 0 : i32
    %c0_i32_1 = arith.constant 0 : i32
    return %c0_i32, %c0_i32_0 : i32, i32
  }
}

module attributes {stable_mosaic.version = 11 : i64} {
  func.func @_los_kernel(%arg0: i32, %arg1: memref<8x32xf32, #tpu.memory_space<vmem>>, %arg2: memref<32x32xf32, #tpu.memory_space<vmem>>, %arg3: memref<1x32xf32, #tpu.memory_space<vmem>>, %arg4: memref<1x32xf32, #tpu.memory_space<vmem>>, %arg5: memref<1x32xf32, #tpu.memory_space<vmem>>, %arg6: memref<32x32xf32, #tpu.memory_space<vmem>>, %arg7: memref<1x32xf32, #tpu.memory_space<vmem>>, %arg8: memref<1x32xf32, #tpu.memory_space<vmem>>, %arg9: memref<1x32xf32, #tpu.memory_space<vmem>>, %arg10: memref<32x32xf32, #tpu.memory_space<vmem>>, %arg11: memref<1x32xf32, #tpu.memory_space<vmem>>, %arg12: memref<1x32xf32, #tpu.memory_space<vmem>>, %arg13: memref<1x32xf32, #tpu.memory_space<vmem>>, %arg14: memref<32x32xf32, #tpu.memory_space<vmem>>, %arg15: memref<1x32xf32, #tpu.memory_space<vmem>>, %arg16: memref<32x4xf32, #tpu.memory_space<vmem>>, %arg17: memref<1x4xf32, #tpu.memory_space<vmem>>, %arg18: memref<8x4xf32, #tpu.memory_space<vmem>>) attributes {dimension_semantics = [#tpu.dimension_semantics<arbitrary>], iteration_bounds = array<i64: 1>, scalar_prefetch = 0 : i64, scratch_operands = 0 : i64, tpu.core_type = #tpu.core_type<tc>, window_params = [{pipeline_mode = #tpu.pipeline_mode<synchronous>, transform_indices = @transform_0, window_bounds = array<i64: 8, 32>}, {pipeline_mode = #tpu.pipeline_mode<synchronous>, transform_indices = @transform_1, window_bounds = array<i64: 32, 32>}, {pipeline_mode = #tpu.pipeline_mode<synchronous>, transform_indices = @transform_2, window_bounds = array<i64: 1, 32>}, {pipeline_mode = #tpu.pipeline_mode<synchronous>, transform_indices = @transform_3, window_bounds = array<i64: 1, 32>}, {pipeline_mode = #tpu.pipeline_mode<synchronous>, transform_indices = @transform_4, window_bounds = array<i64: 1, 32>}, {pipeline_mode = #tpu.pipeline_mode<synchronous>, transform_indices = @transform_5, window_bounds = array<i64: 32, 32>}, {pipeline_mode = #tpu.pipeline_mode<synchronous>, transform_indices = @transform_6, window_bounds = array<i64: 1, 32>}, {pipeline_mode = #tpu.pipeline_mode<synchronous>, transform_indices = @transform_7, window_bounds = array<i64: 1, 32>}, {pipeline_mode = #tpu.pipeline_mode<synchronous>, transform_indices = @transform_8, window_bounds = array<i64: 1, 32>}, {pipeline_mode = #tpu.pipeline_mode<synchronous>, transform_indices = @transform_9, window_bounds = array<i64: 32, 32>}, {pipeline_mode = #tpu.pipeline_mode<synchronous>, transform_indices = @transform_10, window_bounds = array<i64: 1, 32>}, {pipeline_mode = #tpu.pipeline_mode<synchronous>, transform_indices = @transform_11, window_bounds = array<i64: 1, 32>}, {pipeline_mode = #tpu.pipeline_mode<synchronous>, transform_indices = @transform_12, window_bounds = array<i64: 1, 32>}, {pipeline_mode = #tpu.pipeline_mode<synchronous>, transform_indices = @transform_13, window_bounds = array<i64: 32, 32>}, {pipeline_mode = #tpu.pipeline_mode<synchronous>, transform_indices = @transform_14, window_bounds = array<i64: 1, 32>}, {pipeline_mode = #tpu.pipeline_mode<synchronous>, transform_indices = @transform_15, window_bounds = array<i64: 32, 4>}, {pipeline_mode = #tpu.pipeline_mode<synchronous>, transform_indices = @transform_16, window_bounds = array<i64: 1, 4>}, {pipeline_mode = #tpu.pipeline_mode<synchronous>, transform_indices = @transform_17, window_bounds = array<i64: 8, 4>}]} {
    %c0 = arith.constant 0 : index
    %c0_0 = arith.constant 0 : index
    %0 = vector.load %arg1[%c0, %c0_0] : memref<8x32xf32, #tpu.memory_space<vmem>>, vector<8x32xf32>
    %c0_1 = arith.constant 0 : index
    %c0_2 = arith.constant 0 : index
    %1 = vector.load %arg2[%c0_1, %c0_2] : memref<32x32xf32, #tpu.memory_space<vmem>>, vector<32x32xf32>
    %cst = arith.constant dense<0.000000e+00> : vector<8x32xf32>
    %2 = tpu.matmul %0, %1, %cst {dimension_numbers = #tpu.dot_dimension_numbers<[1], [0], [0], [1], [0, 0, 1, 1], [], []>} : vector<8x32xf32>, vector<32x32xf32>, vector<8x32xf32> -> vector<8x32xf32>
    %c0_3 = arith.constant 0 : index
    %c0_4 = arith.constant 0 : index
    %3 = vector.load %arg3[%c0_3, %c0_4] : memref<1x32xf32, #tpu.memory_space<vmem>>, vector<1x32xf32>
    %4 = vector.broadcast %3 : vector<1x32xf32> to vector<8x32xf32>
    %5 = arith.addf %2, %4 : vector<8x32xf32>
    %cst_5 = arith.constant 0.000000e+00 : f32
    %6 = vector.broadcast %cst_5 : f32 to vector<8x32xf32>
    %7 = arith.cmpf ogt, %5, %6 : vector<8x32xf32>
    %cst_6 = arith.constant 2.000000e-01 : f32
    %8 = vector.broadcast %cst_6 : f32 to vector<8x32xf32>
    %9 = arith.mulf %8, %5 : vector<8x32xf32>
    %10 = arith.select %7, %5, %9 : vector<8x32xi1>, vector<8x32xf32>
    %cst_7 = arith.constant dense<0.000000e+00> : vector<8xf32>
    %11 = vector.multi_reduction <add>, %10, %cst_7 [1] : vector<8x32xf32> to vector<8xf32>
    %12 = vector.shape_cast %11 : vector<8xf32> to vector<8x1xf32>
    %cst_8 = arith.constant 3.200000e+01 : f32
    %13 = vector.broadcast %cst_8 : f32 to vector<8x1xf32>
    %14 = arith.divf %12, %13 : vector<8x1xf32>
    %15 = vector.broadcast %14 : vector<8x1xf32> to vector<8x32xf32>
    %16 = arith.subf %10, %15 : vector<8x32xf32>
    %17 = vector.broadcast %14 : vector<8x1xf32> to vector<8x32xf32>
    %18 = arith.subf %10, %17 : vector<8x32xf32>
    %19 = arith.mulf %16, %18 : vector<8x32xf32>
    %cst_9 = arith.constant dense<0.000000e+00> : vector<8xf32>
    %20 = vector.multi_reduction <add>, %19, %cst_9 [1] : vector<8x32xf32> to vector<8xf32>
    %21 = vector.shape_cast %20 : vector<8xf32> to vector<8x1xf32>
    %cst_10 = arith.constant 3.200000e+01 : f32
    %22 = vector.broadcast %cst_10 : f32 to vector<8x1xf32>
    %23 = arith.divf %21, %22 : vector<8x1xf32>
    %24 = vector.broadcast %14 : vector<8x1xf32> to vector<8x32xf32>
    %25 = arith.subf %10, %24 : vector<8x32xf32>
    %cst_11 = arith.constant 9.99999974E-6 : f32
    %26 = vector.broadcast %cst_11 : f32 to vector<8x1xf32>
    %27 = arith.addf %23, %26 : vector<8x1xf32>
    %28 = math.rsqrt %27 : vector<8x1xf32>
    %29 = vector.broadcast %28 : vector<8x1xf32> to vector<8x32xf32>
    %30 = arith.mulf %25, %29 : vector<8x32xf32>
    %c0_12 = arith.constant 0 : index
    %c0_13 = arith.constant 0 : index
    %31 = vector.load %arg4[%c0_12, %c0_13] : memref<1x32xf32, #tpu.memory_space<vmem>>, vector<1x32xf32>
    %32 = vector.broadcast %31 : vector<1x32xf32> to vector<8x32xf32>
    %33 = arith.mulf %30, %32 : vector<8x32xf32>
    %c0_14 = arith.constant 0 : index
    %c0_15 = arith.constant 0 : index
    %34 = vector.load %arg5[%c0_14, %c0_15] : memref<1x32xf32, #tpu.memory_space<vmem>>, vector<1x32xf32>
    %35 = vector.broadcast %34 : vector<1x32xf32> to vector<8x32xf32>
    %36 = arith.addf %33, %35 : vector<8x32xf32>
    %c0_16 = arith.constant 0 : index
    %c0_17 = arith.constant 0 : index
    %37 = vector.load %arg6[%c0_16, %c0_17] : memref<32x32xf32, #tpu.memory_space<vmem>>, vector<32x32xf32>
    %cst_18 = arith.constant dense<0.000000e+00> : vector<8x32xf32>
    %38 = tpu.matmul %36, %37, %cst_18 {dimension_numbers = #tpu.dot_dimension_numbers<[1], [0], [0], [1], [0, 0, 1, 1], [], []>} : vector<8x32xf32>, vector<32x32xf32>, vector<8x32xf32> -> vector<8x32xf32>
    %c0_19 = arith.constant 0 : index
    %c0_20 = arith.constant 0 : index
    %39 = vector.load %arg7[%c0_19, %c0_20] : memref<1x32xf32, #tpu.memory_space<vmem>>, vector<1x32xf32>
    %40 = vector.broadcast %39 : vector<1x32xf32> to vector<8x32xf32>
    %41 = arith.addf %38, %40 : vector<8x32xf32>
    %cst_21 = arith.constant 0.000000e+00 : f32
    %42 = vector.broadcast %cst_21 : f32 to vector<8x32xf32>
    %43 = arith.cmpf ogt, %41, %42 : vector<8x32xf32>
    %cst_22 = arith.constant 2.000000e-01 : f32
    %44 = vector.broadcast %cst_22 : f32 to vector<8x32xf32>
    %45 = arith.mulf %44, %41 : vector<8x32xf32>
    %46 = arith.select %43, %41, %45 : vector<8x32xi1>, vector<8x32xf32>
    %cst_23 = arith.constant dense<0.000000e+00> : vector<8xf32>
    %47 = vector.multi_reduction <add>, %46, %cst_23 [1] : vector<8x32xf32> to vector<8xf32>
    %48 = vector.shape_cast %47 : vector<8xf32> to vector<8x1xf32>
    %cst_24 = arith.constant 3.200000e+01 : f32
    %49 = vector.broadcast %cst_24 : f32 to vector<8x1xf32>
    %50 = arith.divf %48, %49 : vector<8x1xf32>
    %51 = vector.broadcast %50 : vector<8x1xf32> to vector<8x32xf32>
    %52 = arith.subf %46, %51 : vector<8x32xf32>
    %53 = vector.broadcast %50 : vector<8x1xf32> to vector<8x32xf32>
    %54 = arith.subf %46, %53 : vector<8x32xf32>
    %55 = arith.mulf %52, %54 : vector<8x32xf32>
    %cst_25 = arith.constant dense<0.000000e+00> : vector<8xf32>
    %56 = vector.multi_reduction <add>, %55, %cst_25 [1] : vector<8x32xf32> to vector<8xf32>
    %57 = vector.shape_cast %56 : vector<8xf32> to vector<8x1xf32>
    %cst_26 = arith.constant 3.200000e+01 : f32
    %58 = vector.broadcast %cst_26 : f32 to vector<8x1xf32>
    %59 = arith.divf %57, %58 : vector<8x1xf32>
    %60 = vector.broadcast %50 : vector<8x1xf32> to vector<8x32xf32>
    %61 = arith.subf %46, %60 : vector<8x32xf32>
    %cst_27 = arith.constant 9.99999974E-6 : f32
    %62 = vector.broadcast %cst_27 : f32 to vector<8x1xf32>
    %63 = arith.addf %59, %62 : vector<8x1xf32>
    %64 = math.rsqrt %63 : vector<8x1xf32>
    %65 = vector.broadcast %64 : vector<8x1xf32> to vector<8x32xf32>
    %66 = arith.mulf %61, %65 : vector<8x32xf32>
    %c0_28 = arith.constant 0 : index
    %c0_29 = arith.constant 0 : index
    %67 = vector.load %arg8[%c0_28, %c0_29] : memref<1x32xf32, #tpu.memory_space<vmem>>, vector<1x32xf32>
    %68 = vector.broadcast %67 : vector<1x32xf32> to vector<8x32xf32>
    %69 = arith.mulf %66, %68 : vector<8x32xf32>
    %c0_30 = arith.constant 0 : index
    %c0_31 = arith.constant 0 : index
    %70 = vector.load %arg9[%c0_30, %c0_31] : memref<1x32xf32, #tpu.memory_space<vmem>>, vector<1x32xf32>
    %71 = vector.broadcast %70 : vector<1x32xf32> to vector<8x32xf32>
    %72 = arith.addf %69, %71 : vector<8x32xf32>
    %c0_32 = arith.constant 0 : index
    %c0_33 = arith.constant 0 : index
    %73 = vector.load %arg10[%c0_32, %c0_33] : memref<32x32xf32, #tpu.memory_space<vmem>>, vector<32x32xf32>
    %cst_34 = arith.constant dense<0.000000e+00> : vector<8x32xf32>
    %74 = tpu.matmul %72, %73, %cst_34 {dimension_numbers = #tpu.dot_dimension_numbers<[1], [0], [0], [1], [0, 0, 1, 1], [], []>} : vector<8x32xf32>, vector<32x32xf32>, vector<8x32xf32> -> vector<8x32xf32>
    %c0_35 = arith.constant 0 : index
    %c0_36 = arith.constant 0 : index
    %75 = vector.load %arg11[%c0_35, %c0_36] : memref<1x32xf32, #tpu.memory_space<vmem>>, vector<1x32xf32>
    %76 = vector.broadcast %75 : vector<1x32xf32> to vector<8x32xf32>
    %77 = arith.addf %74, %76 : vector<8x32xf32>
    %cst_37 = arith.constant 0.000000e+00 : f32
    %78 = vector.broadcast %cst_37 : f32 to vector<8x32xf32>
    %79 = arith.cmpf ogt, %77, %78 : vector<8x32xf32>
    %cst_38 = arith.constant 2.000000e-01 : f32
    %80 = vector.broadcast %cst_38 : f32 to vector<8x32xf32>
    %81 = arith.mulf %80, %77 : vector<8x32xf32>
    %82 = arith.select %79, %77, %81 : vector<8x32xi1>, vector<8x32xf32>
    %cst_39 = arith.constant dense<0.000000e+00> : vector<8xf32>
    %83 = vector.multi_reduction <add>, %82, %cst_39 [1] : vector<8x32xf32> to vector<8xf32>
    %84 = vector.shape_cast %83 : vector<8xf32> to vector<8x1xf32>
    %cst_40 = arith.constant 3.200000e+01 : f32
    %85 = vector.broadcast %cst_40 : f32 to vector<8x1xf32>
    %86 = arith.divf %84, %85 : vector<8x1xf32>
    %87 = vector.broadcast %86 : vector<8x1xf32> to vector<8x32xf32>
    %88 = arith.subf %82, %87 : vector<8x32xf32>
    %89 = vector.broadcast %86 : vector<8x1xf32> to vector<8x32xf32>
    %90 = arith.subf %82, %89 : vector<8x32xf32>
    %91 = arith.mulf %88, %90 : vector<8x32xf32>
    %cst_41 = arith.constant dense<0.000000e+00> : vector<8xf32>
    %92 = vector.multi_reduction <add>, %91, %cst_41 [1] : vector<8x32xf32> to vector<8xf32>
    %93 = vector.shape_cast %92 : vector<8xf32> to vector<8x1xf32>
    %cst_42 = arith.constant 3.200000e+01 : f32
    %94 = vector.broadcast %cst_42 : f32 to vector<8x1xf32>
    %95 = arith.divf %93, %94 : vector<8x1xf32>
    %96 = vector.broadcast %86 : vector<8x1xf32> to vector<8x32xf32>
    %97 = arith.subf %82, %96 : vector<8x32xf32>
    %cst_43 = arith.constant 9.99999974E-6 : f32
    %98 = vector.broadcast %cst_43 : f32 to vector<8x1xf32>
    %99 = arith.addf %95, %98 : vector<8x1xf32>
    %100 = math.rsqrt %99 : vector<8x1xf32>
    %101 = vector.broadcast %100 : vector<8x1xf32> to vector<8x32xf32>
    %102 = arith.mulf %97, %101 : vector<8x32xf32>
    %c0_44 = arith.constant 0 : index
    %c0_45 = arith.constant 0 : index
    %103 = vector.load %arg12[%c0_44, %c0_45] : memref<1x32xf32, #tpu.memory_space<vmem>>, vector<1x32xf32>
    %104 = vector.broadcast %103 : vector<1x32xf32> to vector<8x32xf32>
    %105 = arith.mulf %102, %104 : vector<8x32xf32>
    %c0_46 = arith.constant 0 : index
    %c0_47 = arith.constant 0 : index
    %106 = vector.load %arg13[%c0_46, %c0_47] : memref<1x32xf32, #tpu.memory_space<vmem>>, vector<1x32xf32>
    %107 = vector.broadcast %106 : vector<1x32xf32> to vector<8x32xf32>
    %108 = arith.addf %105, %107 : vector<8x32xf32>
    %c0_48 = arith.constant 0 : index
    %c0_49 = arith.constant 0 : index
    %109 = vector.load %arg14[%c0_48, %c0_49] : memref<32x32xf32, #tpu.memory_space<vmem>>, vector<32x32xf32>
    %cst_50 = arith.constant dense<0.000000e+00> : vector<8x32xf32>
    %110 = tpu.matmul %108, %109, %cst_50 {dimension_numbers = #tpu.dot_dimension_numbers<[1], [0], [0], [1], [0, 0, 1, 1], [], []>} : vector<8x32xf32>, vector<32x32xf32>, vector<8x32xf32> -> vector<8x32xf32>
    %c0_51 = arith.constant 0 : index
    %c0_52 = arith.constant 0 : index
    %111 = vector.load %arg15[%c0_51, %c0_52] : memref<1x32xf32, #tpu.memory_space<vmem>>, vector<1x32xf32>
    %112 = vector.broadcast %111 : vector<1x32xf32> to vector<8x32xf32>
    %113 = arith.addf %110, %112 : vector<8x32xf32>
    %cst_53 = arith.constant 0.000000e+00 : f32
    %114 = vector.broadcast %cst_53 : f32 to vector<8x32xf32>
    %115 = arith.cmpf ogt, %113, %114 : vector<8x32xf32>
    %cst_54 = arith.constant 2.000000e-01 : f32
    %116 = vector.broadcast %cst_54 : f32 to vector<8x32xf32>
    %117 = arith.mulf %116, %113 : vector<8x32xf32>
    %118 = arith.select %115, %113, %117 : vector<8x32xi1>, vector<8x32xf32>
    %c0_55 = arith.constant 0 : index
    %c0_56 = arith.constant 0 : index
    %119 = vector.load %arg16[%c0_55, %c0_56] : memref<32x4xf32, #tpu.memory_space<vmem>>, vector<32x4xf32>
    %cst_57 = arith.constant dense<0.000000e+00> : vector<8x4xf32>
    %120 = tpu.matmul %118, %119, %cst_57 {dimension_numbers = #tpu.dot_dimension_numbers<[1], [0], [0], [1], [0, 0, 1, 1], [], []>} : vector<8x32xf32>, vector<32x4xf32>, vector<8x4xf32> -> vector<8x4xf32>
    %c0_58 = arith.constant 0 : index
    %c0_59 = arith.constant 0 : index
    %121 = vector.load %arg17[%c0_58, %c0_59] : memref<1x4xf32, #tpu.memory_space<vmem>>, vector<1x4xf32>
    %122 = vector.broadcast %121 : vector<1x4xf32> to vector<8x4xf32>
    %123 = arith.addf %120, %122 : vector<8x4xf32>
    %c0_60 = arith.constant 0 : index
    %c0_61 = arith.constant 0 : index
    %124 = vector.load %arg18[%c0_60, %c0_61] : memref<8x4xf32, #tpu.memory_space<vmem>>, vector<8x4xf32>
    tpu.vector_store %arg18[%c0_60, %c0_61], %123 {strides = array<i32>} : memref<8x4xf32, #tpu.memory_space<vmem>>, vector<8x4xf32>,
    return
  }
  func.func @transform_0(%arg0: i32) -> (i32, i32) {
    %c0_i32 = arith.constant 0 : i32
    %c0_i32_0 = arith.constant 0 : i32
    %c0_i32_1 = arith.constant 0 : i32
    return %c0_i32, %c0_i32_0 : i32, i32
  }
  func.func @transform_1(%arg0: i32) -> (i32, i32) {
    %c0_i32 = arith.constant 0 : i32
    %c0_i32_0 = arith.constant 0 : i32
    %c0_i32_1 = arith.constant 0 : i32
    return %c0_i32, %c0_i32_0 : i32, i32
  }
  func.func @transform_2(%arg0: i32) -> (i32, i32) {
    %c0_i32 = arith.constant 0 : i32
    %c0_i32_0 = arith.constant 0 : i32
    %c0_i32_1 = arith.constant 0 : i32
    return %c0_i32, %c0_i32_0 : i32, i32
  }
  func.func @transform_3(%arg0: i32) -> (i32, i32) {
    %c0_i32 = arith.constant 0 : i32
    %c0_i32_0 = arith.constant 0 : i32
    %c0_i32_1 = arith.constant 0 : i32
    return %c0_i32, %c0_i32_0 : i32, i32
  }
  func.func @transform_4(%arg0: i32) -> (i32, i32) {
    %c0_i32 = arith.constant 0 : i32
    %c0_i32_0 = arith.constant 0 : i32
    %c0_i32_1 = arith.constant 0 : i32
    return %c0_i32, %c0_i32_0 : i32, i32
  }
  func.func @transform_5(%arg0: i32) -> (i32, i32) {
    %c0_i32 = arith.constant 0 : i32
    %c0_i32_0 = arith.constant 0 : i32
    %c0_i32_1 = arith.constant 0 : i32
    return %c0_i32, %c0_i32_0 : i32, i32
  }
  func.func @transform_6(%arg0: i32) -> (i32, i32) {
    %c0_i32 = arith.constant 0 : i32
    %c0_i32_0 = arith.constant 0 : i32
    %c0_i32_1 = arith.constant 0 : i32
    return %c0_i32, %c0_i32_0 : i32, i32
  }
  func.func @transform_7(%arg0: i32) -> (i32, i32) {
    %c0_i32 = arith.constant 0 : i32
    %c0_i32_0 = arith.constant 0 : i32
    %c0_i32_1 = arith.constant 0 : i32
    return %c0_i32, %c0_i32_0 : i32, i32
  }
  func.func @transform_8(%arg0: i32) -> (i32, i32) {
    %c0_i32 = arith.constant 0 : i32
    %c0_i32_0 = arith.constant 0 : i32
    %c0_i32_1 = arith.constant 0 : i32
    return %c0_i32, %c0_i32_0 : i32, i32
  }
  func.func @transform_9(%arg0: i32) -> (i32, i32) {
    %c0_i32 = arith.constant 0 : i32
    %c0_i32_0 = arith.constant 0 : i32
    %c0_i32_1 = arith.constant 0 : i32
    return %c0_i32, %c0_i32_0 : i32, i32
  }
  func.func @transform_10(%arg0: i32) -> (i32, i32) {
    %c0_i32 = arith.constant 0 : i32
    %c0_i32_0 = arith.constant 0 : i32
    %c0_i32_1 = arith.constant 0 : i32
    return %c0_i32, %c0_i32_0 : i32, i32
  }
  func.func @transform_11(%arg0: i32) -> (i32, i32) {
    %c0_i32 = arith.constant 0 : i32
    %c0_i32_0 = arith.constant 0 : i32
    %c0_i32_1 = arith.constant 0 : i32
    return %c0_i32, %c0_i32_0 : i32, i32
  }
  func.func @transform_12(%arg0: i32) -> (i32, i32) {
    %c0_i32 = arith.constant 0 : i32
    %c0_i32_0 = arith.constant 0 : i32
    %c0_i32_1 = arith.constant 0 : i32
    return %c0_i32, %c0_i32_0 : i32, i32
  }
  func.func @transform_13(%arg0: i32) -> (i32, i32) {
    %c0_i32 = arith.constant 0 : i32
    %c0_i32_0 = arith.constant 0 : i32
    %c0_i32_1 = arith.constant 0 : i32
    return %c0_i32, %c0_i32_0 : i32, i32
  }
  func.func @transform_14(%arg0: i32) -> (i32, i32) {
    %c0_i32 = arith.constant 0 : i32
    %c0_i32_0 = arith.constant 0 : i32
    %c0_i32_1 = arith.constant 0 : i32
    return %c0_i32, %c0_i32_0 : i32, i32
  }
  func.func @transform_15(%arg0: i32) -> (i32, i32) {
    %c0_i32 = arith.constant 0 : i32
    %c0_i32_0 = arith.constant 0 : i32
    %c0_i32_1 = arith.constant 0 : i32
    return %c0_i32, %c0_i32_0 : i32, i32
  }
  func.func @transform_16(%arg0: i32) -> (i32, i32) {
    %c0_i32 = arith.constant 0 : i32
    %c0_i32_0 = arith.constant 0 : i32
    %c0_i32_1 = arith.constant 0 : i32
    return %c0_i32, %c0_i32_0 : i32, i32
  }
  func.func @transform_17(%arg0: i32) -> (i32, i32) {
    %c0_i32 = arith.constant 0 : i32
    %c0_i32_0 = arith.constant 0 : i32
    %c0_i32_1 = arith.constant 0 : i32
    return %c0_i32, %c0_i32_0 : i32, i32
  }
}

module attributes {stable_mosaic.version = 11 : i64} {
  func.func @_los_kernel(%arg0: i32, %arg1: memref<8x32xf32, #tpu.memory_space<vmem>>, %arg2: memref<32x32xf32, #tpu.memory_space<vmem>>, %arg3: memref<1x32xf32, #tpu.memory_space<vmem>>, %arg4: memref<1x32xf32, #tpu.memory_space<vmem>>, %arg5: memref<1x32xf32, #tpu.memory_space<vmem>>, %arg6: memref<32x32xf32, #tpu.memory_space<vmem>>, %arg7: memref<1x32xf32, #tpu.memory_space<vmem>>, %arg8: memref<1x32xf32, #tpu.memory_space<vmem>>, %arg9: memref<1x32xf32, #tpu.memory_space<vmem>>, %arg10: memref<32x32xf32, #tpu.memory_space<vmem>>, %arg11: memref<1x32xf32, #tpu.memory_space<vmem>>, %arg12: memref<1x32xf32, #tpu.memory_space<vmem>>, %arg13: memref<1x32xf32, #tpu.memory_space<vmem>>, %arg14: memref<32x32xf32, #tpu.memory_space<vmem>>, %arg15: memref<1x32xf32, #tpu.memory_space<vmem>>, %arg16: memref<32x64xf32, #tpu.memory_space<vmem>>, %arg17: memref<1x64xf32, #tpu.memory_space<vmem>>, %arg18: memref<8x64xf32, #tpu.memory_space<vmem>>) attributes {dimension_semantics = [#tpu.dimension_semantics<arbitrary>], iteration_bounds = array<i64: 1>, scalar_prefetch = 0 : i64, scratch_operands = 0 : i64, tpu.core_type = #tpu.core_type<tc>, window_params = [{pipeline_mode = #tpu.pipeline_mode<synchronous>, transform_indices = @transform_0, window_bounds = array<i64: 8, 32>}, {pipeline_mode = #tpu.pipeline_mode<synchronous>, transform_indices = @transform_1, window_bounds = array<i64: 32, 32>}, {pipeline_mode = #tpu.pipeline_mode<synchronous>, transform_indices = @transform_2, window_bounds = array<i64: 1, 32>}, {pipeline_mode = #tpu.pipeline_mode<synchronous>, transform_indices = @transform_3, window_bounds = array<i64: 1, 32>}, {pipeline_mode = #tpu.pipeline_mode<synchronous>, transform_indices = @transform_4, window_bounds = array<i64: 1, 32>}, {pipeline_mode = #tpu.pipeline_mode<synchronous>, transform_indices = @transform_5, window_bounds = array<i64: 32, 32>}, {pipeline_mode = #tpu.pipeline_mode<synchronous>, transform_indices = @transform_6, window_bounds = array<i64: 1, 32>}, {pipeline_mode = #tpu.pipeline_mode<synchronous>, transform_indices = @transform_7, window_bounds = array<i64: 1, 32>}, {pipeline_mode = #tpu.pipeline_mode<synchronous>, transform_indices = @transform_8, window_bounds = array<i64: 1, 32>}, {pipeline_mode = #tpu.pipeline_mode<synchronous>, transform_indices = @transform_9, window_bounds = array<i64: 32, 32>}, {pipeline_mode = #tpu.pipeline_mode<synchronous>, transform_indices = @transform_10, window_bounds = array<i64: 1, 32>}, {pipeline_mode = #tpu.pipeline_mode<synchronous>, transform_indices = @transform_11, window_bounds = array<i64: 1, 32>}, {pipeline_mode = #tpu.pipeline_mode<synchronous>, transform_indices = @transform_12, window_bounds = array<i64: 1, 32>}, {pipeline_mode = #tpu.pipeline_mode<synchronous>, transform_indices = @transform_13, window_bounds = array<i64: 32, 32>}, {pipeline_mode = #tpu.pipeline_mode<synchronous>, transform_indices = @transform_14, window_bounds = array<i64: 1, 32>}, {pipeline_mode = #tpu.pipeline_mode<synchronous>, transform_indices = @transform_15, window_bounds = array<i64: 32, 64>}, {pipeline_mode = #tpu.pipeline_mode<synchronous>, transform_indices = @transform_16, window_bounds = array<i64: 1, 64>}, {pipeline_mode = #tpu.pipeline_mode<synchronous>, transform_indices = @transform_17, window_bounds = array<i64: 8, 64>}]} {
    %c0 = arith.constant 0 : index
    %c0_0 = arith.constant 0 : index
    %0 = vector.load %arg1[%c0, %c0_0] : memref<8x32xf32, #tpu.memory_space<vmem>>, vector<8x32xf32>
    %c0_1 = arith.constant 0 : index
    %c0_2 = arith.constant 0 : index
    %1 = vector.load %arg2[%c0_1, %c0_2] : memref<32x32xf32, #tpu.memory_space<vmem>>, vector<32x32xf32>
    %cst = arith.constant dense<0.000000e+00> : vector<8x32xf32>
    %2 = tpu.matmul %0, %1, %cst {dimension_numbers = #tpu.dot_dimension_numbers<[1], [0], [0], [1], [0, 0, 1, 1], [], []>} : vector<8x32xf32>, vector<32x32xf32>, vector<8x32xf32> -> vector<8x32xf32>
    %c0_3 = arith.constant 0 : index
    %c0_4 = arith.constant 0 : index
    %3 = vector.load %arg3[%c0_3, %c0_4] : memref<1x32xf32, #tpu.memory_space<vmem>>, vector<1x32xf32>
    %4 = vector.broadcast %3 : vector<1x32xf32> to vector<8x32xf32>
    %5 = arith.addf %2, %4 : vector<8x32xf32>
    %cst_5 = arith.constant 0.000000e+00 : f32
    %6 = vector.broadcast %cst_5 : f32 to vector<8x32xf32>
    %7 = arith.cmpf ogt, %5, %6 : vector<8x32xf32>
    %cst_6 = arith.constant 2.000000e-01 : f32
    %8 = vector.broadcast %cst_6 : f32 to vector<8x32xf32>
    %9 = arith.mulf %8, %5 : vector<8x32xf32>
    %10 = arith.select %7, %5, %9 : vector<8x32xi1>, vector<8x32xf32>
    %cst_7 = arith.constant dense<0.000000e+00> : vector<8xf32>
    %11 = vector.multi_reduction <add>, %10, %cst_7 [1] : vector<8x32xf32> to vector<8xf32>
    %12 = vector.shape_cast %11 : vector<8xf32> to vector<8x1xf32>
    %cst_8 = arith.constant 3.200000e+01 : f32
    %13 = vector.broadcast %cst_8 : f32 to vector<8x1xf32>
    %14 = arith.divf %12, %13 : vector<8x1xf32>
    %15 = vector.broadcast %14 : vector<8x1xf32> to vector<8x32xf32>
    %16 = arith.subf %10, %15 : vector<8x32xf32>
    %17 = vector.broadcast %14 : vector<8x1xf32> to vector<8x32xf32>
    %18 = arith.subf %10, %17 : vector<8x32xf32>
    %19 = arith.mulf %16, %18 : vector<8x32xf32>
    %cst_9 = arith.constant dense<0.000000e+00> : vector<8xf32>
    %20 = vector.multi_reduction <add>, %19, %cst_9 [1] : vector<8x32xf32> to vector<8xf32>
    %21 = vector.shape_cast %20 : vector<8xf32> to vector<8x1xf32>
    %cst_10 = arith.constant 3.200000e+01 : f32
    %22 = vector.broadcast %cst_10 : f32 to vector<8x1xf32>
    %23 = arith.divf %21, %22 : vector<8x1xf32>
    %24 = vector.broadcast %14 : vector<8x1xf32> to vector<8x32xf32>
    %25 = arith.subf %10, %24 : vector<8x32xf32>
    %cst_11 = arith.constant 9.99999974E-6 : f32
    %26 = vector.broadcast %cst_11 : f32 to vector<8x1xf32>
    %27 = arith.addf %23, %26 : vector<8x1xf32>
    %28 = math.rsqrt %27 : vector<8x1xf32>
    %29 = vector.broadcast %28 : vector<8x1xf32> to vector<8x32xf32>
    %30 = arith.mulf %25, %29 : vector<8x32xf32>
    %c0_12 = arith.constant 0 : index
    %c0_13 = arith.constant 0 : index
    %31 = vector.load %arg4[%c0_12, %c0_13] : memref<1x32xf32, #tpu.memory_space<vmem>>, vector<1x32xf32>
    %32 = vector.broadcast %31 : vector<1x32xf32> to vector<8x32xf32>
    %33 = arith.mulf %30, %32 : vector<8x32xf32>
    %c0_14 = arith.constant 0 : index
    %c0_15 = arith.constant 0 : index
    %34 = vector.load %arg5[%c0_14, %c0_15] : memref<1x32xf32, #tpu.memory_space<vmem>>, vector<1x32xf32>
    %35 = vector.broadcast %34 : vector<1x32xf32> to vector<8x32xf32>
    %36 = arith.addf %33, %35 : vector<8x32xf32>
    %c0_16 = arith.constant 0 : index
    %c0_17 = arith.constant 0 : index
    %37 = vector.load %arg6[%c0_16, %c0_17] : memref<32x32xf32, #tpu.memory_space<vmem>>, vector<32x32xf32>
    %cst_18 = arith.constant dense<0.000000e+00> : vector<8x32xf32>
    %38 = tpu.matmul %36, %37, %cst_18 {dimension_numbers = #tpu.dot_dimension_numbers<[1], [0], [0], [1], [0, 0, 1, 1], [], []>} : vector<8x32xf32>, vector<32x32xf32>, vector<8x32xf32> -> vector<8x32xf32>
    %c0_19 = arith.constant 0 : index
    %c0_20 = arith.constant 0 : index
    %39 = vector.load %arg7[%c0_19, %c0_20] : memref<1x32xf32, #tpu.memory_space<vmem>>, vector<1x32xf32>
    %40 = vector.broadcast %39 : vector<1x32xf32> to vector<8x32xf32>
    %41 = arith.addf %38, %40 : vector<8x32xf32>
    %cst_21 = arith.constant 0.000000e+00 : f32
    %42 = vector.broadcast %cst_21 : f32 to vector<8x32xf32>
    %43 = arith.cmpf ogt, %41, %42 : vector<8x32xf32>
    %cst_22 = arith.constant 2.000000e-01 : f32
    %44 = vector.broadcast %cst_22 : f32 to vector<8x32xf32>
    %45 = arith.mulf %44, %41 : vector<8x32xf32>
    %46 = arith.select %43, %41, %45 : vector<8x32xi1>, vector<8x32xf32>
    %cst_23 = arith.constant dense<0.000000e+00> : vector<8xf32>
    %47 = vector.multi_reduction <add>, %46, %cst_23 [1] : vector<8x32xf32> to vector<8xf32>
    %48 = vector.shape_cast %47 : vector<8xf32> to vector<8x1xf32>
    %cst_24 = arith.constant 3.200000e+01 : f32
    %49 = vector.broadcast %cst_24 : f32 to vector<8x1xf32>
    %50 = arith.divf %48, %49 : vector<8x1xf32>
    %51 = vector.broadcast %50 : vector<8x1xf32> to vector<8x32xf32>
    %52 = arith.subf %46, %51 : vector<8x32xf32>
    %53 = vector.broadcast %50 : vector<8x1xf32> to vector<8x32xf32>
    %54 = arith.subf %46, %53 : vector<8x32xf32>
    %55 = arith.mulf %52, %54 : vector<8x32xf32>
    %cst_25 = arith.constant dense<0.000000e+00> : vector<8xf32>
    %56 = vector.multi_reduction <add>, %55, %cst_25 [1] : vector<8x32xf32> to vector<8xf32>
    %57 = vector.shape_cast %56 : vector<8xf32> to vector<8x1xf32>
    %cst_26 = arith.constant 3.200000e+01 : f32
    %58 = vector.broadcast %cst_26 : f32 to vector<8x1xf32>
    %59 = arith.divf %57, %58 : vector<8x1xf32>
    %60 = vector.broadcast %50 : vector<8x1xf32> to vector<8x32xf32>
    %61 = arith.subf %46, %60 : vector<8x32xf32>
    %cst_27 = arith.constant 9.99999974E-6 : f32
    %62 = vector.broadcast %cst_27 : f32 to vector<8x1xf32>
    %63 = arith.addf %59, %62 : vector<8x1xf32>
    %64 = math.rsqrt %63 : vector<8x1xf32>
    %65 = vector.broadcast %64 : vector<8x1xf32> to vector<8x32xf32>
    %66 = arith.mulf %61, %65 : vector<8x32xf32>
    %c0_28 = arith.constant 0 : index
    %c0_29 = arith.constant 0 : index
    %67 = vector.load %arg8[%c0_28, %c0_29] : memref<1x32xf32, #tpu.memory_space<vmem>>, vector<1x32xf32>
    %68 = vector.broadcast %67 : vector<1x32xf32> to vector<8x32xf32>
    %69 = arith.mulf %66, %68 : vector<8x32xf32>
    %c0_30 = arith.constant 0 : index
    %c0_31 = arith.constant 0 : index
    %70 = vector.load %arg9[%c0_30, %c0_31] : memref<1x32xf32, #tpu.memory_space<vmem>>, vector<1x32xf32>
    %71 = vector.broadcast %70 : vector<1x32xf32> to vector<8x32xf32>
    %72 = arith.addf %69, %71 : vector<8x32xf32>
    %c0_32 = arith.constant 0 : index
    %c0_33 = arith.constant 0 : index
    %73 = vector.load %arg10[%c0_32, %c0_33] : memref<32x32xf32, #tpu.memory_space<vmem>>, vector<32x32xf32>
    %cst_34 = arith.constant dense<0.000000e+00> : vector<8x32xf32>
    %74 = tpu.matmul %72, %73, %cst_34 {dimension_numbers = #tpu.dot_dimension_numbers<[1], [0], [0], [1], [0, 0, 1, 1], [], []>} : vector<8x32xf32>, vector<32x32xf32>, vector<8x32xf32> -> vector<8x32xf32>
    %c0_35 = arith.constant 0 : index
    %c0_36 = arith.constant 0 : index
    %75 = vector.load %arg11[%c0_35, %c0_36] : memref<1x32xf32, #tpu.memory_space<vmem>>, vector<1x32xf32>
    %76 = vector.broadcast %75 : vector<1x32xf32> to vector<8x32xf32>
    %77 = arith.addf %74, %76 : vector<8x32xf32>
    %cst_37 = arith.constant 0.000000e+00 : f32
    %78 = vector.broadcast %cst_37 : f32 to vector<8x32xf32>
    %79 = arith.cmpf ogt, %77, %78 : vector<8x32xf32>
    %cst_38 = arith.constant 2.000000e-01 : f32
    %80 = vector.broadcast %cst_38 : f32 to vector<8x32xf32>
    %81 = arith.mulf %80, %77 : vector<8x32xf32>
    %82 = arith.select %79, %77, %81 : vector<8x32xi1>, vector<8x32xf32>
    %cst_39 = arith.constant dense<0.000000e+00> : vector<8xf32>
    %83 = vector.multi_reduction <add>, %82, %cst_39 [1] : vector<8x32xf32> to vector<8xf32>
    %84 = vector.shape_cast %83 : vector<8xf32> to vector<8x1xf32>
    %cst_40 = arith.constant 3.200000e+01 : f32
    %85 = vector.broadcast %cst_40 : f32 to vector<8x1xf32>
    %86 = arith.divf %84, %85 : vector<8x1xf32>
    %87 = vector.broadcast %86 : vector<8x1xf32> to vector<8x32xf32>
    %88 = arith.subf %82, %87 : vector<8x32xf32>
    %89 = vector.broadcast %86 : vector<8x1xf32> to vector<8x32xf32>
    %90 = arith.subf %82, %89 : vector<8x32xf32>
    %91 = arith.mulf %88, %90 : vector<8x32xf32>
    %cst_41 = arith.constant dense<0.000000e+00> : vector<8xf32>
    %92 = vector.multi_reduction <add>, %91, %cst_41 [1] : vector<8x32xf32> to vector<8xf32>
    %93 = vector.shape_cast %92 : vector<8xf32> to vector<8x1xf32>
    %cst_42 = arith.constant 3.200000e+01 : f32
    %94 = vector.broadcast %cst_42 : f32 to vector<8x1xf32>
    %95 = arith.divf %93, %94 : vector<8x1xf32>
    %96 = vector.broadcast %86 : vector<8x1xf32> to vector<8x32xf32>
    %97 = arith.subf %82, %96 : vector<8x32xf32>
    %cst_43 = arith.constant 9.99999974E-6 : f32
    %98 = vector.broadcast %cst_43 : f32 to vector<8x1xf32>
    %99 = arith.addf %95, %98 : vector<8x1xf32>
    %100 = math.rsqrt %99 : vector<8x1xf32>
    %101 = vector.broadcast %100 : vector<8x1xf32> to vector<8x32xf32>
    %102 = arith.mulf %97, %101 : vector<8x32xf32>
    %c0_44 = arith.constant 0 : index
    %c0_45 = arith.constant 0 : index
    %103 = vector.load %arg12[%c0_44, %c0_45] : memref<1x32xf32, #tpu.memory_space<vmem>>, vector<1x32xf32>
    %104 = vector.broadcast %103 : vector<1x32xf32> to vector<8x32xf32>
    %105 = arith.mulf %102, %104 : vector<8x32xf32>
    %c0_46 = arith.constant 0 : index
    %c0_47 = arith.constant 0 : index
    %106 = vector.load %arg13[%c0_46, %c0_47] : memref<1x32xf32, #tpu.memory_space<vmem>>, vector<1x32xf32>
    %107 = vector.broadcast %106 : vector<1x32xf32> to vector<8x32xf32>
    %108 = arith.addf %105, %107 : vector<8x32xf32>
    %c0_48 = arith.constant 0 : index
    %c0_49 = arith.constant 0 : index
    %109 = vector.load %arg14[%c0_48, %c0_49] : memref<32x32xf32, #tpu.memory_space<vmem>>, vector<32x32xf32>
    %cst_50 = arith.constant dense<0.000000e+00> : vector<8x32xf32>
    %110 = tpu.matmul %108, %109, %cst_50 {dimension_numbers = #tpu.dot_dimension_numbers<[1], [0], [0], [1], [0, 0, 1, 1], [], []>} : vector<8x32xf32>, vector<32x32xf32>, vector<8x32xf32> -> vector<8x32xf32>
    %c0_51 = arith.constant 0 : index
    %c0_52 = arith.constant 0 : index
    %111 = vector.load %arg15[%c0_51, %c0_52] : memref<1x32xf32, #tpu.memory_space<vmem>>, vector<1x32xf32>
    %112 = vector.broadcast %111 : vector<1x32xf32> to vector<8x32xf32>
    %113 = arith.addf %110, %112 : vector<8x32xf32>
    %cst_53 = arith.constant 0.000000e+00 : f32
    %114 = vector.broadcast %cst_53 : f32 to vector<8x32xf32>
    %115 = arith.cmpf ogt, %113, %114 : vector<8x32xf32>
    %cst_54 = arith.constant 2.000000e-01 : f32
    %116 = vector.broadcast %cst_54 : f32 to vector<8x32xf32>
    %117 = arith.mulf %116, %113 : vector<8x32xf32>
    %118 = arith.select %115, %113, %117 : vector<8x32xi1>, vector<8x32xf32>
    %c0_55 = arith.constant 0 : index
    %c0_56 = arith.constant 0 : index
    %119 = vector.load %arg16[%c0_55, %c0_56] : memref<32x64xf32, #tpu.memory_space<vmem>>, vector<32x64xf32>
    %cst_57 = arith.constant dense<0.000000e+00> : vector<8x64xf32>
    %120 = tpu.matmul %118, %119, %cst_57 {dimension_numbers = #tpu.dot_dimension_numbers<[1], [0], [0], [1], [0, 0, 1, 1], [], []>} : vector<8x32xf32>, vector<32x64xf32>, vector<8x64xf32> -> vector<8x64xf32>
    %c0_58 = arith.constant 0 : index
    %c0_59 = arith.constant 0 : index
    %121 = vector.load %arg17[%c0_58, %c0_59] : memref<1x64xf32, #tpu.memory_space<vmem>>, vector<1x64xf32>
    %122 = vector.broadcast %121 : vector<1x64xf32> to vector<8x64xf32>
    %123 = arith.addf %120, %122 : vector<8x64xf32>
    %c0_60 = arith.constant 0 : index
    %c0_61 = arith.constant 0 : index
    %124 = vector.load %arg18[%c0_60, %c0_61] : memref<8x64xf32, #tpu.memory_space<vmem>>, vector<8x64xf32>
    tpu.vector_store %arg18[%c0_60, %c0_61], %123 {strides = array<i32>} : memref<8x64xf32, #tpu.memory_space<vmem>>, vector<8x64xf32>,
    return
  }
  func.func @transform_0(%arg0: i32) -> (i32, i32) {
    %c0_i32 = arith.constant 0 : i32
    %c0_i32_0 = arith.constant 0 : i32
    %c0_i32_1 = arith.constant 0 : i32
    return %c0_i32, %c0_i32_0 : i32, i32
  }
  func.func @transform_1(%arg0: i32) -> (i32, i32) {
    %c0_i32 = arith.constant 0 : i32
    %c0_i32_0 = arith.constant 0 : i32
    %c0_i32_1 = arith.constant 0 : i32
    return %c0_i32, %c0_i32_0 : i32, i32
  }
  func.func @transform_2(%arg0: i32) -> (i32, i32) {
    %c0_i32 = arith.constant 0 : i32
    %c0_i32_0 = arith.constant 0 : i32
    %c0_i32_1 = arith.constant 0 : i32
    return %c0_i32, %c0_i32_0 : i32, i32
  }
  func.func @transform_3(%arg0: i32) -> (i32, i32) {
    %c0_i32 = arith.constant 0 : i32
    %c0_i32_0 = arith.constant 0 : i32
    %c0_i32_1 = arith.constant 0 : i32
    return %c0_i32, %c0_i32_0 : i32, i32
  }
  func.func @transform_4(%arg0: i32) -> (i32, i32) {
    %c0_i32 = arith.constant 0 : i32
    %c0_i32_0 = arith.constant 0 : i32
    %c0_i32_1 = arith.constant 0 : i32
    return %c0_i32, %c0_i32_0 : i32, i32
  }
  func.func @transform_5(%arg0: i32) -> (i32, i32) {
    %c0_i32 = arith.constant 0 : i32
    %c0_i32_0 = arith.constant 0 : i32
    %c0_i32_1 = arith.constant 0 : i32
    return %c0_i32, %c0_i32_0 : i32, i32
  }
  func.func @transform_6(%arg0: i32) -> (i32, i32) {
    %c0_i32 = arith.constant 0 : i32
    %c0_i32_0 = arith.constant 0 : i32
    %c0_i32_1 = arith.constant 0 : i32
    return %c0_i32, %c0_i32_0 : i32, i32
  }
  func.func @transform_7(%arg0: i32) -> (i32, i32) {
    %c0_i32 = arith.constant 0 : i32
    %c0_i32_0 = arith.constant 0 : i32
    %c0_i32_1 = arith.constant 0 : i32
    return %c0_i32, %c0_i32_0 : i32, i32
  }
  func.func @transform_8(%arg0: i32) -> (i32, i32) {
    %c0_i32 = arith.constant 0 : i32
    %c0_i32_0 = arith.constant 0 : i32
    %c0_i32_1 = arith.constant 0 : i32
    return %c0_i32, %c0_i32_0 : i32, i32
  }
  func.func @transform_9(%arg0: i32) -> (i32, i32) {
    %c0_i32 = arith.constant 0 : i32
    %c0_i32_0 = arith.constant 0 : i32
    %c0_i32_1 = arith.constant 0 : i32
    return %c0_i32, %c0_i32_0 : i32, i32
  }
  func.func @transform_10(%arg0: i32) -> (i32, i32) {
    %c0_i32 = arith.constant 0 : i32
    %c0_i32_0 = arith.constant 0 : i32
    %c0_i32_1 = arith.constant 0 : i32
    return %c0_i32, %c0_i32_0 : i32, i32
  }
  func.func @transform_11(%arg0: i32) -> (i32, i32) {
    %c0_i32 = arith.constant 0 : i32
    %c0_i32_0 = arith.constant 0 : i32
    %c0_i32_1 = arith.constant 0 : i32
    return %c0_i32, %c0_i32_0 : i32, i32
  }
  func.func @transform_12(%arg0: i32) -> (i32, i32) {
    %c0_i32 = arith.constant 0 : i32
    %c0_i32_0 = arith.constant 0 : i32
    %c0_i32_1 = arith.constant 0 : i32
    return %c0_i32, %c0_i32_0 : i32, i32
  }
  func.func @transform_13(%arg0: i32) -> (i32, i32) {
    %c0_i32 = arith.constant 0 : i32
    %c0_i32_0 = arith.constant 0 : i32
    %c0_i32_1 = arith.constant 0 : i32
    return %c0_i32, %c0_i32_0 : i32, i32
  }
  func.func @transform_14(%arg0: i32) -> (i32, i32) {
    %c0_i32 = arith.constant 0 : i32
    %c0_i32_0 = arith.constant 0 : i32
    %c0_i32_1 = arith.constant 0 : i32
    return %c0_i32, %c0_i32_0 : i32, i32
  }
  func.func @transform_15(%arg0: i32) -> (i32, i32) {
    %c0_i32 = arith.constant 0 : i32
    %c0_i32_0 = arith.constant 0 : i32
    %c0_i32_1 = arith.constant 0 : i32
    return %c0_i32, %c0_i32_0 : i32, i32
  }
  func.func @transform_16(%arg0: i32) -> (i32, i32) {
    %c0_i32 = arith.constant 0 : i32
    %c0_i32_0 = arith.constant 0 : i32
    %c0_i32_1 = arith.constant 0 : i32
    return %c0_i32, %c0_i32_0 : i32, i32
  }
  func.func @transform_17(%arg0: i32) -> (i32, i32) {
    %c0_i32 = arith.constant 0 : i32
    %c0_i32_0 = arith.constant 0 : i32
    %c0_i32_1 = arith.constant 0 : i32
    return %c0_i32, %c0_i32_0 : i32, i32
  }
}

module attributes {stable_mosaic.version = 11 : i64} {
  func.func @_linear_kernel(%arg0: i32, %arg1: memref<8x32xf32, #tpu.memory_space<vmem>>, %arg2: memref<32x256xf32, #tpu.memory_space<vmem>>, %arg3: memref<1x256xf32, #tpu.memory_space<vmem>>, %arg4: memref<8x256xf32, #tpu.memory_space<vmem>>) attributes {dimension_semantics = [#tpu.dimension_semantics<arbitrary>], iteration_bounds = array<i64: 1>, scalar_prefetch = 0 : i64, scratch_operands = 0 : i64, tpu.core_type = #tpu.core_type<tc>, window_params = [{pipeline_mode = #tpu.pipeline_mode<synchronous>, transform_indices = @transform_0, window_bounds = array<i64: 8, 32>}, {pipeline_mode = #tpu.pipeline_mode<synchronous>, transform_indices = @transform_1, window_bounds = array<i64: 32, 256>}, {pipeline_mode = #tpu.pipeline_mode<synchronous>, transform_indices = @transform_2, window_bounds = array<i64: 1, 256>}, {pipeline_mode = #tpu.pipeline_mode<synchronous>, transform_indices = @transform_3, window_bounds = array<i64: 8, 256>}]} {
    %c0 = arith.constant 0 : index
    %c0_0 = arith.constant 0 : index
    %0 = vector.load %arg1[%c0, %c0_0] : memref<8x32xf32, #tpu.memory_space<vmem>>, vector<8x32xf32>
    %c0_1 = arith.constant 0 : index
    %c0_2 = arith.constant 0 : index
    %1 = vector.load %arg2[%c0_1, %c0_2] : memref<32x256xf32, #tpu.memory_space<vmem>>, vector<32x256xf32>
    %cst = arith.constant dense<0.000000e+00> : vector<8x256xf32>
    %2 = tpu.matmul %0, %1, %cst {dimension_numbers = #tpu.dot_dimension_numbers<[1], [0], [0], [1], [0, 0, 1, 1], [], []>} : vector<8x32xf32>, vector<32x256xf32>, vector<8x256xf32> -> vector<8x256xf32>
    %c0_3 = arith.constant 0 : index
    %c0_4 = arith.constant 0 : index
    %3 = vector.load %arg3[%c0_3, %c0_4] : memref<1x256xf32, #tpu.memory_space<vmem>>, vector<1x256xf32>
    %4 = vector.broadcast %3 : vector<1x256xf32> to vector<8x256xf32>
    %5 = arith.addf %2, %4 : vector<8x256xf32>
    %c0_5 = arith.constant 0 : index
    %c0_6 = arith.constant 0 : index
    %6 = vector.load %arg4[%c0_5, %c0_6] : memref<8x256xf32, #tpu.memory_space<vmem>>, vector<8x256xf32>
    tpu.vector_store %arg4[%c0_5, %c0_6], %5 {strides = array<i32>} : memref<8x256xf32, #tpu.memory_space<vmem>>, vector<8x256xf32>,
    return
  }
  func.func @transform_0(%arg0: i32) -> (i32, i32) {
    %c0_i32 = arith.constant 0 : i32
    %c0_i32_0 = arith.constant 0 : i32
    %c0_i32_1 = arith.constant 0 : i32
    return %c0_i32, %c0_i32_0 : i32, i32
  }
  func.func @transform_1(%arg0: i32) -> (i32, i32) {
    %c0_i32 = arith.constant 0 : i32
    %c0_i32_0 = arith.constant 0 : i32
    %c0_i32_1 = arith.constant 0 : i32
    return %c0_i32, %c0_i32_0 : i32, i32
  }
  func.func @transform_2(%arg0: i32) -> (i32, i32) {
    %c0_i32 = arith.constant 0 : i32
    %c0_i32_0 = arith.constant 0 : i32
    %c0_i32_1 = arith.constant 0 : i32
    return %c0_i32, %c0_i32_0 : i32, i32
  }
  func.func @transform_3(%arg0: i32) -> (i32, i32) {
    %c0_i32 = arith.constant 0 : i32
    %c0_i32_0 = arith.constant 0 : i32
    %c0_i32_1 = arith.constant 0 : i32
    return %c0_i32, %c0_i32_0 : i32, i32
  }
}

module attributes {stable_mosaic.version = 11 : i64} {
  func.func @_linear_kernel(%arg0: i32, %arg1: memref<128x96xf32, #tpu.memory_space<vmem>>, %arg2: memref<96x32xf32, #tpu.memory_space<vmem>>, %arg3: memref<1x32xf32, #tpu.memory_space<vmem>>, %arg4: memref<128x32xf32, #tpu.memory_space<vmem>>) attributes {dimension_semantics = [#tpu.dimension_semantics<arbitrary>], iteration_bounds = array<i64: 1>, scalar_prefetch = 0 : i64, scratch_operands = 0 : i64, tpu.core_type = #tpu.core_type<tc>, window_params = [{pipeline_mode = #tpu.pipeline_mode<synchronous>, transform_indices = @transform_0, window_bounds = array<i64: 128, 96>}, {pipeline_mode = #tpu.pipeline_mode<synchronous>, transform_indices = @transform_1, window_bounds = array<i64: 96, 32>}, {pipeline_mode = #tpu.pipeline_mode<synchronous>, transform_indices = @transform_2, window_bounds = array<i64: 1, 32>}, {pipeline_mode = #tpu.pipeline_mode<synchronous>, transform_indices = @transform_3, window_bounds = array<i64: 128, 32>}]} {
    %c0 = arith.constant 0 : index
    %c0_0 = arith.constant 0 : index
    %0 = vector.load %arg1[%c0, %c0_0] : memref<128x96xf32, #tpu.memory_space<vmem>>, vector<128x96xf32>
    %c0_1 = arith.constant 0 : index
    %c0_2 = arith.constant 0 : index
    %1 = vector.load %arg2[%c0_1, %c0_2] : memref<96x32xf32, #tpu.memory_space<vmem>>, vector<96x32xf32>
    %cst = arith.constant dense<0.000000e+00> : vector<128x32xf32>
    %2 = tpu.matmul %0, %1, %cst {dimension_numbers = #tpu.dot_dimension_numbers<[1], [0], [0], [1], [0, 0, 1, 1], [], []>} : vector<128x96xf32>, vector<96x32xf32>, vector<128x32xf32> -> vector<128x32xf32>
    %c0_3 = arith.constant 0 : index
    %c0_4 = arith.constant 0 : index
    %3 = vector.load %arg3[%c0_3, %c0_4] : memref<1x32xf32, #tpu.memory_space<vmem>>, vector<1x32xf32>
    %4 = vector.broadcast %3 : vector<1x32xf32> to vector<128x32xf32>
    %5 = arith.addf %2, %4 : vector<128x32xf32>
    %c0_5 = arith.constant 0 : index
    %c0_6 = arith.constant 0 : index
    %6 = vector.load %arg4[%c0_5, %c0_6] : memref<128x32xf32, #tpu.memory_space<vmem>>, vector<128x32xf32>
    tpu.vector_store %arg4[%c0_5, %c0_6], %5 {strides = array<i32>} : memref<128x32xf32, #tpu.memory_space<vmem>>, vector<128x32xf32>,
    return
  }
  func.func @transform_0(%arg0: i32) -> (i32, i32) {
    %c0_i32 = arith.constant 0 : i32
    %c0_i32_0 = arith.constant 0 : i32
    %c0_i32_1 = arith.constant 0 : i32
    return %c0_i32, %c0_i32_0 : i32, i32
  }
  func.func @transform_1(%arg0: i32) -> (i32, i32) {
    %c0_i32 = arith.constant 0 : i32
    %c0_i32_0 = arith.constant 0 : i32
    %c0_i32_1 = arith.constant 0 : i32
    return %c0_i32, %c0_i32_0 : i32, i32
  }
  func.func @transform_2(%arg0: i32) -> (i32, i32) {
    %c0_i32 = arith.constant 0 : i32
    %c0_i32_0 = arith.constant 0 : i32
    %c0_i32_1 = arith.constant 0 : i32
    return %c0_i32, %c0_i32_0 : i32, i32
  }
  func.func @transform_3(%arg0: i32) -> (i32, i32) {
    %c0_i32 = arith.constant 0 : i32
    %c0_i32_0 = arith.constant 0 : i32
    %c0_i32_1 = arith.constant 0 : i32
    return %c0_i32, %c0_i32_0 : i32, i32
  }
}

module attributes {stable_mosaic.version = 11 : i64} {
  func.func @_linear_kernel(%arg0: i32, %arg1: memref<128x96xf32, #tpu.memory_space<vmem>>, %arg2: memref<96x33xf32, #tpu.memory_space<vmem>>, %arg3: memref<1x33xf32, #tpu.memory_space<vmem>>, %arg4: memref<128x33xf32, #tpu.memory_space<vmem>>) attributes {dimension_semantics = [#tpu.dimension_semantics<arbitrary>], iteration_bounds = array<i64: 1>, scalar_prefetch = 0 : i64, scratch_operands = 0 : i64, tpu.core_type = #tpu.core_type<tc>, window_params = [{pipeline_mode = #tpu.pipeline_mode<synchronous>, transform_indices = @transform_0, window_bounds = array<i64: 128, 96>}, {pipeline_mode = #tpu.pipeline_mode<synchronous>, transform_indices = @transform_1, window_bounds = array<i64: 96, 33>}, {pipeline_mode = #tpu.pipeline_mode<synchronous>, transform_indices = @transform_2, window_bounds = array<i64: 1, 33>}, {pipeline_mode = #tpu.pipeline_mode<synchronous>, transform_indices = @transform_3, window_bounds = array<i64: 128, 33>}]} {
    %c0 = arith.constant 0 : index
    %c0_0 = arith.constant 0 : index
    %0 = vector.load %arg1[%c0, %c0_0] : memref<128x96xf32, #tpu.memory_space<vmem>>, vector<128x96xf32>
    %c0_1 = arith.constant 0 : index
    %c0_2 = arith.constant 0 : index
    %1 = vector.load %arg2[%c0_1, %c0_2] : memref<96x33xf32, #tpu.memory_space<vmem>>, vector<96x33xf32>
    %cst = arith.constant dense<0.000000e+00> : vector<128x33xf32>
    %2 = tpu.matmul %0, %1, %cst {dimension_numbers = #tpu.dot_dimension_numbers<[1], [0], [0], [1], [0, 0, 1, 1], [], []>} : vector<128x96xf32>, vector<96x33xf32>, vector<128x33xf32> -> vector<128x33xf32>
    %c0_3 = arith.constant 0 : index
    %c0_4 = arith.constant 0 : index
    %3 = vector.load %arg3[%c0_3, %c0_4] : memref<1x33xf32, #tpu.memory_space<vmem>>, vector<1x33xf32>
    %4 = vector.broadcast %3 : vector<1x33xf32> to vector<128x33xf32>
    %5 = arith.addf %2, %4 : vector<128x33xf32>
    %c0_5 = arith.constant 0 : index
    %c0_6 = arith.constant 0 : index
    %6 = vector.load %arg4[%c0_5, %c0_6] : memref<128x33xf32, #tpu.memory_space<vmem>>, vector<128x33xf32>
    tpu.vector_store %arg4[%c0_5, %c0_6], %5 {strides = array<i32>} : memref<128x33xf32, #tpu.memory_space<vmem>>, vector<128x33xf32>,
    return
  }
  func.func @transform_0(%arg0: i32) -> (i32, i32) {
    %c0_i32 = arith.constant 0 : i32
    %c0_i32_0 = arith.constant 0 : i32
    %c0_i32_1 = arith.constant 0 : i32
    return %c0_i32, %c0_i32_0 : i32, i32
  }
  func.func @transform_1(%arg0: i32) -> (i32, i32) {
    %c0_i32 = arith.constant 0 : i32
    %c0_i32_0 = arith.constant 0 : i32
    %c0_i32_1 = arith.constant 0 : i32
    return %c0_i32, %c0_i32_0 : i32, i32
  }
  func.func @transform_2(%arg0: i32) -> (i32, i32) {
    %c0_i32 = arith.constant 0 : i32
    %c0_i32_0 = arith.constant 0 : i32
    %c0_i32_1 = arith.constant 0 : i32
    return %c0_i32, %c0_i32_0 : i32, i32
  }
  func.func @transform_3(%arg0: i32) -> (i32, i32) {
    %c0_i32 = arith.constant 0 : i32
    %c0_i32_0 = arith.constant 0 : i32
    %c0_i32_1 = arith.constant 0 : i32
    return %c0_i32, %c0_i32_0 : i32, i32
  }
}

module attributes {stable_mosaic.version = 11 : i64} {
  func.func @_linear_kernel(%arg0: i32, %arg1: memref<128x96xf32, #tpu.memory_space<vmem>>, %arg2: memref<96x4xf32, #tpu.memory_space<vmem>>, %arg3: memref<1x4xf32, #tpu.memory_space<vmem>>, %arg4: memref<128x4xf32, #tpu.memory_space<vmem>>) attributes {dimension_semantics = [#tpu.dimension_semantics<arbitrary>], iteration_bounds = array<i64: 1>, scalar_prefetch = 0 : i64, scratch_operands = 0 : i64, tpu.core_type = #tpu.core_type<tc>, window_params = [{pipeline_mode = #tpu.pipeline_mode<synchronous>, transform_indices = @transform_0, window_bounds = array<i64: 128, 96>}, {pipeline_mode = #tpu.pipeline_mode<synchronous>, transform_indices = @transform_1, window_bounds = array<i64: 96, 4>}, {pipeline_mode = #tpu.pipeline_mode<synchronous>, transform_indices = @transform_2, window_bounds = array<i64: 1, 4>}, {pipeline_mode = #tpu.pipeline_mode<synchronous>, transform_indices = @transform_3, window_bounds = array<i64: 128, 4>}]} {
    %c0 = arith.constant 0 : index
    %c0_0 = arith.constant 0 : index
    %0 = vector.load %arg1[%c0, %c0_0] : memref<128x96xf32, #tpu.memory_space<vmem>>, vector<128x96xf32>
    %c0_1 = arith.constant 0 : index
    %c0_2 = arith.constant 0 : index
    %1 = vector.load %arg2[%c0_1, %c0_2] : memref<96x4xf32, #tpu.memory_space<vmem>>, vector<96x4xf32>
    %cst = arith.constant dense<0.000000e+00> : vector<128x4xf32>
    %2 = tpu.matmul %0, %1, %cst {dimension_numbers = #tpu.dot_dimension_numbers<[1], [0], [0], [1], [0, 0, 1, 1], [], []>} : vector<128x96xf32>, vector<96x4xf32>, vector<128x4xf32> -> vector<128x4xf32>
    %c0_3 = arith.constant 0 : index
    %c0_4 = arith.constant 0 : index
    %3 = vector.load %arg3[%c0_3, %c0_4] : memref<1x4xf32, #tpu.memory_space<vmem>>, vector<1x4xf32>
    %4 = vector.broadcast %3 : vector<1x4xf32> to vector<128x4xf32>
    %5 = arith.addf %2, %4 : vector<128x4xf32>
    %c0_5 = arith.constant 0 : index
    %c0_6 = arith.constant 0 : index
    %6 = vector.load %arg4[%c0_5, %c0_6] : memref<128x4xf32, #tpu.memory_space<vmem>>, vector<128x4xf32>
    tpu.vector_store %arg4[%c0_5, %c0_6], %5 {strides = array<i32>} : memref<128x4xf32, #tpu.memory_space<vmem>>, vector<128x4xf32>,
    return
  }
  func.func @transform_0(%arg0: i32) -> (i32, i32) {
    %c0_i32 = arith.constant 0 : i32
    %c0_i32_0 = arith.constant 0 : i32
    %c0_i32_1 = arith.constant 0 : i32
    return %c0_i32, %c0_i32_0 : i32, i32
  }
  func.func @transform_1(%arg0: i32) -> (i32, i32) {
    %c0_i32 = arith.constant 0 : i32
    %c0_i32_0 = arith.constant 0 : i32
    %c0_i32_1 = arith.constant 0 : i32
    return %c0_i32, %c0_i32_0 : i32, i32
  }
  func.func @transform_2(%arg0: i32) -> (i32, i32) {
    %c0_i32 = arith.constant 0 : i32
    %c0_i32_0 = arith.constant 0 : i32
    %c0_i32_1 = arith.constant 0 : i32
    return %c0_i32, %c0_i32_0 : i32, i32
  }
  func.func @transform_3(%arg0: i32) -> (i32, i32) {
    %c0_i32 = arith.constant 0 : i32
    %c0_i32_0 = arith.constant 0 : i32
    %c0_i32_1 = arith.constant 0 : i32
    return %c0_i32, %c0_i32_0 : i32, i32
  }
}

module attributes {stable_mosaic.version = 11 : i64} {
  func.func @_unit_norm_kernel(%arg0: i32, %arg1: memref<8x512xf32, #tpu.memory_space<vmem>>, %arg2: memref<8x512xf32, #tpu.memory_space<vmem>>) attributes {dimension_semantics = [#tpu.dimension_semantics<parallel>], iteration_bounds = array<i64: 1>, scalar_prefetch = 0 : i64, scratch_operands = 0 : i64, tpu.core_type = #tpu.core_type<tc>, window_params = [{transform_indices = @transform_0, window_bounds = array<i64: 8, 512>}, {transform_indices = @transform_1, window_bounds = array<i64: 8, 512>}]} {
    %c0 = arith.constant 0 : index
    %c0_0 = arith.constant 0 : index
    %0 = vector.load %arg1[%c0, %c0_0] : memref<8x512xf32, #tpu.memory_space<vmem>>, vector<8x512xf32>
    %1 = arith.mulf %0, %0 : vector<8x512xf32>
    %cst = arith.constant dense<0.000000e+00> : vector<8xf32>
    %2 = vector.multi_reduction <add>, %1, %cst [1] : vector<8x512xf32> to vector<8xf32>
    %3 = vector.shape_cast %2 : vector<8xf32> to vector<8x1xf32>
    %4 = math.sqrt %3 : vector<8x1xf32>
    %cst_1 = arith.constant 9.99999993E-9 : f32
    %5 = vector.broadcast %cst_1 : f32 to vector<8x1xf32>
    %6 = arith.addf %4, %5 : vector<8x1xf32>
    %7 = vector.broadcast %6 : vector<8x1xf32> to vector<8x512xf32>
    %8 = arith.divf %0, %7 : vector<8x512xf32>
    %c0_2 = arith.constant 0 : index
    %c0_3 = arith.constant 0 : index
    %9 = vector.load %arg2[%c0_2, %c0_3] : memref<8x512xf32, #tpu.memory_space<vmem>>, vector<8x512xf32>
    tpu.vector_store %arg2[%c0_2, %c0_3], %8 {strides = array<i32>} : memref<8x512xf32, #tpu.memory_space<vmem>>, vector<8x512xf32>,
    return
  }
  func.func @transform_0(%arg0: i32) -> (i32, i32) {
    %c0_i32 = arith.constant 0 : i32
    %c0_i32_0 = arith.constant 0 : i32
    return %arg0, %c0_i32 : i32, i32
  }
  func.func @transform_1(%arg0: i32) -> (i32, i32) {
    %c0_i32 = arith.constant 0 : i32
    %c0_i32_0 = arith.constant 0 : i32
    return %arg0, %c0_i32 : i32, i32
  }
}

module attributes {stable_mosaic.version = 11 : i64} {
  func.func @_sel_res_kernel(%arg0: i32, %arg1: memref<8x64xf32, #tpu.memory_space<vmem>>, %arg2: memref<64x1024xf32, #tpu.memory_space<vmem>>, %arg3: memref<8x1024xf32, #tpu.memory_space<vmem>>, %arg4: memref<8x1024xf32, #tpu.memory_space<vmem>>) attributes {dimension_semantics = [#tpu.dimension_semantics<parallel>], iteration_bounds = array<i64: 4>, scalar_prefetch = 0 : i64, scratch_operands = 0 : i64, tpu.core_type = #tpu.core_type<tc>, window_params = [{transform_indices = @transform_0, window_bounds = array<i64: 8, 64>}, {pipeline_mode = #tpu.pipeline_mode<synchronous>, transform_indices = @transform_1, window_bounds = array<i64: 64, 1024>}, {transform_indices = @transform_2, window_bounds = array<i64: 8, 1024>}, {transform_indices = @transform_3, window_bounds = array<i64: 8, 1024>}]} {
    %c0 = arith.constant 0 : index
    %c0_0 = arith.constant 0 : index
    %0 = vector.load %arg1[%c0, %c0_0] : memref<8x64xf32, #tpu.memory_space<vmem>>, vector<8x64xf32>
    %cst = arith.constant 0.000000e+00 : f32
    %1 = vector.broadcast %cst : f32 to vector<8x64xf32>
    %2 = arith.maximumf %0, %1 : vector<8x64xf32>
    %c0_1 = arith.constant 0 : index
    %c0_2 = arith.constant 0 : index
    %3 = vector.load %arg2[%c0_1, %c0_2] : memref<64x1024xf32, #tpu.memory_space<vmem>>, vector<64x1024xf32>
    %cst_3 = arith.constant dense<0.000000e+00> : vector<8x1024xf32>
    %4 = tpu.matmul %2, %3, %cst_3 {dimension_numbers = #tpu.dot_dimension_numbers<[1], [0], [0], [1], [0, 0, 1, 1], [], []>} : vector<8x64xf32>, vector<64x1024xf32>, vector<8x1024xf32> -> vector<8x1024xf32>
    %c0_4 = arith.constant 0 : index
    %c0_5 = arith.constant 0 : index
    %5 = vector.load %arg3[%c0_4, %c0_5] : memref<8x1024xf32, #tpu.memory_space<vmem>>, vector<8x1024xf32>
    %6 = arith.mulf %4, %5 : vector<8x1024xf32>
    %c0_6 = arith.constant 0 : index
    %c0_7 = arith.constant 0 : index
    %7 = vector.load %arg4[%c0_6, %c0_7] : memref<8x1024xf32, #tpu.memory_space<vmem>>, vector<8x1024xf32>
    tpu.vector_store %arg4[%c0_6, %c0_7], %6 {strides = array<i32>} : memref<8x1024xf32, #tpu.memory_space<vmem>>, vector<8x1024xf32>,
    return
  }
  func.func @transform_0(%arg0: i32) -> (i32, i32) {
    %c0_i32 = arith.constant 0 : i32
    %c0_i32_0 = arith.constant 0 : i32
    return %arg0, %c0_i32 : i32, i32
  }
  func.func @transform_1(%arg0: i32) -> (i32, i32) {
    %c0_i32 = arith.constant 0 : i32
    %c0_i32_0 = arith.constant 0 : i32
    %c0_i32_1 = arith.constant 0 : i32
    return %c0_i32, %c0_i32_0 : i32, i32
  }
  func.func @transform_2(%arg0: i32) -> (i32, i32) {
    %c0_i32 = arith.constant 0 : i32
    %c0_i32_0 = arith.constant 0 : i32
    return %arg0, %c0_i32 : i32, i32
  }
  func.func @transform_3(%arg0: i32) -> (i32, i32) {
    %c0_i32 = arith.constant 0 : i32
    %c0_i32_0 = arith.constant 0 : i32
    return %arg0, %c0_i32 : i32, i32
  }
}

module attributes {stable_mosaic.version = 11 : i64} {
  func.func @_mix_sum_kernel(%arg0: i32, %arg1: memref<4x8x256xf32, #tpu.memory_space<vmem>>, %arg2: memref<4x8x256xf32, #tpu.memory_space<vmem>>, %arg3: memref<8x256xf32, #tpu.memory_space<vmem>>) attributes {dimension_semantics = [#tpu.dimension_semantics<parallel>], iteration_bounds = array<i64: 4>, scalar_prefetch = 0 : i64, scratch_operands = 0 : i64, tpu.core_type = #tpu.core_type<tc>, window_params = [{transform_indices = @transform_0, window_bounds = array<i64: 4, 8, 256>}, {transform_indices = @transform_1, window_bounds = array<i64: 4, 8, 256>}, {transform_indices = @transform_2, window_bounds = array<i64: 8, 256>}]} {
    %c0 = arith.constant 0 : index
    %c0_0 = arith.constant 0 : index
    %c0_1 = arith.constant 0 : index
    %0 = vector.load %arg1[%c0, %c0_0, %c0_1] : memref<4x8x256xf32, #tpu.memory_space<vmem>>, vector<4x8x256xf32>
    %c0_2 = arith.constant 0 : index
    %c0_3 = arith.constant 0 : index
    %c0_4 = arith.constant 0 : index
    %1 = vector.load %arg2[%c0_2, %c0_3, %c0_4] : memref<4x8x256xf32, #tpu.memory_space<vmem>>, vector<4x8x256xf32>
    %2 = arith.mulf %0, %1 : vector<4x8x256xf32>
    %cst = arith.constant dense<0.000000e+00> : vector<8x256xf32>
    %3 = vector.multi_reduction <add>, %2, %cst [0] : vector<4x8x256xf32> to vector<8x256xf32>
    %c0_5 = arith.constant 0 : index
    %c0_6 = arith.constant 0 : index
    %4 = vector.load %arg3[%c0_5, %c0_6] : memref<8x256xf32, #tpu.memory_space<vmem>>, vector<8x256xf32>
    tpu.vector_store %arg3[%c0_5, %c0_6], %3 {strides = array<i32>} : memref<8x256xf32, #tpu.memory_space<vmem>>, vector<8x256xf32>,
    return
  }
  func.func @transform_0(%arg0: i32) -> (i32, i32, i32) {
    %c0_i32 = arith.constant 0 : i32
    %c0_i32_0 = arith.constant 0 : i32
    %c0_i32_1 = arith.constant 0 : i32
    return %c0_i32, %c0_i32_0, %arg0 : i32, i32, i32
  }
  func.func @transform_1(%arg0: i32) -> (i32, i32, i32) {
    %c0_i32 = arith.constant 0 : i32
    %c0_i32_0 = arith.constant 0 : i32
    %c0_i32_1 = arith.constant 0 : i32
    return %c0_i32, %c0_i32_0, %arg0 : i32, i32, i32
  }
  func.func @transform_2(%arg0: i32) -> (i32, i32) {
    %c0_i32 = arith.constant 0 : i32
    %c0_i32_0 = arith.constant 0 : i32
    return %c0_i32, %arg0 : i32, i32
  }
}

module attributes {stable_mosaic.version = 11 : i64} {
  func.func @_unit_norm_kernel(%arg0: i32, %arg1: memref<8x128xf32, #tpu.memory_space<vmem>>, %arg2: memref<8x128xf32, #tpu.memory_space<vmem>>) attributes {dimension_semantics = [#tpu.dimension_semantics<parallel>], iteration_bounds = array<i64: 16>, scalar_prefetch = 0 : i64, scratch_operands = 0 : i64, tpu.core_type = #tpu.core_type<tc>, window_params = [{transform_indices = @transform_0, window_bounds = array<i64: 8, 128>}, {transform_indices = @transform_1, window_bounds = array<i64: 8, 128>}]} {
    %c0 = arith.constant 0 : index
    %c0_0 = arith.constant 0 : index
    %0 = vector.load %arg1[%c0, %c0_0] : memref<8x128xf32, #tpu.memory_space<vmem>>, vector<8x128xf32>
    %1 = arith.mulf %0, %0 : vector<8x128xf32>
    %cst = arith.constant dense<0.000000e+00> : vector<8xf32>
    %2 = vector.multi_reduction <add>, %1, %cst [1] : vector<8x128xf32> to vector<8xf32>
    %3 = vector.shape_cast %2 : vector<8xf32> to vector<8x1xf32>
    %4 = math.sqrt %3 : vector<8x1xf32>
    %cst_1 = arith.constant 9.99999993E-9 : f32
    %5 = vector.broadcast %cst_1 : f32 to vector<8x1xf32>
    %6 = arith.addf %4, %5 : vector<8x1xf32>
    %7 = vector.broadcast %6 : vector<8x1xf32> to vector<8x128xf32>
    %8 = arith.divf %0, %7 : vector<8x128xf32>
    %c0_2 = arith.constant 0 : index
    %c0_3 = arith.constant 0 : index
    %9 = vector.load %arg2[%c0_2, %c0_3] : memref<8x128xf32, #tpu.memory_space<vmem>>, vector<8x128xf32>
    tpu.vector_store %arg2[%c0_2, %c0_3], %8 {strides = array<i32>} : memref<8x128xf32, #tpu.memory_space<vmem>>, vector<8x128xf32>,
    return
  }
  func.func @transform_0(%arg0: i32) -> (i32, i32) {
    %c0_i32 = arith.constant 0 : i32
    %c0_i32_0 = arith.constant 0 : i32
    return %arg0, %c0_i32 : i32, i32
  }
  func.func @transform_1(%arg0: i32) -> (i32, i32) {
    %c0_i32 = arith.constant 0 : i32
    %c0_i32_0 = arith.constant 0 : i32
    return %arg0, %c0_i32 : i32, i32
  }
}

module attributes {stable_mosaic.version = 11 : i64} {
  func.func @_unit_norm_kernel(%arg0: i32, %arg1: memref<8x1024xf32, #tpu.memory_space<vmem>>, %arg2: memref<8x1024xf32, #tpu.memory_space<vmem>>) attributes {dimension_semantics = [#tpu.dimension_semantics<parallel>], iteration_bounds = array<i64: 1>, scalar_prefetch = 0 : i64, scratch_operands = 0 : i64, tpu.core_type = #tpu.core_type<tc>, window_params = [{transform_indices = @transform_0, window_bounds = array<i64: 8, 1024>}, {transform_indices = @transform_1, window_bounds = array<i64: 8, 1024>}]} {
    %c0 = arith.constant 0 : index
    %c0_0 = arith.constant 0 : index
    %0 = vector.load %arg1[%c0, %c0_0] : memref<8x1024xf32, #tpu.memory_space<vmem>>, vector<8x1024xf32>
    %1 = arith.mulf %0, %0 : vector<8x1024xf32>
    %cst = arith.constant dense<0.000000e+00> : vector<8xf32>
    %2 = vector.multi_reduction <add>, %1, %cst [1] : vector<8x1024xf32> to vector<8xf32>
    %3 = vector.shape_cast %2 : vector<8xf32> to vector<8x1xf32>
    %4 = math.sqrt %3 : vector<8x1xf32>
    %cst_1 = arith.constant 9.99999993E-9 : f32
    %5 = vector.broadcast %cst_1 : f32 to vector<8x1xf32>
    %6 = arith.addf %4, %5 : vector<8x1xf32>
    %7 = vector.broadcast %6 : vector<8x1xf32> to vector<8x1024xf32>
    %8 = arith.divf %0, %7 : vector<8x1024xf32>
    %c0_2 = arith.constant 0 : index
    %c0_3 = arith.constant 0 : index
    %9 = vector.load %arg2[%c0_2, %c0_3] : memref<8x1024xf32, #tpu.memory_space<vmem>>, vector<8x1024xf32>
    tpu.vector_store %arg2[%c0_2, %c0_3], %8 {strides = array<i32>} : memref<8x1024xf32, #tpu.memory_space<vmem>>, vector<8x1024xf32>,
    return
  }
  func.func @transform_0(%arg0: i32) -> (i32, i32) {
    %c0_i32 = arith.constant 0 : i32
    %c0_i32_0 = arith.constant 0 : i32
    return %arg0, %c0_i32 : i32, i32
  }
  func.func @transform_1(%arg0: i32) -> (i32, i32) {
    %c0_i32 = arith.constant 0 : i32
    %c0_i32_0 = arith.constant 0 : i32
    return %arg0, %c0_i32 : i32, i32
  }
}

</mosaic_0001>

<bundles_post_ra>
// kernel: model_forward.20
= control target key start
LH: loop header
LB: loop body
LE: loop exit
PB: predicated region body
PF: predicated region fallthrough
CT: control target
= control target key end

     0   :  { %9 = vsyncpa [#allocation3], 0  ;;  %s277_s15 = smov [#allocation2]   ;;  %s390_s0 = inlined_call_operand.vmem [shape: f32[32,128], index: 0, kind: input, shape index: {}]   ;;  %s391_s1 = inlined_call_operand.vmem [shape: f32[32,64], index: 1, kind: input, shape index: {}]   ;;  %s392_s2 = inlined_call_operand.vmem [shape: f32[128,64], index: 2, kind: input, shape index: {}]   ;;  %s393_s3 = inlined_call_operand.hbm [shape: f32[1,64], index: 3, kind: input, shape index: {}]   ;;  %s394_s4 = inlined_call_operand.vmem [shape: f32[32,64], index: 4, kind: output, shape index: {}]  }
   0x1   :  { %s22_s16 = sshll.u32 %s277_s15, 4  ;;  %s23_s16 = int_to_ptr.vmem [resolvable:$true] %s22_s16 }
   0x2   :  { %s263_s17 = scalar_lea.vmem %s23_s16, 16  ;;  %s267_s18 = scalar_lea.vmem %s23_s16, 32 }
   0x3   :  { %p264_p0 = scmp.ne.s32.totalorder %s23_s16, %s263_s17  ;;  %p268_p1 = scmp.lt.s32.totalorder %s23_s16, %s23_s16 }
   0x4   :  { %p269_p2 = scmp.lt.s32.totalorder %s267_s18, %s263_s17 }
   0x6   :  { %p270_p3 = por %p269_p2, %p268_p1 }
   0x8   :  { %p271_p4 = pnand %p270_p3, %p264_p0 }
   0xa   :  { %274 = shalt.err (!%p271_p4)
}
   0xb   :  { %25 = dma.hbm_to_vmem [thread:$0]  %s393_s3, 16, %s23_s16, [#allocation3]  }
   0xc   :  { %275 = dma.done.wait [#allocation3], 16  }
   0xd   :  { %276 = vsyncadd [#allocation3], 4294967280  ;;  %v48_v0 = vld [vmem:[%s392_s2 + $0x78] sm:$0xff]  ;;  %v47_v1 = vld [vmem:[%s392_s2 + $0x70] sm:$0xff]  ;;  %vm153_vm0 = vcmask 523264  }
   0xe   :  { %184 = vmatprep.subr.mxu0 %v48_v0  ;;  %222 = vmatprep.subr.mxu1 %v48_v0  ;;  %v46_v2 = vld [vmem:[%s392_s2 + $0x68] sm:$0xff]  ;;  %v45_v3 = vld [vmem:[%s392_s2 + $0x60] sm:$0xff]  ;;  %v44_v4 = vld [vmem:[%s392_s2 + $0x58] sm:$0xff] }
   0xf   :  { %185 = vmatpush3.msra.mxu0 %v48_v0  ;;  %238 = vmatpush3.msra.mxu1 %v48_v0  ;;  %v43_v5 = vld [vmem:[%s392_s2 + $0x50] sm:$0xff]  ;;  %v42_v6 = vld [vmem:[%s392_s2 + $0x48] sm:$0xff]  ;;  %v41_v7 = vld [vmem:[%s392_s2 + $0x40] sm:$0xff] }
  0x10   :  { %186 = vmatprep.subr.mxu0 %v47_v1  ;;  %223 = vmatprep.subr.mxu1 %v47_v1  ;;  %v40_v8 = vld [vmem:[%s392_s2 + $0x38] sm:$0xff]  ;;  %v39_v9 = vld [vmem:[%s392_s2 + $0x30] sm:$0xff]  ;;  %v38_v10 = vld [vmem:[%s392_s2 + $0x28] sm:$0xff] }
  0x11   :  { %187 = vmatpush3.msra.mxu0 %v47_v1  ;;  %239 = vmatpush3.msra.mxu1 %v47_v1  ;;  %v37_v11 = vld [vmem:[%s392_s2 + $0x20] sm:$0xff]  ;;  %v36_v12 = vld [vmem:[%s392_s2 + $0x18] sm:$0xff]  ;;  %v35_v13 = vld [vmem:[%s392_s2 + $0x10] sm:$0xff] }
  0x12   :  { %188 = vmatprep.subr.mxu0 %v46_v2  ;;  %224 = vmatprep.subr.mxu1 %v46_v2  ;;  %v34_v14 = vld [vmem:[%s392_s2 + $0x8] sm:$0xff]  ;;  %v33_v15 = vld [vmem:[%s392_s2] sm:$0xff]  ;;  %v31_v17 = vld [vmem:[%s390_s0 + $0x10] sm:$0xff] }
  0x13   :  { %189 = vmatpush3.msra.mxu0 %v46_v2  ;;  %240 = vmatpush3.msra.mxu1 %v46_v2  ;;  %v29_v16 = vld [vmem:[%s390_s0] sm:$0xff]  ;;  %v30_v18 = vld [vmem:[%s390_s0 + $0x8] sm:$0xff]  ;;  %v32_v19 = vld [vmem:[%s390_s0 + $0x18] sm:$0xff] }
  0x14   :  { %190 = vmatprep.subr.mxu0 %v45_v3  ;;  %225 = vmatprep.subr.mxu1 %v45_v3  ;;  %v163_v20 = vld [vmem:[#allocation2] ss:$0 sm:$0xff]  ;;  %v146_v25 = vld [vmem:[%s391_s1 + $0x8] sm:$0xff]  ;;  %v148_v26 = vld [vmem:[%s391_s1 + $0x18] sm:$0xff] }
  0x15   :  { %191 = vmatpush3.msra.mxu0 %v45_v3  ;;  %241 = vmatpush3.msra.mxu1 %v45_v3  ;;  %v145_v33 = vld [vmem:[%s391_s1] sm:$0xff]  ;;  %v147_v34 = vld [vmem:[%s391_s1 + $0x10] sm:$0xff] }
  0x16   :  { %192 = vmatprep.subr.mxu0 %v44_v4  ;;  %226 = vmatprep.subr.mxu1 %v44_v4 }
  0x17   :  { %193 = vmatpush3.msra.mxu0 %v44_v4  ;;  %242 = vmatpush3.msra.mxu1 %v44_v4 }
  0x18   :  { %194 = vmatprep.subr.mxu0 %v43_v5  ;;  %227 = vmatprep.subr.mxu1 %v43_v5 }
  0x19   :  { %195 = vmatpush3.msra.mxu0 %v43_v5  ;;  %243 = vmatpush3.msra.mxu1 %v43_v5 }
  0x1a   :  { %196 = vmatprep.subr.mxu0 %v42_v6  ;;  %228 = vmatprep.subr.mxu1 %v42_v6 }
  0x1b   :  { %197 = vmatpush3.msra.mxu0 %v42_v6  ;;  %244 = vmatpush3.msra.mxu1 %v42_v6 }
  0x1c   :  { %198 = vmatprep.subr.mxu0 %v41_v7  ;;  %229 = vmatprep.subr.mxu1 %v41_v7 }
  0x1d   :  { %199 = vmatpush3.msra.mxu0 %v41_v7  ;;  %245 = vmatpush3.msra.mxu1 %v41_v7 }
  0x1e   :  { %200 = vmatprep.subr.mxu0 %v40_v8  ;;  %230 = vmatprep.subr.mxu1 %v40_v8 }
  0x1f   :  { %201 = vmatpush3.msra.mxu0 %v40_v8  ;;  %246 = vmatpush3.msra.mxu1 %v40_v8 }
  0x20   :  { %202 = vmatprep.subr.mxu0 %v39_v9  ;;  %231 = vmatprep.subr.mxu1 %v39_v9 }
  0x21   :  { %203 = vmatpush3.msra.mxu0 %v39_v9  ;;  %247 = vmatpush3.msra.mxu1 %v39_v9 }
  0x22   :  { %204 = vmatprep.subr.mxu0 %v38_v10  ;;  %232 = vmatprep.subr.mxu1 %v38_v10 }
  0x23   :  { %205 = vmatpush3.msra.mxu0 %v38_v10  ;;  %248 = vmatpush3.msra.mxu1 %v38_v10 }
  0x24   :  { %206 = vmatprep.subr.mxu0 %v37_v11  ;;  %233 = vmatprep.subr.mxu1 %v37_v11 }
  0x25   :  { %207 = vmatpush3.msra.mxu0 %v37_v11  ;;  %249 = vmatpush3.msra.mxu1 %v37_v11 }
  0x26   :  { %208 = vmatprep.subr.mxu0 %v36_v12  ;;  %234 = vmatprep.subr.mxu1 %v36_v12 }
  0x27   :  { %209 = vmatpush3.msra.mxu0 %v36_v12  ;;  %250 = vmatpush3.msra.mxu1 %v36_v12 }
  0x28   :  { %210 = vmatprep.subr.mxu0 %v35_v13  ;;  %235 = vmatprep.subr.mxu1 %v35_v13 }
  0x29   :  { %211 = vmatpush3.msra.mxu0 %v35_v13  ;;  %251 = vmatpush3.msra.mxu1 %v35_v13 }
  0x2a   :  { %212 = vmatprep.subr.mxu0 %v34_v14  ;;  %236 = vmatprep.subr.mxu1 %v34_v14 }
  0x2b   :  { %213 = vmatpush3.msra.mxu0 %v34_v14  ;;  %252 = vmatpush3.msra.mxu1 %v34_v14 }
  0x2c   :  { %214 = vmatprep.subr.mxu0 %v33_v15  ;;  %237 = vmatprep.subr.mxu1 %v33_v15 }
  0x2d   :  { %215 = vmatpush3.msra.mxu0 %v33_v15  ;;  %253 = vmatpush3.msra.mxu1 %v33_v15 }
  0x2e   :  { %216 = vmatprep.mubr.f32.mxu0 %v29_v16  ;;  %219 = vmatprep.mubr.f32.mxu1 %v31_v17 }
  0x2f   :  { %217 = vmatmul.mubr.f32.vlgmr.msra.gmra.mxu0 %v30_v18  ;;  %220 = vmatmul.mubr.f32.vlgmr.msra.gmra.mxu1 %v32_v19 }
  0xef   :  { %v218_v21 = vpop.f32.mrf.mxu0  ;;  %v221_v22 = vpop.f32.mrf.mxu1 }
  0xf0   :  { %v128_v23 = vadd.f32 %v218_v21, %v163_v20  ;;  %v138_v24 = vadd.f32 %v221_v22, %v163_v20 }
  0xf1   :  { %v122_v27 = vpop.f32.mrf.mxu0  ;;  %v132_v28 = vpop.f32.mrf.mxu1 }
  0xf2   :  { %v142_v29 = vmax.f32 %v128_v23, 0.0  ;;  %v144_v30 = vmax.f32 %v138_v24, 0.0  ;;  %v123_v31 = vadd.f32 %v163_v20, %v122_v27  ;;  %v133_v32 = vadd.f32 %v163_v20, %v132_v28 }
  0xf4   :  { %v150_v35 = vadd.f32 %v146_v25, %v142_v29  ;;  %v152_v36 = vadd.f32 %v148_v26, %v144_v30  ;;  %v141_v37 = vmax.f32 %v123_v31, 0.0  ;;  %v143_v38 = vmax.f32 %v133_v32, 0.0 }
  0xf6   :  { %155 = vst.msk [vmem:[%s394_s4 + $0x8] sm:$0xff] %vm153_vm0, %v150_v35  ;;  %157 = vst.msk [vmem:[%s394_s4 + $0x18] sm:$0xff] %vm153_vm0, %v152_v36  ;;  %v149_v39 = vadd.f32 %v145_v33, %v141_v37  ;;  %v151_v40 = vadd.f32 %v147_v34, %v143_v38 }
  0xf8   :  { %154 = vst.msk [vmem:[%s394_s4] sm:$0xff] %vm153_vm0, %v149_v39  ;;  %156 = vst.msk [vmem:[%s394_s4 + $0x10] sm:$0xff] %vm153_vm0, %v151_v40 }
  0xf9   :  { %162 = vsyncpa [#allocation3], 1 }

// kernel: model_forward.30
= control target key start
LH: loop header
LB: loop body
LE: loop exit
PB: predicated region body
PF: predicated region fallthrough
CT: control target
= control target key end

     0   :  { %v688_v0 = vmov 0.0   ;;  %vm689_vm0 = vmmov 0   ;;  %vm68_vm1 = vcmask 261120   ;;  %vm578_vm6 = vcmask 31744   ;;  %s920_s1 = inlined_call_operand.vmem [shape: f32[32,32], index: 1, kind: input, shape index: {}]   ;;  %s921_s0 = inlined_call_operand.vmem [shape: f32[8,32], index: 0, kind: input, shape index: {}]   ;;  %s922_s2 = inlined_call_operand.vmem [shape: f32[1,32], index: 2, kind: input, shape index: {}]   ;;  %s923_s5 = inlined_call_operand.vmem [shape: f32[32,32], index: 5, kind: input, shape index: {}]   ;;  %s924_s3 = inlined_call_operand.vmem [shape: f32[1,32], index: 3, kind: input, shape index: {}]   ;;  %s925_s4 = inlined_call_operand.vmem [shape: f32[1,32], index: 4, kind: input, shape index: {}]   ;;  %s926_s6 = inlined_call_operand.vmem [shape: f32[1,32], index: 6, kind: input, shape index: {}]   ;;  %s927_s9 = inlined_call_operand.vmem [shape: f32[32,32], index: 9, kind: input, shape index: {}]   ;;  %s928_s7 = inlined_call_operand.vmem [shape: f32[1,32], index: 7, kind: input, shape index: {}]   ;;  %s929_s8 = inlined_call_operand.vmem [shape: f32[1,32], index: 8, kind: input, shape index: {}]   ;;  %s930_s10 = inlined_call_operand.vmem [shape: f32[1,32], index: 10, kind: input, shape index: {}]   ;;  %s931_s13 = inlined_call_operand.vmem [shape: f32[32,32], index: 13, kind: input, shape index: {}]   ;;  %s932_s15 = inlined_call_operand.vmem [shape: f32[32,4], index: 15, kind: input, shape index: {}]   ;;  %s933_s11 = inlined_call_operand.vmem [shape: f32[1,32], index: 11, kind: input, shape index: {}]   ;;  %s934_s12 = inlined_call_operand.vmem [shape: f32[1,32], index: 12, kind: input, shape index: {}]   ;;  %s935_s14 = inlined_call_operand.vmem [shape: f32[1,32], index: 14, kind: input, shape index: {}]   ;;  %s936_s16 = inlined_call_operand.vmem [shape: f32[1,4], index: 16, kind: input, shape index: {}]   ;;  %s937_s17 = inlined_call_operand.vmem [shape: f32[8,4], index: 17, kind: output, shape index: {}]  }
   0x1   :  { %939 = sst [smem:[#allocation2_spill]] %s920_s1  ;;  %625 = vmatprep.subr.mxu0 %v688_v0  ;;  %633 = vmatprep.mubr.msk.f32.mxu0 %vm689_vm0, %v688_v0  ;;  %v584_v6 = vld [vmem:[%s922_s2] ss:$0 sm:$0xff]  ;;  %v178_v18 = vld [vmem:[%s923_s5 + $0x18] sm:$0xff]  ;;  %v177_v19 = vld [vmem:[%s923_s5 + $0x10] sm:$0xff] }
   0x2   :  { %940 = sst [smem:[#allocation3_spill]] %s921_s0  ;;  %636 = vmatprep.subr.mxu1 %v688_v0  ;;  %644 = vmatprep.mubr.msk.f32.mxu1 %vm689_vm0, %v688_v0  ;;  %v176_v20 = vld [vmem:[%s923_s5 + $0x8] sm:$0xff]  ;;  %v175_v21 = vld [vmem:[%s923_s5] sm:$0xff]  ;;  %v294_v43 = vld [vmem:[%s927_s9 + $0x18] sm:$0xff] }
   0x3   :  { %s941_s26 = sld [smem:[#allocation2_spill]]  ;;  %637 = vmatpush3.msra.mxu1 %v178_v18  ;;  %v586_v26 = vld [vmem:[%s924_s3] ss:$0 sm:$0xff]  ;;  %v293_v44 = vld [vmem:[%s927_s9 + $0x10] sm:$0xff]  ;;  %v292_v45 = vld [vmem:[%s927_s9 + $0x8] sm:$0xff] }
   0x4   :  { %s942_s20 = sld [smem:[#allocation3_spill]]  ;;  %638 = vmatprep.subr.mxu1 %v688_v0  ;;  %v587_v28 = vld [vmem:[%s925_s4] ss:$0 sm:$0xff] }
   0x5   :  { %639 = vmatpush3.msra.mxu1 %v177_v19  ;;  %v588_v31 = vld [vmem:[%s926_s6] ss:$0 sm:$0xff]  ;;  %v496_v19 = vld [vmem:[%s932_s15 + $0x10] sm:$0xff] }
   0x6   :  { %640 = vmatprep.subr.mxu1 %v688_v0  ;;  %v291_v46 = vld [vmem:[%s927_s9] sm:$0xff] }
   0x7   :  { %641 = vmatpush3.msra.mxu1 %v176_v20  ;;  %v590_v51 = vld [vmem:[%s928_s7] ss:$0 sm:$0xff]  ;;  %v495_v20 = vld [vmem:[%s932_s15 + $0x8] sm:$0xff] }
   0x8   :  { %642 = vmatprep.subr.mxu1 %v688_v0  ;;  %v591_v53 = vld [vmem:[%s929_s8] ss:$0 sm:$0xff] }
   0x9   :  { %v60_v1 = vld [vmem:[%s941_s26 + $0x18] sm:$0xff]  ;;  %v59_v2 = vld [vmem:[%s941_s26 + $0x10] sm:$0xff]  ;;  %v58_v3 = vld [vmem:[%s941_s26 + $0x8] sm:$0xff]  ;;  %643 = vmatpush3.msra.mxu1 %v175_v21 }
   0xa   :  { %626 = vmatpush3.msra.mxu0 %v60_v1  ;;  %v57_v4 = vld [vmem:[%s941_s26] sm:$0xff]  ;;  %658 = vmatprep.subr.mxu1 %v688_v0 }
   0xb   :  { %627 = vmatprep.subr.mxu0 %v688_v0  ;;  %v56_v5 = vld [vmem:[%s942_s20] sm:$0xff] }
   0xc   :  { %628 = vmatpush3.msra.mxu0 %v59_v2  ;;  %v592_v56 = vld [vmem:[%s930_s10] ss:$0 sm:$0xff] }
   0xd   :  { %629 = vmatprep.subr.mxu0 %v688_v0  ;;  %v494_v21 = vld [vmem:[%s932_s15] sm:$0xff] }
   0xe   :  { %630 = vmatpush3.msra.mxu0 %v58_v3 }
   0xf   :  { %631 = vmatprep.subr.mxu0 %v688_v0 }
  0x10   :  { %632 = vmatpush3.msra.mxu0 %v57_v4 }
  0x11   :  { %634 = vmatmul.mubr.msk.f32.vlgmr.msra.gmra.mxu0 %vm68_vm1, %v56_v5  ;;  %647 = vmatprep.subr.mxu0 %v688_v0  ;;  %v410_v5 = vld [vmem:[%s931_s13 + $0x18] sm:$0xff] }
  0x12   :  { %655 = vmatprep.mubr.msk.f32.mxu0 %vm689_vm0, %v688_v0  ;;  %648 = vmatpush3.msra.mxu0 %v294_v43 }
  0x13   :  { %649 = vmatprep.subr.mxu0 %v688_v0 }
  0x14   :  { %650 = vmatpush3.msra.mxu0 %v293_v44 }
  0x15   :  { %651 = vmatprep.subr.mxu0 %v688_v0 }
  0x16   :  { %652 = vmatpush3.msra.mxu0 %v292_v45 }
  0x17   :  { %653 = vmatprep.subr.mxu0 %v688_v0 }
  0x18   :  { %654 = vmatpush3.msra.mxu0 %v291_v46 }
  0x19   :  { %669 = vmatprep.subr.mxu0 %v688_v0 }
  0xd1   :  { %v138_v7 = vpop.f32.mrf.mxu0 }
  0xd2   :  { %v139_v8 = vadd.f32 %v584_v6, %v138_v7  ;;  %v409_v6 = vld [vmem:[%s931_s13 + $0x10] sm:$0xff]  ;;  %v408_v7 = vld [vmem:[%s931_s13 + $0x8] sm:$0xff] }
  0xd3   :  { %v635_v9 = vpop.f32.mrf.mxu0 }
  0xd4   :  { %v143_v10 = vmul.f32 0.2, %v139_v8  ;;  %vm142_vm2 = vcmp.gt.f32.partialorder %v139_v8, 0.0  ;;  %v497_v9 = vld [vmem:[%s932_s15 + $0x18] sm:$0xff] }
  0xd6   :  { %v144_v11 = vsel %vm142_vm2, %v139_v8, %v143_v10  ;;  %v407_v8 = vld [vmem:[%s931_s13] sm:$0xff] }
  0xd7   :  { %v145_v12 = vsel %vm68_vm1, %v144_v11, 0.0 }
  0xd8   :  { %146 = vadd.xlane.f32.xlu0 %v145_v12 }
 0x161   :  { %v147_v13 = vpop.xlane.xlu0 %146 }
 0x162   :  { %v149_v14 = vmul.f32 0.03125, %v147_v13 }
 0x164   :  { %v150_v15 = vsub.f32 %v144_v11, %v149_v14  ;;  %v594_v14 = vld [vmem:[%s933_s11] ss:$0 sm:$0xff] }
 0x166   :  { %v151_v16 = vmul.f32 %v150_v15, %v150_v15 }
 0x168   :  { %v152_v17 = vsel %vm68_vm1, %v151_v16, 0.0  ;;  %v595_v16 = vld [vmem:[%s934_s12] ss:$0 sm:$0xff] }
 0x169   :  { %153 = vadd.xlane.f32.xlu0 %v152_v17 }
 0x1f2   :  { %v154_v22 = vpop.xlane.xlu0 %153 }
 0x1f3   :  { %v155_v23 = vmul.f32 0.03125, %v154_v22  ;;  %v596_v22 = vld [vmem:[%s935_s14] ss:$0 sm:$0xff] }
 0x1f5   :  { %v156_v24 = vadd.f32 1e-05, %v155_v23 }
 0x1f7   :  { %682 = vrsqrt.f32 %v156_v24 }
 0x204   :  { %v683_v25 = vpop.eup %682 }
 0x205   :  { %v158_v27 = vmul.f32 %v683_v25, %v150_v15 }
 0x207   :  { %v166_v29 = vmul.f32 %v586_v26, %v158_v27 }
 0x209   :  { %v174_v30 = vadd.f32 %v587_v28, %v166_v29 }
 0x20b   :  { %645 = vmatmul.mubr.msk.f32.vlgmr.msra.gmra.mxu1 %vm68_vm1, %v174_v30 }
 0x20c   :  { %666 = vmatprep.mubr.msk.f32.mxu1 %vm689_vm0, %v688_v0  ;;  %659 = vmatpush3.msra.mxu1 %v410_v5 }
 0x20d   :  { %660 = vmatprep.subr.mxu1 %v688_v0 }
 0x20e   :  { %661 = vmatpush3.msra.mxu1 %v409_v6 }
 0x20f   :  { %662 = vmatprep.subr.mxu1 %v688_v0 }
 0x210   :  { %663 = vmatpush3.msra.mxu1 %v408_v7 }
 0x211   :  { %664 = vmatprep.subr.mxu1 %v688_v0 }
 0x212   :  { %665 = vmatpush3.msra.mxu1 %v407_v8 }
 0x2cb   :  { %v255_v32 = vpop.f32.mrf.mxu1 }
 0x2cc   :  { %v256_v33 = vadd.f32 %v588_v31, %v255_v32 }
 0x2cd   :  { %v646_v34 = vpop.f32.mrf.mxu1 }
 0x2ce   :  { %v260_v35 = vmul.f32 0.2, %v256_v33  ;;  %vm259_vm3 = vcmp.gt.f32.partialorder %v256_v33, 0.0 }
 0x2d0   :  { %v261_v36 = vsel %vm259_vm3, %v256_v33, %v260_v35 }
 0x2d1   :  { %v262_v37 = vsel %vm68_vm1, %v261_v36, 0.0 }
 0x2d2   :  { %263 = vadd.xlane.f32.xlu1 %v262_v37 }
 0x35b   :  { %v264_v38 = vpop.xlane.xlu1 %263 }
 0x35c   :  { %v265_v39 = vmul.f32 0.03125, %v264_v38 }
 0x35e   :  { %v266_v40 = vsub.f32 %v261_v36, %v265_v39 }
 0x360   :  { %v267_v41 = vmul.f32 %v266_v40, %v266_v40 }
 0x362   :  { %v268_v42 = vsel %vm68_vm1, %v267_v41, 0.0 }
 0x363   :  { %269 = vadd.xlane.f32.xlu1 %v268_v42 }
 0x3ec   :  { %v270_v47 = vpop.xlane.xlu1 %269 }
 0x3ed   :  { %v271_v48 = vmul.f32 0.03125, %v270_v47 }
 0x3ef   :  { %v272_v49 = vadd.f32 1e-05, %v271_v48 }
 0x3f1   :  { %684 = vrsqrt.f32 %v272_v49 }
 0x3fe   :  { %v685_v50 = vpop.eup %684 }
 0x3ff   :  { %v274_v52 = vmul.f32 %v685_v50, %v266_v40 }
 0x401   :  { %v282_v54 = vmul.f32 %v590_v51, %v274_v52 }
 0x403   :  { %v290_v55 = vadd.f32 %v591_v53, %v282_v54 }
 0x405   :  { %656 = vmatmul.mubr.msk.f32.vlgmr.msra.gmra.mxu0 %vm68_vm1, %v290_v55 }
 0x406   :  { %677 = vmatprep.mubr.msk.f32.mxu0 %vm689_vm0, %v688_v0  ;;  %670 = vmatpush3.msra.mxu0 %v497_v9 }
 0x407   :  { %671 = vmatprep.subr.mxu0 %v688_v0 }
 0x408   :  { %672 = vmatpush3.msra.mxu0 %v496_v19 }
 0x409   :  { %673 = vmatprep.subr.mxu0 %v688_v0 }
 0x40a   :  { %674 = vmatpush3.msra.mxu0 %v495_v20 }
 0x40b   :  { %675 = vmatprep.subr.mxu0 %v688_v0  ;;  %v598_v0 = vld [vmem:[%s936_s16] ss:$0 sm:$0xff] }
 0x40c   :  { %676 = vmatpush3.msra.mxu0 %v494_v21 }
 0x4c5   :  { %v371_v57 = vpop.f32.mrf.mxu0 }
 0x4c6   :  { %v372_v58 = vadd.f32 %v592_v56, %v371_v57 }
 0x4c7   :  { %v657_v59 = vpop.f32.mrf.mxu0 }
 0x4c8   :  { %v376_v60 = vmul.f32 0.2, %v372_v58  ;;  %vm375_vm4 = vcmp.gt.f32.partialorder %v372_v58, 0.0 }
 0x4ca   :  { %v377_v61 = vsel %vm375_vm4, %v372_v58, %v376_v60 }
 0x4cb   :  { %v378_v62 = vsel %vm68_vm1, %v377_v61, 0.0 }
 0x4cc   :  { %379 = vadd.xlane.f32.xlu0 %v378_v62 }
 0x555   :  { %v380_v63 = vpop.xlane.xlu0 %379 }
 0x556   :  { %v381_v1 = vmul.f32 0.03125, %v380_v63 }
 0x558   :  { %v382_v2 = vsub.f32 %v377_v61, %v381_v1 }
 0x55a   :  { %v383_v3 = vmul.f32 %v382_v2, %v382_v2 }
 0x55c   :  { %v384_v4 = vsel %vm68_vm1, %v383_v3, 0.0 }
 0x55d   :  { %385 = vadd.xlane.f32.xlu1 %v384_v4 }
 0x5e6   :  { %v386_v10 = vpop.xlane.xlu1 %385 }
 0x5e7   :  { %v387_v11 = vmul.f32 0.03125, %v386_v10 }
 0x5e9   :  { %v388_v12 = vadd.f32 1e-05, %v387_v11 }
 0x5eb   :  { %686 = vrsqrt.f32 %v388_v12 }
 0x5f8   :  { %v687_v13 = vpop.eup %686 }
 0x5f9   :  { %v390_v15 = vmul.f32 %v687_v13, %v382_v2 }
 0x5fb   :  { %v398_v17 = vmul.f32 %v594_v14, %v390_v15 }
 0x5fd   :  { %v406_v18 = vadd.f32 %v595_v16, %v398_v17 }
 0x5ff   :  { %667 = vmatmul.mubr.msk.f32.vlgmr.msra.gmra.mxu1 %vm68_vm1, %v406_v18 }
 0x6bf   :  { %v487_v23 = vpop.f32.mrf.mxu1 }
 0x6c0   :  { %v488_v24 = vadd.f32 %v596_v22, %v487_v23 }
 0x6c1   :  { %v668_v25 = vpop.f32.mrf.mxu1 }
 0x6c2   :  { %vm491_vm5 = vcmp.gt.f32.partialorder %v488_v24, 0.0  ;;  %v492_v26 = vmul.f32 0.2, %v488_v24 }
 0x6c4   :  { %v493_v27 = vsel %vm491_vm5, %v488_v24, %v492_v26 }
 0x6c5   :  { %678 = vmatmul.mubr.msk.f32.vlgmr.msra.gmra.mxu0 %vm68_vm1, %v493_v27 }
 0x785   :  { %v574_v28 = vpop.f32.mrf.mxu0 }
 0x786   :  { %v575_v29 = vadd.f32 %v598_v0, %v574_v28 }
 0x787   :  { %v679_v30 = vpop.f32.mrf.mxu0 }
 0x788   :  { %579 = vst.msk [vmem:[%s937_s17] sm:$0xff] %vm578_vm6, %v575_v29 }

// kernel: model_forward.35
= control target key start
LH: loop header
LB: loop body
LE: loop exit
PB: predicated region body
PF: predicated region fallthrough
CT: control target
= control target key end

     0   :  { %v118_v3 = vmov 0.0   ;;  %vm35_vm0 = vcmask 261120   ;;  %v25_v10 = vlaneseq  ;;  %s175_s1 = inlined_call_operand.vmem [shape: f32[32,256], index: 1, kind: input, shape index: {}]   ;;  %s176_s0 = inlined_call_operand.vmem [shape: f32[8,32], index: 0, kind: input, shape index: {}]   ;;  %s177_s2 = inlined_call_operand.vmem [shape: f32[1,256], index: 2, kind: input, shape index: {}]   ;;  %s178_s3 = inlined_call_operand.vmem [shape: f32[8,256], index: 3, kind: output, shape index: {}]  }
   0x1   :  { %v22_v0 = vld [vmem:[%s175_s1 + $0x38] sm:$0xff]  ;;  %v21_v1 = vld [vmem:[%s175_s1 + $0x30] sm:$0xff]  ;;  %v20_v2 = vld [vmem:[%s175_s1 + $0x28] sm:$0xff]  ;;  %103 = vmatprep.mubr.f32.mxu0 %v118_v3 }
   0x2   :  { %63 = vmatprep.subr.mxu0 %v22_v0  ;;  %v19_v4 = vld [vmem:[%s175_s1 + $0x20] sm:$0xff]  ;;  %v18_v5 = vld [vmem:[%s175_s1 + $0x18] sm:$0xff]  ;;  %v17_v6 = vld [vmem:[%s175_s1 + $0x10] sm:$0xff]  ;;  %v26_v11 = vshrl.u32 %v25_v10, 7 }
   0x3   :  { %64 = vmatpush1.msra.mxu0 %v21_v1  ;;  %v16_v7 = vld [vmem:[%s175_s1 + $0x8] sm:$0xff]  ;;  %v15_v8 = vld [vmem:[%s175_s1] sm:$0xff] }
   0x4   :  { %65 = vmatprep.subr.mxu0 %v20_v2  ;;  %v14_v9 = vld [vmem:[%s176_s0] sm:$0xff]  ;;  %v27_v12 = vsub.s32 0, %v26_v11  ;;  %v31_v14 = vsub.s32 1, %v26_v11 }
   0x5   :  { %66 = vmatpush1.msra.mxu0 %v19_v4  ;;  %v23_v13 = vld [vmem:[%s177_s2] sm:$0x3] }
   0x6   :  { %67 = vmatprep.subr.mxu0 %v18_v5  ;;  %v28_v15 = vrot.slane %v23_v13, %v27_v12  ;;  %v32_v16 = vrot.slane %v23_v13, %v31_v14 }
   0x7   :  { %68 = vmatpush1.msra.mxu0 %v17_v6 }
   0x8   :  { %69 = vmatprep.subr.mxu0 %v16_v7 }
   0x9   :  { %70 = vmatpush1.msra.mxu0 %v15_v8 }
   0xa   :  { %116 = vmatmul.mubr.msk.f32.vlgmr.msra.gmra.mxu0 %vm35_vm0, %v14_v9 }
  0xca   :  { %v105_v17 = vpop.f32.mrf.mxu0 }
  0xcb   :  { %v106_v18 = vadd.f32 %v105_v17, %v28_v15 }
  0xcc   :  { %v107_v19 = vpop.f32.mrf.mxu0 }
  0xcd   :  { %110 = vst [vmem:[%s178_s3] sm:$0xff] %v106_v18  ;;  %v108_v20 = vadd.f32 %v107_v19, %v32_v16 }
  0xcf   :  { %111 = vst [vmem:[%s178_s3 + $0x8] sm:$0xff] %v108_v20 }

// kernel: model_forward.31
= control target key start
LH: loop header
LB: loop body
LE: loop exit
PB: predicated region body
PF: predicated region fallthrough
CT: control target
= control target key end

     0   :  { %s1064_s0 = inlined_call_operand.vmem [shape: f32[8,32], index: 0, kind: input, shape index: {}]   ;;  %s1065_s1 = inlined_call_operand.vmem [shape: f32[32,32], index: 1, kind: input, shape index: {}]   ;;  %s1066_s2 = inlined_call_operand.vmem [shape: f32[1,32], index: 2, kind: input, shape index: {}]   ;;  %s1067_s3 = inlined_call_operand.vmem [shape: f32[1,32], index: 3, kind: input, shape index: {}]   ;;  %s1068_s4 = inlined_call_operand.vmem [shape: f32[1,32], index: 4, kind: input, shape index: {}]   ;;  %s1069_s5 = inlined_call_operand.vmem [shape: f32[32,32], index: 5, kind: input, shape index: {}]   ;;  %s1070_s6 = inlined_call_operand.vmem [shape: f32[1,32], index: 6, kind: input, shape index: {}]   ;;  %s1071_s7 = inlined_call_operand.vmem [shape: f32[1,32], index: 7, kind: input, shape index: {}]   ;;  %s1072_s8 = inlined_call_operand.vmem [shape: f32[1,32], index: 8, kind: input, shape index: {}]   ;;  %s1073_s9 = inlined_call_operand.vmem [shape: f32[32,32], index: 9, kind: input, shape index: {}]   ;;  %s1074_s10 = inlined_call_operand.vmem [shape: f32[1,32], index: 10, kind: input, shape index: {}]   ;;  %s1075_s11 = inlined_call_operand.hbm [shape: f32[1,32], index: 11, kind: input, shape index: {}]   ;;  %s1076_s12 = inlined_call_operand.hbm [shape: f32[1,32], index: 12, kind: input, shape index: {}]   ;;  %s1077_s13 = inlined_call_operand.vmem [shape: f32[32,32], index: 13, kind: input, shape index: {}]   ;;  %s1078_s14 = inlined_call_operand.hbm [shape: f32[1,32], index: 14, kind: input, shape index: {}]   ;;  %s1079_s15 = inlined_call_operand.vmem [shape: f32[32,64], index: 15, kind: input, shape index: {}]   ;;  %s1080_s16 = inlined_call_operand.hbm [shape: f32[1,64], index: 16, kind: input, shape index: {}]   ;;  %s1081_s17 = inlined_call_operand.vmem [shape: f32[8,64], index: 17, kind: output, shape index: {}]  }
   0x1   :  { %1083 = sst [smem:[#allocation12_spill]] %s1064_s0 }
   0x2   :  { %1084 = sst [smem:[#allocation13_spill]] %s1065_s1 }
   0x3   :  { %22 = vsyncpa [#allocation3], 0 }
   0x4   :  { %23 = vsyncpa [#allocation5], 0 }
   0x5   :  { %24 = vsyncpa [#allocation8], 0  ;;  %s828_s24 = smov [#allocation4]   ;;  %s829_s26 = smov [#allocation2]  }
   0x6   :  { %s63_s25 = sshll.u32 %s828_s24, 4  ;;  %s53_s27 = sshll.u32 %s829_s26, 4  ;;  %s64_s25 = int_to_ptr.vmem [resolvable:$true] %s63_s25  ;;  %s54_s27 = int_to_ptr.vmem [resolvable:$true] %s53_s27 }
   0x7   :  { %s750_s28 = scalar_lea.vmem %s64_s25, 16  ;;  %s754_s29 = scalar_lea.vmem %s64_s25, 32 }
   0x8   :  { %p751_p0 = scmp.ne.s32.totalorder %s64_s25, %s750_s28  ;;  %p755_p1 = scmp.lt.s32.totalorder %s64_s25, %s64_s25 }
   0x9   :  { %p756_p2 = scmp.lt.s32.totalorder %s754_s29, %s750_s28 }
   0xb   :  { %p757_p3 = por %p756_p2, %p755_p1 }
   0xd   :  { %p758_p4 = pnand %p757_p3, %p751_p0 }
   0xf   :  { %761 = shalt.err (!%p758_p4)
}
  0x10   :  { %66 = dma.hbm_to_vmem [thread:$0]  %s1076_s12, 16, %s64_s25, [#allocation5]  }
  0x11   :  { %s770_s18 = scalar_lea.vmem %s54_s27, 16  ;;  %s774_s19 = scalar_lea.vmem %s54_s27, 32 }
  0x12   :  { %p771_p5 = scmp.ne.s32.totalorder %s54_s27, %s770_s18  ;;  %p775_p6 = scmp.lt.s32.totalorder %s54_s27, %s54_s27 }
  0x13   :  { %p776_p7 = scmp.lt.s32.totalorder %s774_s19, %s770_s18 }
  0x15   :  { %p777_p8 = por %p776_p7, %p775_p6 }
  0x17   :  { %p778_p9 = pnand %p777_p8, %p771_p5 }
  0x19   :  { %781 = shalt.err (!%p778_p9)
}
  0x1a   :  { %56 = dma.hbm_to_vmem [thread:$0]  %s1075_s11, 16, %s54_s27, [#allocation3]  }
  0x1b   :  { %s830_s21 = smov [#allocation6]   ;;  %s831_s23 = smov [#allocation7]  }
  0x1c   :  { %s75_s22 = sshll.u32 %s830_s21, 4  ;;  %s87_s24 = sshll.u32 %s831_s23, 4  ;;  %s76_s22 = int_to_ptr.vmem [resolvable:$true] %s75_s22  ;;  %s88_s24 = int_to_ptr.vmem [resolvable:$true] %s87_s24 }
  0x1d   :  { %s790_s26 = scalar_lea.vmem %s76_s22, 16  ;;  %s794_s12 = scalar_lea.vmem %s76_s22, 32 }
  0x1e   :  { %p791_p10 = scmp.ne.s32.totalorder %s76_s22, %s790_s26  ;;  %p795_p11 = scmp.lt.s32.totalorder %s76_s22, %s76_s22 }
  0x1f   :  { %p796_p12 = scmp.lt.s32.totalorder %s794_s12, %s790_s26 }
  0x21   :  { %p797_p13 = por %p796_p12, %p795_p11 }
  0x23   :  { %p798_p0 = pnand %p797_p13, %p791_p10 }
  0x25   :  { %801 = shalt.err (!%p798_p0)
}
  0x26   :  { %78 = dma.hbm_to_vmem [thread:$0]  %s1078_s14, 16, %s76_s22, [#allocation5]  }
  0x27   :  { %s810_s29 = scalar_lea.vmem %s88_s24, 16  ;;  %s814_s11 = scalar_lea.vmem %s88_s24, 32 }
  0x28   :  { %p811_p1 = scmp.ne.s32.totalorder %s88_s24, %s810_s29  ;;  %p815_p2 = scmp.lt.s32.totalorder %s88_s24, %s88_s24 }
  0x29   :  { %p816_p3 = scmp.lt.s32.totalorder %s814_s11, %s810_s29 }
  0x2b   :  { %p817_p4 = por %p816_p3, %p815_p2 }
  0x2d   :  { %p818_p5 = pnand %p817_p4, %p811_p1 }
  0x2f   :  { %821 = shalt.err (!%p818_p5)
}
  0x30   :  { %90 = dma.hbm_to_vmem [thread:$0]  %s1080_s16, 16, %s88_s24, [#allocation8]  }
  0x31   :  { %822 = dma.done.wait [#allocation3], 16  }
  0x32   :  { %823 = vsyncadd [#allocation3], 4294967280 }
  0x33   :  { %824 = dma.done.wait [#allocation5], 32  }
  0x34   :  { %825 = vsyncadd [#allocation5], 4294967264 }
  0x35   :  { %826 = dma.done.wait [#allocation8], 16  }
  0x36   :  { %827 = vsyncadd [#allocation8], 4294967280  ;;  %v832_v0 = vmov 0.0   ;;  %vm833_vm0 = vmmov 0   ;;  %s1085_s30 = sld [smem:[#allocation13_spill]]  ;;  %vm115_vm1 = vcmask 261120  }
  0x37   :  { %675 = vmatprep.subr.mxu0 %v832_v0  ;;  %683 = vmatprep.mubr.msk.f32.mxu0 %vm833_vm0, %v832_v0  ;;  %s1086_s26 = sld [smem:[#allocation12_spill]]  ;;  %v634_v6 = vld [vmem:[%s1066_s2] ss:$0 sm:$0xff]  ;;  %v225_v18 = vld [vmem:[%s1069_s5 + $0x18] sm:$0xff]  ;;  %v224_v19 = vld [vmem:[%s1069_s5 + $0x10] sm:$0xff]  ;;  %vm625_vm6 = vcmask 523264  }
  0x38   :  { %686 = vmatprep.subr.mxu1 %v832_v0  ;;  %694 = vmatprep.mubr.msk.f32.mxu1 %vm833_vm0, %v832_v0  ;;  %v223_v20 = vld [vmem:[%s1069_s5 + $0x8] sm:$0xff]  ;;  %v222_v21 = vld [vmem:[%s1069_s5] sm:$0xff]  ;;  %v341_v43 = vld [vmem:[%s1073_s9 + $0x18] sm:$0xff] }
  0x39   :  { %687 = vmatpush3.msra.mxu1 %v225_v18  ;;  %v636_v26 = vld [vmem:[%s1067_s3] ss:$0 sm:$0xff]  ;;  %v340_v44 = vld [vmem:[%s1073_s9 + $0x10] sm:$0xff]  ;;  %v339_v45 = vld [vmem:[%s1073_s9 + $0x8] sm:$0xff] }
  0x3a   :  { %688 = vmatprep.subr.mxu1 %v832_v0  ;;  %v637_v28 = vld [vmem:[%s1068_s4] ss:$0 sm:$0xff] }
  0x3b   :  { %689 = vmatpush3.msra.mxu1 %v224_v19  ;;  %v638_v31 = vld [vmem:[%s1070_s6] ss:$0 sm:$0xff]  ;;  %v543_v19 = vld [vmem:[%s1079_s15 + $0x10] sm:$0xff] }
  0x3c   :  { %v107_v1 = vld [vmem:[%s1085_s30 + $0x18] sm:$0xff]  ;;  %v106_v2 = vld [vmem:[%s1085_s30 + $0x10] sm:$0xff]  ;;  %v105_v3 = vld [vmem:[%s1085_s30 + $0x8] sm:$0xff]  ;;  %690 = vmatprep.subr.mxu1 %v832_v0 }
  0x3d   :  { %676 = vmatpush3.msra.mxu0 %v107_v1  ;;  %v104_v4 = vld [vmem:[%s1085_s30] sm:$0xff]  ;;  %691 = vmatpush3.msra.mxu1 %v223_v20  ;;  %v542_v20 = vld [vmem:[%s1079_s15 + $0x8] sm:$0xff] }
  0x3e   :  { %677 = vmatprep.subr.mxu0 %v832_v0  ;;  %v103_v5 = vld [vmem:[%s1086_s26] sm:$0xff]  ;;  %692 = vmatprep.subr.mxu1 %v832_v0 }
  0x3f   :  { %678 = vmatpush3.msra.mxu0 %v106_v2  ;;  %693 = vmatpush3.msra.mxu1 %v222_v21  ;;  %v338_v46 = vld [vmem:[%s1073_s9] sm:$0xff] }
  0x40   :  { %679 = vmatprep.subr.mxu0 %v832_v0  ;;  %708 = vmatprep.subr.mxu1 %v832_v0  ;;  %v640_v51 = vld [vmem:[%s1071_s7] ss:$0 sm:$0xff] }
  0x41   :  { %680 = vmatpush3.msra.mxu0 %v105_v3  ;;  %v641_v53 = vld [vmem:[%s1072_s8] ss:$0 sm:$0xff] }
  0x42   :  { %681 = vmatprep.subr.mxu0 %v832_v0  ;;  %v642_v56 = vld [vmem:[%s1074_s10] ss:$0 sm:$0xff] }
  0x43   :  { %682 = vmatpush3.msra.mxu0 %v104_v4  ;;  %v541_v21 = vld [vmem:[%s1079_s15] sm:$0xff] }
  0x44   :  { %684 = vmatmul.mubr.msk.f32.vlgmr.msra.gmra.mxu0 %vm115_vm1, %v103_v5  ;;  %697 = vmatprep.subr.mxu0 %v832_v0  ;;  %v457_v5 = vld [vmem:[%s1077_s13 + $0x18] sm:$0xff] }
  0x45   :  { %705 = vmatprep.mubr.msk.f32.mxu0 %vm833_vm0, %v832_v0  ;;  %698 = vmatpush3.msra.mxu0 %v341_v43 }
  0x46   :  { %699 = vmatprep.subr.mxu0 %v832_v0 }
  0x47   :  { %700 = vmatpush3.msra.mxu0 %v340_v44 }
  0x48   :  { %701 = vmatprep.subr.mxu0 %v832_v0 }
  0x49   :  { %702 = vmatpush3.msra.mxu0 %v339_v45 }
  0x4a   :  { %703 = vmatprep.subr.mxu0 %v832_v0 }
  0x4b   :  { %704 = vmatpush3.msra.mxu0 %v338_v46 }
  0x4c   :  { %719 = vmatprep.subr.mxu0 %v832_v0 }
 0x104   :  { %v185_v7 = vpop.f32.mrf.mxu0 }
 0x105   :  { %v186_v8 = vadd.f32 %v634_v6, %v185_v7  ;;  %v456_v6 = vld [vmem:[%s1077_s13 + $0x10] sm:$0xff]  ;;  %v455_v7 = vld [vmem:[%s1077_s13 + $0x8] sm:$0xff] }
 0x106   :  { %v685_v9 = vpop.f32.mrf.mxu0 }
 0x107   :  { %v190_v10 = vmul.f32 0.2, %v186_v8  ;;  %vm189_vm2 = vcmp.gt.f32.partialorder %v186_v8, 0.0  ;;  %v544_v9 = vld [vmem:[%s1079_s15 + $0x18] sm:$0xff] }
 0x109   :  { %v191_v11 = vsel %vm189_vm2, %v186_v8, %v190_v10  ;;  %v454_v8 = vld [vmem:[%s1077_s13] sm:$0xff] }
 0x10a   :  { %v192_v12 = vsel %vm115_vm1, %v191_v11, 0.0 }
 0x10b   :  { %193 = vadd.xlane.f32.xlu0 %v192_v12 }
 0x194   :  { %v194_v13 = vpop.xlane.xlu0 %193 }
 0x195   :  { %v196_v14 = vmul.f32 0.03125, %v194_v13 }
 0x197   :  { %v197_v15 = vsub.f32 %v191_v11, %v196_v14  ;;  %v644_v14 = vld [vmem:[#allocation2] ss:$0 sm:$0xff] }
 0x199   :  { %v198_v16 = vmul.f32 %v197_v15, %v197_v15 }
 0x19b   :  { %v199_v17 = vsel %vm115_vm1, %v198_v16, 0.0  ;;  %v645_v16 = vld [vmem:[#allocation4] ss:$0 sm:$0xff] }
 0x19c   :  { %200 = vadd.xlane.f32.xlu0 %v199_v17 }
 0x225   :  { %v201_v22 = vpop.xlane.xlu0 %200 }
 0x226   :  { %v202_v23 = vmul.f32 0.03125, %v201_v22  ;;  %v646_v22 = vld [vmem:[#allocation6] ss:$0 sm:$0xff] }
 0x228   :  { %v203_v24 = vadd.f32 1e-05, %v202_v23 }
 0x22a   :  { %736 = vrsqrt.f32 %v203_v24 }
 0x237   :  { %v737_v25 = vpop.eup %736 }
 0x238   :  { %v205_v27 = vmul.f32 %v737_v25, %v197_v15 }
 0x23a   :  { %v213_v29 = vmul.f32 %v636_v26, %v205_v27 }
 0x23c   :  { %v221_v30 = vadd.f32 %v637_v28, %v213_v29  ;;  %v648_v28 = vld [vmem:[#allocation7] ss:$0 sm:$0xff] }
 0x23e   :  { %695 = vmatmul.mubr.msk.f32.vlgmr.msra.gmra.mxu1 %vm115_vm1, %v221_v30 }
 0x23f   :  { %716 = vmatprep.mubr.msk.f32.mxu1 %vm833_vm0, %v832_v0  ;;  %709 = vmatpush3.msra.mxu1 %v457_v5 }
 0x240   :  { %710 = vmatprep.subr.mxu1 %v832_v0 }
 0x241   :  { %711 = vmatpush3.msra.mxu1 %v456_v6 }
 0x242   :  { %712 = vmatprep.subr.mxu1 %v832_v0 }
 0x243   :  { %713 = vmatpush3.msra.mxu1 %v455_v7 }
 0x244   :  { %714 = vmatprep.subr.mxu1 %v832_v0 }
 0x245   :  { %715 = vmatpush3.msra.mxu1 %v454_v8 }
 0x2fe   :  { %v302_v32 = vpop.f32.mrf.mxu1 }
 0x2ff   :  { %v303_v33 = vadd.f32 %v638_v31, %v302_v32 }
 0x300   :  { %v696_v34 = vpop.f32.mrf.mxu1 }
 0x301   :  { %v307_v35 = vmul.f32 0.2, %v303_v33  ;;  %vm306_vm3 = vcmp.gt.f32.partialorder %v303_v33, 0.0 }
 0x303   :  { %v308_v36 = vsel %vm306_vm3, %v303_v33, %v307_v35 }
 0x304   :  { %v309_v37 = vsel %vm115_vm1, %v308_v36, 0.0 }
 0x305   :  { %310 = vadd.xlane.f32.xlu1 %v309_v37 }
 0x38e   :  { %v311_v38 = vpop.xlane.xlu1 %310 }
 0x38f   :  { %v312_v39 = vmul.f32 0.03125, %v311_v38 }
 0x391   :  { %v313_v40 = vsub.f32 %v308_v36, %v312_v39 }
 0x393   :  { %v314_v41 = vmul.f32 %v313_v40, %v313_v40 }
 0x395   :  { %v315_v42 = vsel %vm115_vm1, %v314_v41, 0.0 }
 0x396   :  { %316 = vadd.xlane.f32.xlu1 %v315_v42 }
 0x41f   :  { %v317_v47 = vpop.xlane.xlu1 %316 }
 0x420   :  { %v318_v48 = vmul.f32 0.03125, %v317_v47 }
 0x422   :  { %v319_v49 = vadd.f32 1e-05, %v318_v48 }
 0x424   :  { %738 = vrsqrt.f32 %v319_v49 }
 0x431   :  { %v739_v50 = vpop.eup %738 }
 0x432   :  { %v321_v52 = vmul.f32 %v739_v50, %v313_v40 }
 0x434   :  { %v329_v54 = vmul.f32 %v640_v51, %v321_v52 }
 0x436   :  { %v337_v55 = vadd.f32 %v641_v53, %v329_v54 }
 0x438   :  { %706 = vmatmul.mubr.msk.f32.vlgmr.msra.gmra.mxu0 %vm115_vm1, %v337_v55 }
 0x439   :  { %727 = vmatprep.mubr.msk.f32.mxu0 %vm833_vm0, %v832_v0  ;;  %720 = vmatpush3.msra.mxu0 %v544_v9 }
 0x43a   :  { %721 = vmatprep.subr.mxu0 %v832_v0 }
 0x43b   :  { %722 = vmatpush3.msra.mxu0 %v543_v19 }
 0x43c   :  { %723 = vmatprep.subr.mxu0 %v832_v0 }
 0x43d   :  { %724 = vmatpush3.msra.mxu0 %v542_v20 }
 0x43e   :  { %725 = vmatprep.subr.mxu0 %v832_v0 }
 0x43f   :  { %726 = vmatpush3.msra.mxu0 %v541_v21 }
 0x4f8   :  { %v418_v57 = vpop.f32.mrf.mxu0 }
 0x4f9   :  { %v419_v58 = vadd.f32 %v642_v56, %v418_v57 }
 0x4fa   :  { %v707_v59 = vpop.f32.mrf.mxu0 }
 0x4fb   :  { %v423_v60 = vmul.f32 0.2, %v419_v58  ;;  %vm422_vm4 = vcmp.gt.f32.partialorder %v419_v58, 0.0 }
 0x4fd   :  { %v424_v61 = vsel %vm422_vm4, %v419_v58, %v423_v60 }
 0x4fe   :  { %v425_v62 = vsel %vm115_vm1, %v424_v61, 0.0 }
 0x4ff   :  { %426 = vadd.xlane.f32.xlu0 %v425_v62 }
 0x588   :  { %v427_v63 = vpop.xlane.xlu0 %426 }
 0x589   :  { %v428_v1 = vmul.f32 0.03125, %v427_v63 }
 0x58b   :  { %v429_v2 = vsub.f32 %v424_v61, %v428_v1 }
 0x58d   :  { %v430_v3 = vmul.f32 %v429_v2, %v429_v2 }
 0x58f   :  { %v431_v4 = vsel %vm115_vm1, %v430_v3, 0.0 }
 0x590   :  { %432 = vadd.xlane.f32.xlu1 %v431_v4 }
 0x619   :  { %v433_v10 = vpop.xlane.xlu1 %432 }
 0x61a   :  { %v434_v11 = vmul.f32 0.03125, %v433_v10 }
 0x61c   :  { %v435_v12 = vadd.f32 1e-05, %v434_v11 }
 0x61e   :  { %740 = vrsqrt.f32 %v435_v12 }
 0x62b   :  { %v741_v13 = vpop.eup %740 }
 0x62c   :  { %v437_v15 = vmul.f32 %v741_v13, %v429_v2 }
 0x62e   :  { %v445_v17 = vmul.f32 %v644_v14, %v437_v15 }
 0x630   :  { %v453_v18 = vadd.f32 %v645_v16, %v445_v17 }
 0x632   :  { %717 = vmatmul.mubr.msk.f32.vlgmr.msra.gmra.mxu1 %vm115_vm1, %v453_v18 }
 0x6f2   :  { %v534_v23 = vpop.f32.mrf.mxu1 }
 0x6f3   :  { %v535_v24 = vadd.f32 %v646_v22, %v534_v23 }
 0x6f4   :  { %v718_v25 = vpop.f32.mrf.mxu1 }
 0x6f5   :  { %vm538_vm5 = vcmp.gt.f32.partialorder %v535_v24, 0.0  ;;  %v539_v26 = vmul.f32 0.2, %v535_v24 }
 0x6f7   :  { %v540_v27 = vsel %vm538_vm5, %v535_v24, %v539_v26 }
 0x6f8   :  { %728 = vmatmul.mubr.msk.f32.vlgmr.msra.gmra.mxu0 %vm115_vm1, %v540_v27 }
 0x7b8   :  { %v621_v29 = vpop.f32.mrf.mxu0 }
 0x7b9   :  { %v622_v30 = vadd.f32 %v648_v28, %v621_v29 }
 0x7ba   :  { %v729_v31 = vpop.f32.mrf.mxu0 }
 0x7bb   :  { %626 = vst.msk [vmem:[%s1081_s17] sm:$0xff] %vm625_vm6, %v622_v30 }
 0x7bc   :  { %631 = vsyncpa [#allocation3], 1 }
 0x7bd   :  { %632 = vsyncpa [#allocation5], 1 }
 0x7be   :  { %633 = vsyncpa [#allocation8], 1 }

// kernel: model_forward.36
= control target key start
LH: loop header
LB: loop body
LE: loop exit
PB: predicated region body
PF: predicated region fallthrough
CT: control target
= control target key end

     0   :  { %vm49_vm0 = vcmask 785408   ;;  %vm243_vm1 = vcmask 261120   ;;  %s568_s1 = inlined_call_operand.vmem [shape: f32[96,32], index: 1, kind: input, shape index: {}]   ;;  %s569_s0 = inlined_call_operand.vmem [shape: f32[128,96], index: 0, kind: input, shape index: {}]   ;;  %s570_s2 = inlined_call_operand.vmem [shape: f32[1,32], index: 2, kind: input, shape index: {}]   ;;  %s571_s3 = inlined_call_operand.vmem [shape: f32[128,32], index: 3, kind: output, shape index: {}]  }
   0x1   :  { %v41_v0 = vld [vmem:[%s568_s1 + $0x58] sm:$0xff]  ;;  %v40_v1 = vld [vmem:[%s568_s1 + $0x50] sm:$0xff]  ;;  %v39_v2 = vld [vmem:[%s568_s1 + $0x48] sm:$0xff] }
   0x2   :  { %309 = vmatprep.subr.mxu0 %v41_v0  ;;  %357 = vmatprep.subr.mxu1 %v41_v0  ;;  %v38_v3 = vld [vmem:[%s568_s1 + $0x40] sm:$0xff]  ;;  %v37_v4 = vld [vmem:[%s568_s1 + $0x38] sm:$0xff]  ;;  %v36_v5 = vld [vmem:[%s568_s1 + $0x30] sm:$0xff] }
   0x3   :  { %310 = vmatpush3.msra.mxu0 %v41_v0  ;;  %369 = vmatpush3.msra.mxu1 %v41_v0  ;;  %v35_v6 = vld [vmem:[%s568_s1 + $0x28] sm:$0xff]  ;;  %v34_v7 = vld [vmem:[%s568_s1 + $0x20] sm:$0xff]  ;;  %v33_v8 = vld [vmem:[%s568_s1 + $0x18] sm:$0xff] }
   0x4   :  { %311 = vmatprep.subr.mxu0 %v40_v1  ;;  %358 = vmatprep.subr.mxu1 %v40_v1  ;;  %v32_v9 = vld [vmem:[%s568_s1 + $0x10] sm:$0xff]  ;;  %v31_v10 = vld [vmem:[%s568_s1 + $0x8] sm:$0xff]  ;;  %v30_v11 = vld [vmem:[%s568_s1] sm:$0xff] }
   0x5   :  { %312 = vmatpush3.msra.mxu0 %v40_v1  ;;  %370 = vmatpush3.msra.mxu1 %v40_v1  ;;  %v14_v12 = vld [vmem:[%s569_s0] sm:$0xff]  ;;  %v15_v14 = vld [vmem:[%s569_s0 + $0x8] sm:$0xff]  ;;  %v16_v16 = vld [vmem:[%s569_s0 + $0x10] sm:$0xff] }
   0x6   :  { %313 = vmatprep.subr.mxu0 %v39_v2  ;;  %359 = vmatprep.subr.mxu1 %v39_v2  ;;  %v22_v13 = vld [vmem:[%s569_s0 + $0x40] sm:$0xff]  ;;  %v23_v15 = vld [vmem:[%s569_s0 + $0x48] sm:$0xff]  ;;  %v24_v17 = vld [vmem:[%s569_s0 + $0x50] sm:$0xff] }
   0x7   :  { %314 = vmatpush3.msra.mxu0 %v39_v2  ;;  %371 = vmatpush3.msra.mxu1 %v39_v2  ;;  %v17_v18 = vld [vmem:[%s569_s0 + $0x18] sm:$0xff]  ;;  %v18_v20 = vld [vmem:[%s569_s0 + $0x20] sm:$0xff]  ;;  %v19_v22 = vld [vmem:[%s569_s0 + $0x28] sm:$0xff] }
   0x8   :  { %315 = vmatprep.subr.mxu0 %v38_v3  ;;  %360 = vmatprep.subr.mxu1 %v38_v3  ;;  %v25_v19 = vld [vmem:[%s569_s0 + $0x58] sm:$0xff]  ;;  %v26_v21 = vld [vmem:[%s569_s0 + $0x60] sm:$0xff]  ;;  %v27_v23 = vld [vmem:[%s569_s0 + $0x68] sm:$0xff] }
   0x9   :  { %316 = vmatpush3.msra.mxu0 %v38_v3  ;;  %372 = vmatpush3.msra.mxu1 %v38_v3  ;;  %v20_v24 = vld [vmem:[%s569_s0 + $0x30] sm:$0xff]  ;;  %v21_v26 = vld [vmem:[%s569_s0 + $0x38] sm:$0xff]  ;;  %v264_v28 = vld [vmem:[%s570_s2] ss:$0 sm:$0xff] }
   0xa   :  { %317 = vmatprep.subr.mxu0 %v37_v4  ;;  %361 = vmatprep.subr.mxu1 %v37_v4  ;;  %v28_v25 = vld [vmem:[%s569_s0 + $0x70] sm:$0xff]  ;;  %v29_v27 = vld [vmem:[%s569_s0 + $0x78] sm:$0xff] }
   0xb   :  { %318 = vmatpush3.msra.mxu0 %v37_v4  ;;  %373 = vmatpush3.msra.mxu1 %v37_v4 }
   0xc   :  { %319 = vmatprep.subr.mxu0 %v36_v5  ;;  %362 = vmatprep.subr.mxu1 %v36_v5 }
   0xd   :  { %320 = vmatpush3.msra.mxu0 %v36_v5  ;;  %374 = vmatpush3.msra.mxu1 %v36_v5 }
   0xe   :  { %321 = vmatprep.subr.mxu0 %v35_v6  ;;  %363 = vmatprep.subr.mxu1 %v35_v6 }
   0xf   :  { %322 = vmatpush3.msra.mxu0 %v35_v6  ;;  %375 = vmatpush3.msra.mxu1 %v35_v6 }
  0x10   :  { %323 = vmatprep.subr.mxu0 %v34_v7  ;;  %364 = vmatprep.subr.mxu1 %v34_v7 }
  0x11   :  { %324 = vmatpush3.msra.mxu0 %v34_v7  ;;  %376 = vmatpush3.msra.mxu1 %v34_v7 }
  0x12   :  { %325 = vmatprep.subr.mxu0 %v33_v8  ;;  %365 = vmatprep.subr.mxu1 %v33_v8 }
  0x13   :  { %326 = vmatpush3.msra.mxu0 %v33_v8  ;;  %377 = vmatpush3.msra.mxu1 %v33_v8 }
  0x14   :  { %327 = vmatprep.subr.mxu0 %v32_v9  ;;  %366 = vmatprep.subr.mxu1 %v32_v9 }
  0x15   :  { %328 = vmatpush3.msra.mxu0 %v32_v9  ;;  %378 = vmatpush3.msra.mxu1 %v32_v9 }
  0x16   :  { %329 = vmatprep.subr.mxu0 %v31_v10  ;;  %367 = vmatprep.subr.mxu1 %v31_v10 }
  0x17   :  { %330 = vmatpush3.msra.mxu0 %v31_v10  ;;  %379 = vmatpush3.msra.mxu1 %v31_v10 }
  0x18   :  { %331 = vmatprep.subr.mxu0 %v30_v11  ;;  %368 = vmatprep.subr.mxu1 %v30_v11 }
  0x19   :  { %332 = vmatpush3.msra.mxu0 %v30_v11  ;;  %380 = vmatpush3.msra.mxu1 %v30_v11 }
  0x1a   :  { %333 = vmatprep.mubr.msk.f32.mxu0 %vm49_vm0, %v14_v12  ;;  %345 = vmatprep.mubr.msk.f32.mxu1 %vm49_vm0, %v22_v13 }
  0x1b   :  { %334 = vmatmul.mubr.msk.f32.vlgmr.msra.gmra.mxu0 %vm49_vm0, %v15_v14  ;;  %346 = vmatmul.mubr.msk.f32.vlgmr.msra.gmra.mxu1 %vm49_vm0, %v23_v15 }
  0x1c   :  { %336 = vmatprep.mubr.msk.f32.mxu0 %vm49_vm0, %v16_v16  ;;  %348 = vmatprep.mubr.msk.f32.mxu1 %vm49_vm0, %v24_v17 }
  0x1f   :  { %337 = vmatmul.mubr.msk.f32.gmra.mxu0 %vm49_vm0, %v17_v18  ;;  %349 = vmatmul.mubr.msk.f32.gmra.mxu1 %vm49_vm0, %v25_v19 }
  0x20   :  { %339 = vmatprep.mubr.msk.f32.mxu0 %vm49_vm0, %v18_v20  ;;  %351 = vmatprep.mubr.msk.f32.mxu1 %vm49_vm0, %v26_v21 }
  0x23   :  { %340 = vmatmul.mubr.msk.f32.gmra.mxu0 %vm49_vm0, %v19_v22  ;;  %352 = vmatmul.mubr.msk.f32.gmra.mxu1 %vm49_vm0, %v27_v23 }
  0x24   :  { %342 = vmatprep.mubr.msk.f32.mxu0 %vm49_vm0, %v20_v24  ;;  %354 = vmatprep.mubr.msk.f32.mxu1 %vm49_vm0, %v28_v25 }
  0x27   :  { %343 = vmatmul.mubr.msk.f32.gmra.mxu0 %vm49_vm0, %v21_v26  ;;  %355 = vmatmul.mubr.msk.f32.gmra.mxu1 %vm49_vm0, %v29_v27 }
  0xdb   :  { %v335_v29 = vpop.f32.mrf.mxu0  ;;  %v347_v30 = vpop.f32.mrf.mxu1 }
  0xdc   :  { %v170_v31 = vadd.f32 %v335_v29, %v264_v28  ;;  %v210_v32 = vadd.f32 %v347_v30, %v264_v28 }
  0xdd   :  { %v164_v33 = vpop.f32.mrf.mxu0  ;;  %v204_v34 = vpop.f32.mrf.mxu1 }
  0xde   :  { %245 = vst.msk [vmem:[%s571_s3 + $0x8] sm:$0xff] %vm243_vm1, %v170_v31  ;;  %253 = vst.msk [vmem:[%s571_s3 + $0x48] sm:$0xff] %vm243_vm1, %v210_v32  ;;  %v165_v35 = vadd.f32 %v264_v28, %v164_v33  ;;  %v205_v36 = vadd.f32 %v264_v28, %v204_v34 }
  0xdf   :  { %v338_v37 = vpop.f32.mrf.mxu0  ;;  %v350_v38 = vpop.f32.mrf.mxu1 }
  0xe0   :  { %244 = vst.msk [vmem:[%s571_s3] sm:$0xff] %vm243_vm1, %v165_v35  ;;  %252 = vst.msk [vmem:[%s571_s3 + $0x40] sm:$0xff] %vm243_vm1, %v205_v36  ;;  %v180_v39 = vadd.f32 %v338_v37, %v264_v28  ;;  %v220_v40 = vadd.f32 %v350_v38, %v264_v28 }
  0xe1   :  { %v174_v41 = vpop.f32.mrf.mxu0  ;;  %v214_v42 = vpop.f32.mrf.mxu1 }
  0xe2   :  { %247 = vst.msk [vmem:[%s571_s3 + $0x18] sm:$0xff] %vm243_vm1, %v180_v39  ;;  %255 = vst.msk [vmem:[%s571_s3 + $0x58] sm:$0xff] %vm243_vm1, %v220_v40  ;;  %v175_v43 = vadd.f32 %v264_v28, %v174_v41  ;;  %v215_v44 = vadd.f32 %v264_v28, %v214_v42 }
  0xe3   :  { %v341_v45 = vpop.f32.mrf.mxu0  ;;  %v353_v46 = vpop.f32.mrf.mxu1 }
  0xe4   :  { %246 = vst.msk [vmem:[%s571_s3 + $0x10] sm:$0xff] %vm243_vm1, %v175_v43  ;;  %254 = vst.msk [vmem:[%s571_s3 + $0x50] sm:$0xff] %vm243_vm1, %v215_v44  ;;  %v190_v47 = vadd.f32 %v341_v45, %v264_v28  ;;  %v230_v48 = vadd.f32 %v353_v46, %v264_v28 }
  0xe5   :  { %v184_v49 = vpop.f32.mrf.mxu0  ;;  %v224_v50 = vpop.f32.mrf.mxu1 }
  0xe6   :  { %249 = vst.msk [vmem:[%s571_s3 + $0x28] sm:$0xff] %vm243_vm1, %v190_v47  ;;  %257 = vst.msk [vmem:[%s571_s3 + $0x68] sm:$0xff] %vm243_vm1, %v230_v48  ;;  %v185_v51 = vadd.f32 %v264_v28, %v184_v49  ;;  %v225_v52 = vadd.f32 %v264_v28, %v224_v50 }
  0xe7   :  { %v344_v53 = vpop.f32.mrf.mxu0  ;;  %v356_v54 = vpop.f32.mrf.mxu1 }
  0xe8   :  { %248 = vst.msk [vmem:[%s571_s3 + $0x20] sm:$0xff] %vm243_vm1, %v185_v51  ;;  %256 = vst.msk [vmem:[%s571_s3 + $0x60] sm:$0xff] %vm243_vm1, %v225_v52  ;;  %v200_v55 = vadd.f32 %v344_v53, %v264_v28  ;;  %v240_v56 = vadd.f32 %v356_v54, %v264_v28 }
  0xe9   :  { %v194_v57 = vpop.f32.mrf.mxu0  ;;  %v234_v58 = vpop.f32.mrf.mxu1 }
  0xea   :  { %251 = vst.msk [vmem:[%s571_s3 + $0x38] sm:$0xff] %vm243_vm1, %v200_v55  ;;  %259 = vst.msk [vmem:[%s571_s3 + $0x78] sm:$0xff] %vm243_vm1, %v240_v56  ;;  %v195_v59 = vadd.f32 %v264_v28, %v194_v57  ;;  %v235_v60 = vadd.f32 %v264_v28, %v234_v58 }
  0xec   :  { %250 = vst.msk [vmem:[%s571_s3 + $0x30] sm:$0xff] %vm243_vm1, %v195_v59  ;;  %258 = vst.msk [vmem:[%s571_s3 + $0x70] sm:$0xff] %vm243_vm1, %v235_v60 }

// kernel: model_forward.37
= control target key start
LH: loop header
LB: loop body
LE: loop exit
PB: predicated region body
PF: predicated region fallthrough
CT: control target
= control target key end

     0   :  { %vm49_vm0 = vcmask 785408   ;;  %vm243_vm1 = vcmask 269312   ;;  %s568_s1 = inlined_call_operand.vmem [shape: f32[96,33], index: 1, kind: input, shape index: {}]   ;;  %s569_s0 = inlined_call_operand.vmem [shape: f32[128,96], index: 0, kind: input, shape index: {}]   ;;  %s570_s2 = inlined_call_operand.vmem [shape: f32[1,33], index: 2, kind: input, shape index: {}]   ;;  %s571_s3 = inlined_call_operand.vmem [shape: f32[128,33], index: 3, kind: output, shape index: {}]  }
   0x1   :  { %v41_v0 = vld [vmem:[%s568_s1 + $0x58] sm:$0xff]  ;;  %v40_v1 = vld [vmem:[%s568_s1 + $0x50] sm:$0xff]  ;;  %v39_v2 = vld [vmem:[%s568_s1 + $0x48] sm:$0xff] }
   0x2   :  { %309 = vmatprep.subr.mxu0 %v41_v0  ;;  %357 = vmatprep.subr.mxu1 %v41_v0  ;;  %v38_v3 = vld [vmem:[%s568_s1 + $0x40] sm:$0xff]  ;;  %v37_v4 = vld [vmem:[%s568_s1 + $0x38] sm:$0xff]  ;;  %v36_v5 = vld [vmem:[%s568_s1 + $0x30] sm:$0xff] }
   0x3   :  { %310 = vmatpush3.msra.mxu0 %v41_v0  ;;  %369 = vmatpush3.msra.mxu1 %v41_v0  ;;  %v35_v6 = vld [vmem:[%s568_s1 + $0x28] sm:$0xff]  ;;  %v34_v7 = vld [vmem:[%s568_s1 + $0x20] sm:$0xff]  ;;  %v33_v8 = vld [vmem:[%s568_s1 + $0x18] sm:$0xff] }
   0x4   :  { %311 = vmatprep.subr.mxu0 %v40_v1  ;;  %358 = vmatprep.subr.mxu1 %v40_v1  ;;  %v32_v9 = vld [vmem:[%s568_s1 + $0x10] sm:$0xff]  ;;  %v31_v10 = vld [vmem:[%s568_s1 + $0x8] sm:$0xff]  ;;  %v30_v11 = vld [vmem:[%s568_s1] sm:$0xff] }
   0x5   :  { %312 = vmatpush3.msra.mxu0 %v40_v1  ;;  %370 = vmatpush3.msra.mxu1 %v40_v1  ;;  %v14_v12 = vld [vmem:[%s569_s0] sm:$0xff]  ;;  %v15_v14 = vld [vmem:[%s569_s0 + $0x8] sm:$0xff]  ;;  %v16_v16 = vld [vmem:[%s569_s0 + $0x10] sm:$0xff] }
   0x6   :  { %313 = vmatprep.subr.mxu0 %v39_v2  ;;  %359 = vmatprep.subr.mxu1 %v39_v2  ;;  %v22_v13 = vld [vmem:[%s569_s0 + $0x40] sm:$0xff]  ;;  %v23_v15 = vld [vmem:[%s569_s0 + $0x48] sm:$0xff]  ;;  %v24_v17 = vld [vmem:[%s569_s0 + $0x50] sm:$0xff] }
   0x7   :  { %314 = vmatpush3.msra.mxu0 %v39_v2  ;;  %371 = vmatpush3.msra.mxu1 %v39_v2  ;;  %v17_v18 = vld [vmem:[%s569_s0 + $0x18] sm:$0xff]  ;;  %v18_v20 = vld [vmem:[%s569_s0 + $0x20] sm:$0xff]  ;;  %v19_v22 = vld [vmem:[%s569_s0 + $0x28] sm:$0xff] }
   0x8   :  { %315 = vmatprep.subr.mxu0 %v38_v3  ;;  %360 = vmatprep.subr.mxu1 %v38_v3  ;;  %v25_v19 = vld [vmem:[%s569_s0 + $0x58] sm:$0xff]  ;;  %v26_v21 = vld [vmem:[%s569_s0 + $0x60] sm:$0xff]  ;;  %v27_v23 = vld [vmem:[%s569_s0 + $0x68] sm:$0xff] }
   0x9   :  { %316 = vmatpush3.msra.mxu0 %v38_v3  ;;  %372 = vmatpush3.msra.mxu1 %v38_v3  ;;  %v20_v24 = vld [vmem:[%s569_s0 + $0x30] sm:$0xff]  ;;  %v21_v26 = vld [vmem:[%s569_s0 + $0x38] sm:$0xff]  ;;  %v264_v28 = vld [vmem:[%s570_s2] ss:$0 sm:$0xff] }
   0xa   :  { %317 = vmatprep.subr.mxu0 %v37_v4  ;;  %361 = vmatprep.subr.mxu1 %v37_v4  ;;  %v28_v25 = vld [vmem:[%s569_s0 + $0x70] sm:$0xff]  ;;  %v29_v27 = vld [vmem:[%s569_s0 + $0x78] sm:$0xff] }
   0xb   :  { %318 = vmatpush3.msra.mxu0 %v37_v4  ;;  %373 = vmatpush3.msra.mxu1 %v37_v4 }
   0xc   :  { %319 = vmatprep.subr.mxu0 %v36_v5  ;;  %362 = vmatprep.subr.mxu1 %v36_v5 }
   0xd   :  { %320 = vmatpush3.msra.mxu0 %v36_v5  ;;  %374 = vmatpush3.msra.mxu1 %v36_v5 }
   0xe   :  { %321 = vmatprep.subr.mxu0 %v35_v6  ;;  %363 = vmatprep.subr.mxu1 %v35_v6 }
   0xf   :  { %322 = vmatpush3.msra.mxu0 %v35_v6  ;;  %375 = vmatpush3.msra.mxu1 %v35_v6 }
  0x10   :  { %323 = vmatprep.subr.mxu0 %v34_v7  ;;  %364 = vmatprep.subr.mxu1 %v34_v7 }
  0x11   :  { %324 = vmatpush3.msra.mxu0 %v34_v7  ;;  %376 = vmatpush3.msra.mxu1 %v34_v7 }
  0x12   :  { %325 = vmatprep.subr.mxu0 %v33_v8  ;;  %365 = vmatprep.subr.mxu1 %v33_v8 }
  0x13   :  { %326 = vmatpush3.msra.mxu0 %v33_v8  ;;  %377 = vmatpush3.msra.mxu1 %v33_v8 }
  0x14   :  { %327 = vmatprep.subr.mxu0 %v32_v9  ;;  %366 = vmatprep.subr.mxu1 %v32_v9 }
  0x15   :  { %328 = vmatpush3.msra.mxu0 %v32_v9  ;;  %378 = vmatpush3.msra.mxu1 %v32_v9 }
  0x16   :  { %329 = vmatprep.subr.mxu0 %v31_v10  ;;  %367 = vmatprep.subr.mxu1 %v31_v10 }
  0x17   :  { %330 = vmatpush3.msra.mxu0 %v31_v10  ;;  %379 = vmatpush3.msra.mxu1 %v31_v10 }
  0x18   :  { %331 = vmatprep.subr.mxu0 %v30_v11  ;;  %368 = vmatprep.subr.mxu1 %v30_v11 }
  0x19   :  { %332 = vmatpush3.msra.mxu0 %v30_v11  ;;  %380 = vmatpush3.msra.mxu1 %v30_v11 }
  0x1a   :  { %333 = vmatprep.mubr.msk.f32.mxu0 %vm49_vm0, %v14_v12  ;;  %345 = vmatprep.mubr.msk.f32.mxu1 %vm49_vm0, %v22_v13 }
  0x1b   :  { %334 = vmatmul.mubr.msk.f32.vlgmr.msra.gmra.mxu0 %vm49_vm0, %v15_v14  ;;  %346 = vmatmul.mubr.msk.f32.vlgmr.msra.gmra.mxu1 %vm49_vm0, %v23_v15 }
  0x1c   :  { %336 = vmatprep.mubr.msk.f32.mxu0 %vm49_vm0, %v16_v16  ;;  %348 = vmatprep.mubr.msk.f32.mxu1 %vm49_vm0, %v24_v17 }
  0x1f   :  { %337 = vmatmul.mubr.msk.f32.gmra.mxu0 %vm49_vm0, %v17_v18  ;;  %349 = vmatmul.mubr.msk.f32.gmra.mxu1 %vm49_vm0, %v25_v19 }
  0x20   :  { %339 = vmatprep.mubr.msk.f32.mxu0 %vm49_vm0, %v18_v20  ;;  %351 = vmatprep.mubr.msk.f32.mxu1 %vm49_vm0, %v26_v21 }
  0x23   :  { %340 = vmatmul.mubr.msk.f32.gmra.mxu0 %vm49_vm0, %v19_v22  ;;  %352 = vmatmul.mubr.msk.f32.gmra.mxu1 %vm49_vm0, %v27_v23 }
  0x24   :  { %342 = vmatprep.mubr.msk.f32.mxu0 %vm49_vm0, %v20_v24  ;;  %354 = vmatprep.mubr.msk.f32.mxu1 %vm49_vm0, %v28_v25 }
  0x27   :  { %343 = vmatmul.mubr.msk.f32.gmra.mxu0 %vm49_vm0, %v21_v26  ;;  %355 = vmatmul.mubr.msk.f32.gmra.mxu1 %vm49_vm0, %v29_v27 }
  0xdb   :  { %v335_v29 = vpop.f32.mrf.mxu0  ;;  %v347_v30 = vpop.f32.mrf.mxu1 }
  0xdc   :  { %v170_v31 = vadd.f32 %v335_v29, %v264_v28  ;;  %v210_v32 = vadd.f32 %v347_v30, %v264_v28 }
  0xdd   :  { %v164_v33 = vpop.f32.mrf.mxu0  ;;  %v204_v34 = vpop.f32.mrf.mxu1 }
  0xde   :  { %245 = vst.msk [vmem:[%s571_s3 + $0x8] sm:$0xff] %vm243_vm1, %v170_v31  ;;  %253 = vst.msk [vmem:[%s571_s3 + $0x48] sm:$0xff] %vm243_vm1, %v210_v32  ;;  %v165_v35 = vadd.f32 %v264_v28, %v164_v33  ;;  %v205_v36 = vadd.f32 %v264_v28, %v204_v34 }
  0xdf   :  { %v338_v37 = vpop.f32.mrf.mxu0  ;;  %v350_v38 = vpop.f32.mrf.mxu1 }
  0xe0   :  { %244 = vst.msk [vmem:[%s571_s3] sm:$0xff] %vm243_vm1, %v165_v35  ;;  %252 = vst.msk [vmem:[%s571_s3 + $0x40] sm:$0xff] %vm243_vm1, %v205_v36  ;;  %v180_v39 = vadd.f32 %v338_v37, %v264_v28  ;;  %v220_v40 = vadd.f32 %v350_v38, %v264_v28 }
  0xe1   :  { %v174_v41 = vpop.f32.mrf.mxu0  ;;  %v214_v42 = vpop.f32.mrf.mxu1 }
  0xe2   :  { %247 = vst.msk [vmem:[%s571_s3 + $0x18] sm:$0xff] %vm243_vm1, %v180_v39  ;;  %255 = vst.msk [vmem:[%s571_s3 + $0x58] sm:$0xff] %vm243_vm1, %v220_v40  ;;  %v175_v43 = vadd.f32 %v264_v28, %v174_v41  ;;  %v215_v44 = vadd.f32 %v264_v28, %v214_v42 }
  0xe3   :  { %v341_v45 = vpop.f32.mrf.mxu0  ;;  %v353_v46 = vpop.f32.mrf.mxu1 }
  0xe4   :  { %246 = vst.msk [vmem:[%s571_s3 + $0x10] sm:$0xff] %vm243_vm1, %v175_v43  ;;  %254 = vst.msk [vmem:[%s571_s3 + $0x50] sm:$0xff] %vm243_vm1, %v215_v44  ;;  %v190_v47 = vadd.f32 %v341_v45, %v264_v28  ;;  %v230_v48 = vadd.f32 %v353_v46, %v264_v28 }
  0xe5   :  { %v184_v49 = vpop.f32.mrf.mxu0  ;;  %v224_v50 = vpop.f32.mrf.mxu1 }
  0xe6   :  { %249 = vst.msk [vmem:[%s571_s3 + $0x28] sm:$0xff] %vm243_vm1, %v190_v47  ;;  %257 = vst.msk [vmem:[%s571_s3 + $0x68] sm:$0xff] %vm243_vm1, %v230_v48  ;;  %v185_v51 = vadd.f32 %v264_v28, %v184_v49  ;;  %v225_v52 = vadd.f32 %v264_v28, %v224_v50 }
  0xe7   :  { %v344_v53 = vpop.f32.mrf.mxu0  ;;  %v356_v54 = vpop.f32.mrf.mxu1 }
  0xe8   :  { %248 = vst.msk [vmem:[%s571_s3 + $0x20] sm:$0xff] %vm243_vm1, %v185_v51  ;;  %256 = vst.msk [vmem:[%s571_s3 + $0x60] sm:$0xff] %vm243_vm1, %v225_v52  ;;  %v200_v55 = vadd.f32 %v344_v53, %v264_v28  ;;  %v240_v56 = vadd.f32 %v356_v54, %v264_v28 }
  0xe9   :  { %v194_v57 = vpop.f32.mrf.mxu0  ;;  %v234_v58 = vpop.f32.mrf.mxu1 }
  0xea   :  { %251 = vst.msk [vmem:[%s571_s3 + $0x38] sm:$0xff] %vm243_vm1, %v200_v55  ;;  %259 = vst.msk [vmem:[%s571_s3 + $0x78] sm:$0xff] %vm243_vm1, %v240_v56  ;;  %v195_v59 = vadd.f32 %v264_v28, %v194_v57  ;;  %v235_v60 = vadd.f32 %v264_v28, %v234_v58 }
  0xec   :  { %250 = vst.msk [vmem:[%s571_s3 + $0x30] sm:$0xff] %vm243_vm1, %v195_v59  ;;  %258 = vst.msk [vmem:[%s571_s3 + $0x70] sm:$0xff] %vm243_vm1, %v235_v60 }

// kernel: model_forward.27
= control target key start
LH: loop header
LB: loop body
LE: loop exit
PB: predicated region body
PF: predicated region fallthrough
CT: control target
= control target key end

     0   :  { %vm49_vm0 = vcmask 785408   ;;  %vm243_vm1 = vcmask 31744   ;;  %s568_s1 = inlined_call_operand.vmem [shape: f32[96,4], index: 1, kind: input, shape index: {}]   ;;  %s569_s0 = inlined_call_operand.vmem [shape: f32[128,96], index: 0, kind: input, shape index: {}]   ;;  %s570_s2 = inlined_call_operand.vmem [shape: f32[1,4], index: 2, kind: input, shape index: {}]   ;;  %s571_s3 = inlined_call_operand.vmem [shape: f32[128,4], index: 3, kind: output, shape index: {}]  }
   0x1   :  { %v41_v0 = vld [vmem:[%s568_s1 + $0x58] sm:$0xff]  ;;  %v40_v1 = vld [vmem:[%s568_s1 + $0x50] sm:$0xff]  ;;  %v39_v2 = vld [vmem:[%s568_s1 + $0x48] sm:$0xff] }
   0x2   :  { %309 = vmatprep.subr.mxu0 %v41_v0  ;;  %357 = vmatprep.subr.mxu1 %v41_v0  ;;  %v38_v3 = vld [vmem:[%s568_s1 + $0x40] sm:$0xff]  ;;  %v37_v4 = vld [vmem:[%s568_s1 + $0x38] sm:$0xff]  ;;  %v36_v5 = vld [vmem:[%s568_s1 + $0x30] sm:$0xff] }
   0x3   :  { %310 = vmatpush3.msra.mxu0 %v41_v0  ;;  %369 = vmatpush3.msra.mxu1 %v41_v0  ;;  %v35_v6 = vld [vmem:[%s568_s1 + $0x28] sm:$0xff]  ;;  %v34_v7 = vld [vmem:[%s568_s1 + $0x20] sm:$0xff]  ;;  %v33_v8 = vld [vmem:[%s568_s1 + $0x18] sm:$0xff] }
   0x4   :  { %311 = vmatprep.subr.mxu0 %v40_v1  ;;  %358 = vmatprep.subr.mxu1 %v40_v1  ;;  %v32_v9 = vld [vmem:[%s568_s1 + $0x10] sm:$0xff]  ;;  %v31_v10 = vld [vmem:[%s568_s1 + $0x8] sm:$0xff]  ;;  %v30_v11 = vld [vmem:[%s568_s1] sm:$0xff] }
   0x5   :  { %312 = vmatpush3.msra.mxu0 %v40_v1  ;;  %370 = vmatpush3.msra.mxu1 %v40_v1  ;;  %v14_v12 = vld [vmem:[%s569_s0] sm:$0xff]  ;;  %v15_v14 = vld [vmem:[%s569_s0 + $0x8] sm:$0xff]  ;;  %v16_v16 = vld [vmem:[%s569_s0 + $0x10] sm:$0xff] }
   0x6   :  { %313 = vmatprep.subr.mxu0 %v39_v2  ;;  %359 = vmatprep.subr.mxu1 %v39_v2  ;;  %v22_v13 = vld [vmem:[%s569_s0 + $0x40] sm:$0xff]  ;;  %v23_v15 = vld [vmem:[%s569_s0 + $0x48] sm:$0xff]  ;;  %v24_v17 = vld [vmem:[%s569_s0 + $0x50] sm:$0xff] }
   0x7   :  { %314 = vmatpush3.msra.mxu0 %v39_v2  ;;  %371 = vmatpush3.msra.mxu1 %v39_v2  ;;  %v17_v18 = vld [vmem:[%s569_s0 + $0x18] sm:$0xff]  ;;  %v18_v20 = vld [vmem:[%s569_s0 + $0x20] sm:$0xff]  ;;  %v19_v22 = vld [vmem:[%s569_s0 + $0x28] sm:$0xff] }
   0x8   :  { %315 = vmatprep.subr.mxu0 %v38_v3  ;;  %360 = vmatprep.subr.mxu1 %v38_v3  ;;  %v25_v19 = vld [vmem:[%s569_s0 + $0x58] sm:$0xff]  ;;  %v26_v21 = vld [vmem:[%s569_s0 + $0x60] sm:$0xff]  ;;  %v27_v23 = vld [vmem:[%s569_s0 + $0x68] sm:$0xff] }
   0x9   :  { %316 = vmatpush3.msra.mxu0 %v38_v3  ;;  %372 = vmatpush3.msra.mxu1 %v38_v3  ;;  %v20_v24 = vld [vmem:[%s569_s0 + $0x30] sm:$0xff]  ;;  %v21_v26 = vld [vmem:[%s569_s0 + $0x38] sm:$0xff]  ;;  %v264_v28 = vld [vmem:[%s570_s2] ss:$0 sm:$0xff] }
   0xa   :  { %317 = vmatprep.subr.mxu0 %v37_v4  ;;  %361 = vmatprep.subr.mxu1 %v37_v4  ;;  %v28_v25 = vld [vmem:[%s569_s0 + $0x70] sm:$0xff]  ;;  %v29_v27 = vld [vmem:[%s569_s0 + $0x78] sm:$0xff] }
   0xb   :  { %318 = vmatpush3.msra.mxu0 %v37_v4  ;;  %373 = vmatpush3.msra.mxu1 %v37_v4 }
   0xc   :  { %319 = vmatprep.subr.mxu0 %v36_v5  ;;  %362 = vmatprep.subr.mxu1 %v36_v5 }
   0xd   :  { %320 = vmatpush3.msra.mxu0 %v36_v5  ;;  %374 = vmatpush3.msra.mxu1 %v36_v5 }
   0xe   :  { %321 = vmatprep.subr.mxu0 %v35_v6  ;;  %363 = vmatprep.subr.mxu1 %v35_v6 }
   0xf   :  { %322 = vmatpush3.msra.mxu0 %v35_v6  ;;  %375 = vmatpush3.msra.mxu1 %v35_v6 }
  0x10   :  { %323 = vmatprep.subr.mxu0 %v34_v7  ;;  %364 = vmatprep.subr.mxu1 %v34_v7 }
  0x11   :  { %324 = vmatpush3.msra.mxu0 %v34_v7  ;;  %376 = vmatpush3.msra.mxu1 %v34_v7 }
  0x12   :  { %325 = vmatprep.subr.mxu0 %v33_v8  ;;  %365 = vmatprep.subr.mxu1 %v33_v8 }
  0x13   :  { %326 = vmatpush3.msra.mxu0 %v33_v8  ;;  %377 = vmatpush3.msra.mxu1 %v33_v8 }
  0x14   :  { %327 = vmatprep.subr.mxu0 %v32_v9  ;;  %366 = vmatprep.subr.mxu1 %v32_v9 }
  0x15   :  { %328 = vmatpush3.msra.mxu0 %v32_v9  ;;  %378 = vmatpush3.msra.mxu1 %v32_v9 }
  0x16   :  { %329 = vmatprep.subr.mxu0 %v31_v10  ;;  %367 = vmatprep.subr.mxu1 %v31_v10 }
  0x17   :  { %330 = vmatpush3.msra.mxu0 %v31_v10  ;;  %379 = vmatpush3.msra.mxu1 %v31_v10 }
  0x18   :  { %331 = vmatprep.subr.mxu0 %v30_v11  ;;  %368 = vmatprep.subr.mxu1 %v30_v11 }
  0x19   :  { %332 = vmatpush3.msra.mxu0 %v30_v11  ;;  %380 = vmatpush3.msra.mxu1 %v30_v11 }
  0x1a   :  { %333 = vmatprep.mubr.msk.f32.mxu0 %vm49_vm0, %v14_v12  ;;  %345 = vmatprep.mubr.msk.f32.mxu1 %vm49_vm0, %v22_v13 }
  0x1b   :  { %334 = vmatmul.mubr.msk.f32.vlgmr.msra.gmra.mxu0 %vm49_vm0, %v15_v14  ;;  %346 = vmatmul.mubr.msk.f32.vlgmr.msra.gmra.mxu1 %vm49_vm0, %v23_v15 }
  0x1c   :  { %336 = vmatprep.mubr.msk.f32.mxu0 %vm49_vm0, %v16_v16  ;;  %348 = vmatprep.mubr.msk.f32.mxu1 %vm49_vm0, %v24_v17 }
  0x1f   :  { %337 = vmatmul.mubr.msk.f32.gmra.mxu0 %vm49_vm0, %v17_v18  ;;  %349 = vmatmul.mubr.msk.f32.gmra.mxu1 %vm49_vm0, %v25_v19 }
  0x20   :  { %339 = vmatprep.mubr.msk.f32.mxu0 %vm49_vm0, %v18_v20  ;;  %351 = vmatprep.mubr.msk.f32.mxu1 %vm49_vm0, %v26_v21 }
  0x23   :  { %340 = vmatmul.mubr.msk.f32.gmra.mxu0 %vm49_vm0, %v19_v22  ;;  %352 = vmatmul.mubr.msk.f32.gmra.mxu1 %vm49_vm0, %v27_v23 }
  0x24   :  { %342 = vmatprep.mubr.msk.f32.mxu0 %vm49_vm0, %v20_v24  ;;  %354 = vmatprep.mubr.msk.f32.mxu1 %vm49_vm0, %v28_v25 }
  0x27   :  { %343 = vmatmul.mubr.msk.f32.gmra.mxu0 %vm49_vm0, %v21_v26  ;;  %355 = vmatmul.mubr.msk.f32.gmra.mxu1 %vm49_vm0, %v29_v27 }
  0xdb   :  { %v335_v29 = vpop.f32.mrf.mxu0  ;;  %v347_v30 = vpop.f32.mrf.mxu1 }
  0xdc   :  { %v170_v31 = vadd.f32 %v335_v29, %v264_v28  ;;  %v210_v32 = vadd.f32 %v347_v30, %v264_v28 }
  0xdd   :  { %v164_v33 = vpop.f32.mrf.mxu0  ;;  %v204_v34 = vpop.f32.mrf.mxu1 }
  0xde   :  { %245 = vst.msk [vmem:[%s571_s3 + $0x8] sm:$0xff] %vm243_vm1, %v170_v31  ;;  %253 = vst.msk [vmem:[%s571_s3 + $0x48] sm:$0xff] %vm243_vm1, %v210_v32  ;;  %v165_v35 = vadd.f32 %v264_v28, %v164_v33  ;;  %v205_v36 = vadd.f32 %v264_v28, %v204_v34 }
  0xdf   :  { %v338_v37 = vpop.f32.mrf.mxu0  ;;  %v350_v38 = vpop.f32.mrf.mxu1 }
  0xe0   :  { %244 = vst.msk [vmem:[%s571_s3] sm:$0xff] %vm243_vm1, %v165_v35  ;;  %252 = vst.msk [vmem:[%s571_s3 + $0x40] sm:$0xff] %vm243_vm1, %v205_v36  ;;  %v180_v39 = vadd.f32 %v338_v37, %v264_v28  ;;  %v220_v40 = vadd.f32 %v350_v38, %v264_v28 }
  0xe1   :  { %v174_v41 = vpop.f32.mrf.mxu0  ;;  %v214_v42 = vpop.f32.mrf.mxu1 }
  0xe2   :  { %247 = vst.msk [vmem:[%s571_s3 + $0x18] sm:$0xff] %vm243_vm1, %v180_v39  ;;  %255 = vst.msk [vmem:[%s571_s3 + $0x58] sm:$0xff] %vm243_vm1, %v220_v40  ;;  %v175_v43 = vadd.f32 %v264_v28, %v174_v41  ;;  %v215_v44 = vadd.f32 %v264_v28, %v214_v42 }
  0xe3   :  { %v341_v45 = vpop.f32.mrf.mxu0  ;;  %v353_v46 = vpop.f32.mrf.mxu1 }
  0xe4   :  { %246 = vst.msk [vmem:[%s571_s3 + $0x10] sm:$0xff] %vm243_vm1, %v175_v43  ;;  %254 = vst.msk [vmem:[%s571_s3 + $0x50] sm:$0xff] %vm243_vm1, %v215_v44  ;;  %v190_v47 = vadd.f32 %v341_v45, %v264_v28  ;;  %v230_v48 = vadd.f32 %v353_v46, %v264_v28 }
  0xe5   :  { %v184_v49 = vpop.f32.mrf.mxu0  ;;  %v224_v50 = vpop.f32.mrf.mxu1 }
  0xe6   :  { %249 = vst.msk [vmem:[%s571_s3 + $0x28] sm:$0xff] %vm243_vm1, %v190_v47  ;;  %257 = vst.msk [vmem:[%s571_s3 + $0x68] sm:$0xff] %vm243_vm1, %v230_v48  ;;  %v185_v51 = vadd.f32 %v264_v28, %v184_v49  ;;  %v225_v52 = vadd.f32 %v264_v28, %v224_v50 }
  0xe7   :  { %v344_v53 = vpop.f32.mrf.mxu0  ;;  %v356_v54 = vpop.f32.mrf.mxu1 }
  0xe8   :  { %248 = vst.msk [vmem:[%s571_s3 + $0x20] sm:$0xff] %vm243_vm1, %v185_v51  ;;  %256 = vst.msk [vmem:[%s571_s3 + $0x60] sm:$0xff] %vm243_vm1, %v225_v52  ;;  %v200_v55 = vadd.f32 %v344_v53, %v264_v28  ;;  %v240_v56 = vadd.f32 %v356_v54, %v264_v28 }
  0xe9   :  { %v194_v57 = vpop.f32.mrf.mxu0  ;;  %v234_v58 = vpop.f32.mrf.mxu1 }
  0xea   :  { %251 = vst.msk [vmem:[%s571_s3 + $0x38] sm:$0xff] %vm243_vm1, %v200_v55  ;;  %259 = vst.msk [vmem:[%s571_s3 + $0x78] sm:$0xff] %vm243_vm1, %v240_v56  ;;  %v195_v59 = vadd.f32 %v264_v28, %v194_v57  ;;  %v235_v60 = vadd.f32 %v264_v28, %v234_v58 }
  0xec   :  { %250 = vst.msk [vmem:[%s571_s3 + $0x30] sm:$0xff] %vm243_vm1, %v195_v59  ;;  %258 = vst.msk [vmem:[%s571_s3 + $0x70] sm:$0xff] %vm243_vm1, %v235_v60 }

// kernel: reverse.11
= control target key start
LH: loop header
LB: loop body
LE: loop exit
PB: predicated region body
PF: predicated region fallthrough
CT: control target
= control target key end

     0   :  { %v2_v0 = vlaneseq  ;;  %s382_s0 = inlined_call_operand.vmem [shape: f32[2,4,512], index: 0, kind: input, shape index: {}]   ;;  %s383_s1 = inlined_call_operand.vmem [shape: f32[2,4,512], index: 1, kind: output, shape index: {}]  }
   0x2   :  { %v3_v1 = vsub.s32 127, %v2_v0 }
   0x4   :  { %4 = vset.pattern.permute.xlu0 %v3_v1 }
   0x5   :  { %s342_s6 = smov 0   ;;  %s344_s7 = smov 0  }
   0x6   :  { %s346_s8 = smov 0  }
   0x7 LB: > { %s270_s9 = sadd.s32 4294967295, %s330_s8   ;;  %s22_s10 = sadd.s32 1, %s326_s7  ;;  %s330_s8 = sphi %s346_s8, %s10_s8   ;;  %s326_s7 = sphi %s344_s7, %s385_s7   ;;  %s322_s6 = sphi %s342_s6, %s384_s6  }
   0x8   : > { %p23_p0 = scmp.ge.s32.totalorder %s22_s10, 4  ;;  %p272_p1 = scmp.ge.s32.totalorder %s330_s8, 4 }
   0x9   : > { %s45_s11 = sand.u32 (!%p272_p1), 1, %s330_s8   ;;  %s48_s12 = ssub.s32 (!%p272_p1), 3, %s326_s7 }
   0xa   : > { %s387_s10 = smov (%p23_p0, %s22_s10), 0  ;;  %43 = sbr.rel (%p272_p1) target bundleno = 17 (0x11), region = 16 }
   0xb   : > { %s273_s13 = sshll.u32 (!%p272_p1), %s45_s11, 3  ;;  %s274_s14 = sshll.u32 (!%p272_p1), %s48_s12, 2 }
   0xc   : > { %s55_s17 = scalar_lea.vmem (!%p272_p1), %s382_s0, %s274_s14  ;;  %s47_s18 = scalar_lea.vmem (!%p272_p1), [#allocation1], %s273_s13 }
   0xf   : > { %v72_v2 = vld [vmem:[%s55_s17] sm:$0xf]  ;;  %v74_v3 = vld [vmem:[%s55_s17 + $0x10] sm:$0xf] }
  0x10   : > { %73 = vst [vmem:[%s47_s18] sm:$0xf] %v72_v2  ;;  %75 = vst [vmem:[%s47_s18 + $0x4] sm:$0xf] %v74_v3 }
  0x11 PF: > { %p275_p2 = scmp.ge.s32.totalorder %s330_s8, 1  ;;  %p102_p3 = scmp.lt.s32.totalorder %s330_s8, 5 }
  0x13   : > { %p103_p4 = pnand %p275_p2, %p102_p3 }
  0x14   : > { %s113_s19 = sand.u32 (!%p103_p4), 1, %s270_s9   ;;  %s281_s23 = sshll.u32 (!%p103_p4), %s322_s6, 2 }
  0x15   : > { %106 = sbr.rel (%p103_p4) target bundleno = 180 (0xb4), region = 57  ;;  %s276_s20 = sshll.u32 (!%p103_p4), %s113_s19, 3 }
  0x16   : > { %s115_s21 = scalar_lea.vmem (!%p103_p4), [#allocation1], %s276_s20  ;;  %s119_s22 = scalar_lea.vmem (!%p103_p4), [#allocation3], %s276_s20 }
  0x17   : > { %s166_s26 = scalar_lea.vmem (!%p103_p4), %s383_s1, %s281_s23 }
  0x1a   : > { %v127_v4 = vld [vmem:[%s115_s21] sm:$0xf]  ;;  %v278_v5 = vld [vmem:[%s115_s21 + $0x4] sm:$0xf] }
  0x1b   : > { %128 = vst [vmem:[#allocation0] sm:$0xf] %v127_v4  ;;  %126 = vst [vmem:[#allocation0 + $0x8] sm:$0xf] %v278_v5 }
  0x22   : > { %v132_v6 = vld [vmem:[#allocation0] sm:$0xff]  ;;  %v138_v7 = vld [vmem:[#allocation0 + $0x8] sm:$0xff] }
  0x23   : > { %133 = vperm.xlu0 %4, %v132_v6  }
  0x27   : > { %139 = vperm.xlu0 %4, %v138_v7  }
  0x9e   : > { %v134_v8 = vpop.permute.xlu0 %133 }
  0x9f   : > { %135 = vst [vmem:[#allocation2 + $0x8] sm:$0xff] %v134_v8 }
  0xa2   : > { %v140_v9 = vpop.permute.xlu0 %139 }
  0xa3   : > { %141 = vst [vmem:[#allocation2] sm:$0xff] %v140_v9 }
  0xa6   : > { %v146_v10 = vld [vmem:[#allocation2 + $0x8] sm:$0xf] }
  0xa7   : > { %149 = vst [vmem:[%s119_s22] sm:$0xf] %v146_v10 }
  0xaa   : > { %v151_v11 = vld [vmem:[#allocation2] sm:$0xf] }
  0xab   : > { %279 = vst [vmem:[%s119_s22 + $0x4] sm:$0xf] %v151_v11 }
  0xae   : > { %v183_v12 = vld [vmem:[%s119_s22] sm:$0xf] }
  0xaf   : > { %184 = vst [vmem:[%s166_s26] sm:$0xf] %v183_v12 }
  0xb2   : > { %v185_v13 = vld [vmem:[%s119_s22 + $0x4] sm:$0xf] }
  0xb3   : > { %186 = vst [vmem:[%s166_s26 + $0x10] sm:$0xf] %v185_v13 }
  0xb4 PF: > { %s10_s8 = sadd.s32 1, %s330_s8   ;;  %s384_s6 = smov %s326_s7 }
  0xb5   : > { %p7_p5 = scmp.ge.s32.totalorder %s10_s8, 6   ;;  %s385_s7 = smov %s387_s10 }
  0xb7   :  { %9 = sbr.rel (!%p7_p5) target bundleno = 7 (0x7), region = 130 }

// kernel: model_forward.32
= control target key start
LH: loop header
LB: loop body
LE: loop exit
PB: predicated region body
PF: predicated region fallthrough
CT: control target
= control target key end

     0   :  { %s80_s0 = inlined_call_operand.vmem [shape: f32[8,512], index: 0, kind: input, shape index: {}]   ;;  %s81_s1 = inlined_call_operand.vmem [shape: f32[8,512], index: 1, kind: output, shape index: {}]  }
   0x1   :  { %v8_v0 = vld [vmem:[%s80_s0] sm:$0xff]  ;;  %v9_v1 = vld [vmem:[%s80_s0 + $0x8] sm:$0xff]  ;;  %v10_v2 = vld [vmem:[%s80_s0 + $0x10] sm:$0xff] }
   0x2   :  { %v11_v3 = vld [vmem:[%s80_s0 + $0x18] sm:$0xff]  ;;  %v12_v4 = vmul.f32 %v8_v0, %v8_v0  ;;  %v13_v5 = vmul.f32 %v9_v1, %v9_v1  ;;  %v14_v6 = vmul.f32 %v10_v2, %v10_v2 }
   0x3   :  { %v15_v7 = vmul.f32 %v11_v3, %v11_v3 }
   0x4   :  { %v16_v8 = vadd.f32 %v13_v5, %v12_v4 }
   0x6   :  { %v17_v9 = vadd.f32 %v16_v8, %v14_v6 }
   0x8   :  { %v18_v10 = vadd.f32 %v17_v9, %v15_v7 }
   0xa   :  { %19 = vadd.xlane.f32.xlu0 %v18_v10 }
  0x93   :  { %v20_v11 = vpop.xlane.xlu0 %19 }
  0x94   :  { %42 = vrsqrt.f32 %v20_v11  ;;  %vm23_vm0 = vcmp.eq.f32.partialorder %v20_v11, inf  ;;  %v26_v14 = vand.u32 2147483648, %v20_v11  ;;  %vm25_vm1 = vcmp.eq.f32.partialorder %v20_v11, 0.0 }
  0xa1   :  { %v43_v12 = vpop.eup %42 }
  0xa2   :  { %v22_v13 = vmul.f32 %v43_v12, %v20_v11 }
  0xa4   :  { %v24_v15 = vsel %vm23_vm0, %v20_v11, %v22_v13 }
  0xa5   :  { %v27_v16 = vsel %vm25_vm1, %v26_v14, %v24_v15 }
  0xa6   :  { %v28_v17 = vadd.f32 1e-08, %v27_v16 }
  0xa8   :  { %44 = vrcp.f32 %v28_v17 }
  0xb5   :  { %v45_v18 = vpop.eup %44 }
  0xb6   :  { %v30_v19 = vmul.f32 %v45_v18, %v8_v0  ;;  %v31_v20 = vmul.f32 %v45_v18, %v9_v1  ;;  %v32_v21 = vmul.f32 %v45_v18, %v10_v2  ;;  %v33_v22 = vmul.f32 %v45_v18, %v11_v3 }
  0xb8   :  { %34 = vst [vmem:[%s81_s1] sm:$0xff] %v30_v19  ;;  %35 = vst [vmem:[%s81_s1 + $0x8] sm:$0xff] %v31_v20 }
  0xb9   :  { %36 = vst [vmem:[%s81_s1 + $0x10] sm:$0xff] %v32_v21  ;;  %37 = vst [vmem:[%s81_s1 + $0x18] sm:$0xff] %v33_v22 }

// kernel: model_forward.29
= control target key start
LH: loop header
LB: loop body
LE: loop exit
PB: predicated region body
PF: predicated region fallthrough
CT: control target
= control target key end

     0   :  { %s689_s12 = smov 0   ;;  %s919_s0 = inlined_call_operand.vmem [shape: f32[32,64], index: 0, kind: input, shape index: {}]   ;;  %s920_s1 = inlined_call_operand.vmem [shape: f32[64,1024], index: 1, kind: input, shape index: {}]   ;;  %s921_s2 = inlined_call_operand.vmem [shape: f32[32,1024], index: 2, kind: input, shape index: {}]   ;;  %s922_s3 = inlined_call_operand.vmem [shape: f32[32,1024], index: 3, kind: output, shape index: {}]  }
   0x1 LB: > { %s633_s13 = sadd.s32 4294967295, %s666_s12   ;;  %p637_p0 = scmp.ge.s32.totalorder %s666_s12, 1  ;;  %s666_s12 = sphi %s689_s12, %s13_s12  }
   0x2   : > { %p146_p1 = scmp.lt.s32.totalorder %s666_s12, 5 }
   0x4   : > { %p147_p2 = pnand %p637_p0, %p146_p1 }
   0x5   : > { %p174_p3 = scmp.lt.s32.totalorder (!%p147_p2), %s633_s13, 3 }
   0x6   : > { %150 = sbr.rel (%p147_p2) target bundleno = 245 (0xf5), region = 32 }
   0xb   : > { %v247_v0 = vld [vmem:[%s920_s1 + $0x1c8] sm:$0xff]  ;;  %v249_v1 = vld [vmem:[%s920_s1 + $0x1d8] sm:$0xff]  ;;  %v246_v2 = vld [vmem:[%s920_s1 + $0x1c0] sm:$0xff]  ;;  %s924_s13 = smov (!%p174_p3, %s633_s13), 3  ;;  %vm254_vm0 = vcmask 523264   ;;  %v668_v34 = vmov 0.0  }
   0xc   : > { %274 = vmatprep.subr.mxu0 %v247_v0  ;;  %345 = vmatprep.subr.mxu1 %v249_v1  ;;  %v248_v3 = vld [vmem:[%s920_s1 + $0x1d0] sm:$0xff]  ;;  %v239_v4 = vld [vmem:[%s920_s1 + $0x188] sm:$0xff]  ;;  %v241_v5 = vld [vmem:[%s920_s1 + $0x198] sm:$0xff]  ;;  %s638_s21 = sshll.u32 %s924_s13, 3 }
   0xd   : > { %275 = vmatpush1.msra.mxu0 %v246_v2  ;;  %346 = vmatpush1.msra.mxu1 %v248_v3  ;;  %v238_v6 = vld [vmem:[%s920_s1 + $0x180] sm:$0xff]  ;;  %v240_v7 = vld [vmem:[%s920_s1 + $0x190] sm:$0xff]  ;;  %v231_v8 = vld [vmem:[%s920_s1 + $0x148] sm:$0xff]  ;;  %s177_s9 = scalar_lea.vmem %s919_s0, %s638_s21  ;;  %s649_s21 = sshll.u32 %s924_s13, 6 }
   0xe   : > { %276 = vmatprep.subr.mxu0 %v239_v4  ;;  %347 = vmatprep.subr.mxu1 %v241_v5  ;;  %v233_v9 = vld [vmem:[%s920_s1 + $0x158] sm:$0xff]  ;;  %v230_v10 = vld [vmem:[%s920_s1 + $0x140] sm:$0xff]  ;;  %v232_v11 = vld [vmem:[%s920_s1 + $0x150] sm:$0xff]  ;;  %s182_s24 = scalar_lea.vmem %s921_s2, %s649_s21  ;;  %s187_s27 = scalar_lea.vmem %s922_s3, %s649_s21 }
   0xf   : > { %277 = vmatpush1.msra.mxu0 %v238_v6  ;;  %348 = vmatpush1.msra.mxu1 %v240_v7  ;;  %v223_v12 = vld [vmem:[%s920_s1 + $0x108] sm:$0xff]  ;;  %v225_v13 = vld [vmem:[%s920_s1 + $0x118] sm:$0xff]  ;;  %v222_v14 = vld [vmem:[%s920_s1 + $0x100] sm:$0xff] }
  0x10   : > { %278 = vmatprep.subr.mxu0 %v231_v8  ;;  %349 = vmatprep.subr.mxu1 %v233_v9  ;;  %v224_v15 = vld [vmem:[%s920_s1 + $0x110] sm:$0xff]  ;;  %v215_v16 = vld [vmem:[%s920_s1 + $0xc8] sm:$0xff]  ;;  %v217_v17 = vld [vmem:[%s920_s1 + $0xd8] sm:$0xff] }
  0x11   : > { %279 = vmatpush1.msra.mxu0 %v230_v10  ;;  %350 = vmatpush1.msra.mxu1 %v232_v11  ;;  %v214_v18 = vld [vmem:[%s920_s1 + $0xc0] sm:$0xff]  ;;  %v216_v19 = vld [vmem:[%s920_s1 + $0xd0] sm:$0xff]  ;;  %v207_v20 = vld [vmem:[%s920_s1 + $0x88] sm:$0xff] }
  0x12   : > { %280 = vmatprep.subr.mxu0 %v223_v12  ;;  %351 = vmatprep.subr.mxu1 %v225_v13  ;;  %v209_v21 = vld [vmem:[%s920_s1 + $0x98] sm:$0xff]  ;;  %v206_v22 = vld [vmem:[%s920_s1 + $0x80] sm:$0xff]  ;;  %v208_v23 = vld [vmem:[%s920_s1 + $0x90] sm:$0xff] }
  0x13   : > { %281 = vmatpush1.msra.mxu0 %v222_v14  ;;  %352 = vmatpush1.msra.mxu1 %v224_v15  ;;  %v199_v24 = vld [vmem:[%s920_s1 + $0x48] sm:$0xff]  ;;  %v201_v25 = vld [vmem:[%s920_s1 + $0x58] sm:$0xff]  ;;  %v198_v26 = vld [vmem:[%s920_s1 + $0x40] sm:$0xff] }
  0x14   : > { %282 = vmatprep.subr.mxu0 %v215_v16  ;;  %353 = vmatprep.subr.mxu1 %v217_v17  ;;  %v200_v27 = vld [vmem:[%s920_s1 + $0x50] sm:$0xff]  ;;  %v188_v28 = vld [vmem:[%s177_s9] sm:$0xff]  ;;  %v191_v29 = vld [vmem:[%s920_s1 + $0x8] sm:$0xff] }
  0x15   : > { %283 = vmatpush1.msra.mxu0 %v214_v18  ;;  %354 = vmatpush1.msra.mxu1 %v216_v19  ;;  %v193_v30 = vld [vmem:[%s920_s1 + $0x18] sm:$0xff]  ;;  %v190_v31 = vld [vmem:[%s920_s1] sm:$0xff]  ;;  %v192_v32 = vld [vmem:[%s920_s1 + $0x10] sm:$0xff]  ;;  %v799_v33 = vmax.f32 %v188_v28, 0.0 }
  0x16   : > { %284 = vmatprep.subr.mxu0 %v207_v20  ;;  %355 = vmatprep.subr.mxu1 %v209_v21  ;;  %v251_v35 = vld [vmem:[%s920_s1 + $0x1e8] sm:$0xff]  ;;  %v253_v36 = vld [vmem:[%s920_s1 + $0x1f8] sm:$0xff]  ;;  %v250_v37 = vld [vmem:[%s920_s1 + $0x1e0] sm:$0xff] }
  0x17   : > { %285 = vmatpush1.msra.mxu0 %v206_v22  ;;  %356 = vmatpush1.msra.mxu1 %v208_v23  ;;  %v252_v38 = vld [vmem:[%s920_s1 + $0x1f0] sm:$0xff]  ;;  %v243_v39 = vld [vmem:[%s920_s1 + $0x1a8] sm:$0xff]  ;;  %v245_v40 = vld [vmem:[%s920_s1 + $0x1b8] sm:$0xff] }
  0x18   : > { %286 = vmatprep.subr.mxu0 %v199_v24  ;;  %357 = vmatprep.subr.mxu1 %v201_v25  ;;  %v242_v41 = vld [vmem:[%s920_s1 + $0x1a0] sm:$0xff]  ;;  %v244_v42 = vld [vmem:[%s920_s1 + $0x1b0] sm:$0xff]  ;;  %v235_v43 = vld [vmem:[%s920_s1 + $0x168] sm:$0xff] }
  0x19   : > { %287 = vmatpush1.msra.mxu0 %v198_v26  ;;  %358 = vmatpush1.msra.mxu1 %v200_v27  ;;  %v237_v44 = vld [vmem:[%s920_s1 + $0x178] sm:$0xff]  ;;  %v234_v45 = vld [vmem:[%s920_s1 + $0x160] sm:$0xff]  ;;  %v236_v46 = vld [vmem:[%s920_s1 + $0x170] sm:$0xff] }
  0x1a   : > { %288 = vmatprep.subr.mxu0 %v191_v29  ;;  %359 = vmatprep.subr.mxu1 %v193_v30  ;;  %v227_v47 = vld [vmem:[%s920_s1 + $0x128] sm:$0xff]  ;;  %v229_v48 = vld [vmem:[%s920_s1 + $0x138] sm:$0xff]  ;;  %v226_v49 = vld [vmem:[%s920_s1 + $0x120] sm:$0xff] }
  0x1b   : > { %289 = vmatpush1.msra.mxu0 %v190_v31  ;;  %322 = vmatprep.mubr.f32.mxu0 %v668_v34  ;;  %v228_v50 = vld [vmem:[%s920_s1 + $0x130] sm:$0xff]  ;;  %v219_v51 = vld [vmem:[%s920_s1 + $0xe8] sm:$0xff]  ;;  %v221_v52 = vld [vmem:[%s920_s1 + $0xf8] sm:$0xff] }
  0x1c   : > { %360 = vmatpush1.msra.mxu1 %v192_v32  ;;  %393 = vmatprep.mubr.f32.mxu1 %v668_v34  ;;  %v218_v53 = vld [vmem:[%s920_s1 + $0xe0] sm:$0xff]  ;;  %v220_v54 = vld [vmem:[%s920_s1 + $0xf0] sm:$0xff]  ;;  %v211_v55 = vld [vmem:[%s920_s1 + $0xa8] sm:$0xff] }
  0x1d   : > { %643 = vmatmul.mubr.msk.f32.vlgmr.msra.gmra.mxu0 %vm254_vm0, %v799_v33  ;;  %644 = vmatmul.mubr.msk.f32.vlgmr.msra.gmra.mxu1 %vm254_vm0, %v799_v33  ;;  %v213_v56 = vld [vmem:[%s920_s1 + $0xb8] sm:$0xff]  ;;  %v210_v57 = vld [vmem:[%s920_s1 + $0xa0] sm:$0xff]  ;;  %v212_v58 = vld [vmem:[%s920_s1 + $0xb0] sm:$0xff] }
  0x1e   : > { %416 = vmatprep.subr.mxu0 %v251_v35  ;;  %487 = vmatprep.subr.mxu1 %v253_v36  ;;  %v203_v59 = vld [vmem:[%s920_s1 + $0x68] sm:$0xff]  ;;  %v205_v60 = vld [vmem:[%s920_s1 + $0x78] sm:$0xff]  ;;  %v202_v61 = vld [vmem:[%s920_s1 + $0x60] sm:$0xff] }
  0x1f   : > { %417 = vmatpush1.msra.mxu0 %v250_v37  ;;  %488 = vmatpush1.msra.mxu1 %v252_v38  ;;  %v204_v62 = vld [vmem:[%s920_s1 + $0x70] sm:$0xff]  ;;  %v195_v63 = vld [vmem:[%s920_s1 + $0x28] sm:$0xff]  ;;  %v197_v0 = vld [vmem:[%s920_s1 + $0x38] sm:$0xff] }
  0x20   : > { %418 = vmatprep.subr.mxu0 %v243_v39  ;;  %489 = vmatprep.subr.mxu1 %v245_v40  ;;  %v194_v1 = vld [vmem:[%s920_s1 + $0x20] sm:$0xff]  ;;  %v196_v2 = vld [vmem:[%s920_s1 + $0x30] sm:$0xff]  ;;  %v543_v7 = vld [vmem:[%s182_s24 + $0x8] sm:$0xff] }
  0x21   : > { %419 = vmatpush1.msra.mxu0 %v242_v41  ;;  %490 = vmatpush1.msra.mxu1 %v244_v42  ;;  %v542_v3 = vld [vmem:[%s182_s24] sm:$0xff]  ;;  %v544_v4 = vld [vmem:[%s182_s24 + $0x10] sm:$0xff]  ;;  %v545_v8 = vld [vmem:[%s182_s24 + $0x18] sm:$0xff] }
  0x22   : > { %420 = vmatprep.subr.mxu0 %v235_v43  ;;  %491 = vmatprep.subr.mxu1 %v237_v44  ;;  %v546_v15 = vld [vmem:[%s182_s24 + $0x20] sm:$0xff]  ;;  %v548_v16 = vld [vmem:[%s182_s24 + $0x30] sm:$0xff]  ;;  %v547_v19 = vld [vmem:[%s182_s24 + $0x28] sm:$0xff] }
  0x23   : > { %421 = vmatpush1.msra.mxu0 %v234_v45  ;;  %492 = vmatpush1.msra.mxu1 %v236_v46  ;;  %v549_v20 = vld [vmem:[%s182_s24 + $0x38] sm:$0xff] }
  0x24   : > { %422 = vmatprep.subr.mxu0 %v227_v47  ;;  %493 = vmatprep.subr.mxu1 %v229_v48 }
  0x25   : > { %423 = vmatpush1.msra.mxu0 %v226_v49  ;;  %494 = vmatpush1.msra.mxu1 %v228_v50 }
  0x26   : > { %424 = vmatprep.subr.mxu0 %v219_v51  ;;  %495 = vmatprep.subr.mxu1 %v221_v52 }
  0x27   : > { %425 = vmatpush1.msra.mxu0 %v218_v53  ;;  %496 = vmatpush1.msra.mxu1 %v220_v54 }
  0x28   : > { %426 = vmatprep.subr.mxu0 %v211_v55  ;;  %497 = vmatprep.subr.mxu1 %v213_v56 }
  0x29   : > { %427 = vmatpush1.msra.mxu0 %v210_v57  ;;  %498 = vmatpush1.msra.mxu1 %v212_v58 }
  0x2a   : > { %428 = vmatprep.subr.mxu0 %v203_v59  ;;  %499 = vmatprep.subr.mxu1 %v205_v60 }
  0x2b   : > { %429 = vmatpush1.msra.mxu0 %v202_v61  ;;  %500 = vmatpush1.msra.mxu1 %v204_v62 }
  0x2c   : > { %430 = vmatprep.subr.mxu0 %v195_v63  ;;  %501 = vmatprep.subr.mxu1 %v197_v0 }
  0x2d   : > { %431 = vmatpush1.msra.mxu0 %v194_v1  ;;  %464 = vmatprep.mubr.f32.mxu0 %v668_v34 }
  0x2e   : > { %502 = vmatpush1.msra.mxu1 %v196_v2  ;;  %535 = vmatprep.mubr.f32.mxu1 %v668_v34 }
  0x2f   : > { %645 = vmatmul.mubr.msk.f32.vlgmr.msra.gmra.mxu0 %vm254_vm0, %v799_v33  ;;  %646 = vmatmul.mubr.msk.f32.vlgmr.msra.gmra.mxu1 %vm254_vm0, %v799_v33 }
  0xdd   : > { %v324_v5 = vpop.f32.mrf.mxu0  ;;  %v395_v6 = vpop.f32.mrf.mxu1 }
  0xde   : > { %v550_v9 = vmul.f32 %v542_v3, %v324_v5  ;;  %v552_v10 = vmul.f32 %v544_v4, %v395_v6 }
  0xdf   : > { %v326_v11 = vpop.f32.mrf.mxu0  ;;  %v397_v12 = vpop.f32.mrf.mxu1 }
  0xe0   : > { %558 = vst [vmem:[%s187_s27] sm:$0xff] %v550_v9  ;;  %560 = vst [vmem:[%s187_s27 + $0x10] sm:$0xff] %v552_v10  ;;  %v551_v13 = vmul.f32 %v543_v7, %v326_v11  ;;  %v553_v14 = vmul.f32 %v545_v8, %v397_v12 }
  0xe2   : > { %559 = vst [vmem:[%s187_s27 + $0x8] sm:$0xff] %v551_v13  ;;  %561 = vst [vmem:[%s187_s27 + $0x18] sm:$0xff] %v553_v14 }
  0xef   : > { %v466_v17 = vpop.f32.mrf.mxu0  ;;  %v537_v18 = vpop.f32.mrf.mxu1 }
  0xf0   : > { %v554_v21 = vmul.f32 %v546_v15, %v466_v17  ;;  %v556_v22 = vmul.f32 %v548_v16, %v537_v18 }
  0xf1   : > { %v468_v23 = vpop.f32.mrf.mxu0  ;;  %v539_v24 = vpop.f32.mrf.mxu1 }
  0xf2   : > { %562 = vst [vmem:[%s187_s27 + $0x20] sm:$0xff] %v554_v21  ;;  %564 = vst [vmem:[%s187_s27 + $0x30] sm:$0xff] %v556_v22  ;;  %v555_v25 = vmul.f32 %v547_v19, %v468_v23  ;;  %v557_v26 = vmul.f32 %v549_v20, %v539_v24 }
  0xf4   : > { %563 = vst [vmem:[%s187_s27 + $0x28] sm:$0xff] %v555_v25  ;;  %565 = vst [vmem:[%s187_s27 + $0x38] sm:$0xff] %v557_v26 }
  0xf5 PF: > { %s13_s12 = sadd.s32 1, %s666_s12  }
  0xf6   : > { %p10_p4 = scmp.ge.s32.totalorder %s13_s12, 6  }
  0xf8   :  { %12 = sbr.rel (!%p10_p4) target bundleno = 1 (0x1), region = 65 }

// kernel: reverse.13
= control target key start
LH: loop header
LB: loop body
LE: loop exit
PB: predicated region body
PF: predicated region fallthrough
CT: control target
= control target key end

     0   :  { %v2_v0 = vlaneseq  ;;  %s362_s0 = inlined_call_operand.vmem [shape: f32[32,1024], index: 0, kind: input, shape index: {}]   ;;  %s363_s1 = inlined_call_operand.vmem [shape: f32[32,1024], index: 1, kind: output, shape index: {}]  }
   0x2   :  { %v318_v1 = vsub.s32 127, %v2_v0 }
   0x4   :  { %4 = vset.pattern.permute.xlu0 %v318_v1 }
   0x5   :  { %s321_s6 = smov 0   ;;  %s323_s7 = smov 0  }
   0x6   :  { %s325_s8 = smov 0  }
   0x7 LB: > { %s241_s9 = sadd.s32 4294967295, %s306_s8   ;;  %s19_s10 = sadd.s32 1, %s302_s7  ;;  %s306_s8 = sphi %s325_s8, %s10_s8   ;;  %s302_s7 = sphi %s323_s7, %s365_s7   ;;  %s298_s6 = sphi %s321_s6, %s364_s6  }
   0x8   : > { %p20_p0 = scmp.ge.s32.totalorder %s19_s10, 8  ;;  %p243_p1 = scmp.ge.s32.totalorder %s306_s8, 8 }
   0x9   : > { %s38_s11 = sand.u32 (!%p243_p1), 1, %s306_s8   ;;  %s41_s12 = ssub.s32 (!%p243_p1), 7, %s302_s7 }
   0xa   : > { %s367_s10 = smov (%p20_p0, %s19_s10), 0  ;;  %36 = sbr.rel (%p243_p1) target bundleno = 20 (0x14), region = 16 }
   0xb   : > { %s244_s13 = sshll.u32 (!%p243_p1), %s38_s11, 5  ;;  %s245_s14 = sshll.u32 (!%p243_p1), %s41_s12, 3 }
   0xc   : > { %s46_s17 = scalar_lea.vmem (!%p243_p1), %s362_s0, %s245_s14  ;;  %s40_s18 = scalar_lea.vmem (!%p243_p1), [#allocation0], %s244_s13 }
   0xf   : > { %v81_v2 = vld [vmem:[%s46_s17] sm:$0xff] }
  0x10   : > { %v83_v3 = vld [vmem:[%s46_s17 + $0x40] sm:$0xff]  ;;  %82 = vst [vmem:[%s40_s18] sm:$0xff] %v81_v2 }
  0x11   : > { %v85_v4 = vld [vmem:[%s46_s17 + $0x80] sm:$0xff]  ;;  %84 = vst [vmem:[%s40_s18 + $0x8] sm:$0xff] %v83_v3 }
  0x12   : > { %86 = vst [vmem:[%s40_s18 + $0x10] sm:$0xff] %v85_v4  ;;  %v87_v5 = vld [vmem:[%s46_s17 + $0xc0] sm:$0xff] }
  0x13   : > { %88 = vst [vmem:[%s40_s18 + $0x18] sm:$0xff] %v87_v5 }
  0x14 PF: > { %p246_p2 = scmp.ge.s32.totalorder %s306_s8, 1  ;;  %p93_p3 = scmp.lt.s32.totalorder %s306_s8, 9 }
  0x16   : > { %p94_p4 = pnand %p246_p2, %p93_p3 }
  0x17   : > { %s100_s19 = sand.u32 (!%p94_p4), 1, %s241_s9   ;;  %s256_s22 = sshll.u32 (!%p94_p4), %s298_s6, 3 }
  0x18   : > { %97 = sbr.rel (%p94_p4) target bundleno = 159 (0x9f), region = 54  ;;  %s247_s20 = sshll.u32 (!%p94_p4), %s100_s19, 5 }
  0x19   : > { %s102_s21 = scalar_lea.vmem (!%p94_p4), [#allocation0], %s247_s20  ;;  %s144_s25 = scalar_lea.vmem (!%p94_p4), %s363_s1, %s256_s22 }
  0x1d   : > { %283 = vset.pattern.permute.xlu1 %v318_v1  ;;  %v251_v6 = vld [vmem:[%s102_s21 + $0x10] sm:$0xff]  ;;  %v114_v7 = vld [vmem:[%s102_s21] sm:$0xff]  ;;  %v253_v8 = vld [vmem:[%s102_s21 + $0x18] sm:$0xff] }
  0x1e   : > { %127 = vperm.xlu1 %283, %v251_v6   ;;  %115 = vperm.xlu0 %4, %v114_v7   ;;  %v249_v9 = vld [vmem:[%s102_s21 + $0x8] sm:$0xff] }
  0x22   : > { %133 = vperm.xlu1 %283, %v253_v8   ;;  %121 = vperm.xlu0 %4, %v249_v9  }
  0x99   : > { %v128_v10 = vpop.permute.xlu1 %127  ;;  %v116_v11 = vpop.permute.xlu0 %115 }
  0x9a   : > { %184 = vst [vmem:[%s144_s25 + $0x80] sm:$0xff] %v128_v10  ;;  %180 = vst [vmem:[%s144_s25] sm:$0xff] %v116_v11 }
  0x9d   : > { %v134_v12 = vpop.permute.xlu1 %133  ;;  %v122_v13 = vpop.permute.xlu0 %121 }
  0x9e   : > { %186 = vst [vmem:[%s144_s25 + $0xc0] sm:$0xff] %v134_v12  ;;  %182 = vst [vmem:[%s144_s25 + $0x40] sm:$0xff] %v122_v13 }
  0x9f PF: > { %s10_s8 = sadd.s32 1, %s306_s8   ;;  %s364_s6 = smov %s302_s7 }
  0xa0   : > { %p7_p5 = scmp.ge.s32.totalorder %s10_s8, 10   ;;  %s365_s7 = smov %s367_s10 }
  0xa2   :  { %9 = sbr.rel (!%p7_p5) target bundleno = 7 (0x7), region = 124 }

// kernel: model_forward.33
= control target key start
LH: loop header
LB: loop body
LE: loop exit
PB: predicated region body
PF: predicated region fallthrough
CT: control target
= control target key end

     0   :  { %s429_s9 = smov 0   ;;  %s431_s10 = smov 0   ;;  %s497_s0 = inlined_call_operand.vmem [shape: f32[4,8,1024], index: 0, kind: input, shape index: {}]   ;;  %s498_s1 = inlined_call_operand.vmem [shape: f32[4,8,1024], index: 1, kind: input, shape index: {}]   ;;  %s499_s2 = inlined_call_operand.vmem [shape: f32[8,1024], index: 2, kind: output, shape index: {}]  }
   0x1   :  { %s433_s11 = smov 0  }
   0x2 LB: > { %s347_s12 = sadd.s32 4294967295, %s412_s11   ;;  %s446_s13 = sadd.s32 1, %s412_s11   ;;  %s412_s11 = sphi %s433_s11, %s503_s11   ;;  %s408_s10 = sphi %s431_s10, %s502_s10   ;;  %s404_s9 = sphi %s429_s9, %s501_s9  }
   0x3   : > { %s16_s14 = ssub.s32 %s412_s11, %s446_s13  ;;  %s19_s15 = sadd.s32 1, %s408_s10 }
   0x4   : > { %p17_p0 = scmp.eq.s32.totalorder %s16_s14, 0  ;;  %p26_p1 = scmp.ne.s32.totalorder %s408_s10, %s404_s9 }
   0x5   : > { %p27_p2 = scmp.eq.s32.totalorder %s412_s11, 0  ;;  %p350_p4 = scmp.ge.s32.totalorder %s412_s11, 4 }
   0x6   : > { %s455_s16 = scalar_select %p17_p0, %s408_s10, %s19_s15  }
   0x7   : > { %p457_p3 = por %p27_p2, %p26_p1  ;;  %104 = sbr.rel (%p350_p4) target bundleno = 28 (0x1c), region = 16 }
   0xc   : > { %107 = sbr.rel (!%p457_p3) target bundleno = 20 (0x14), region = 20  ;;  %s109_s18 = sand.u32 (%p457_p3), 1, %s408_s10  }
   0xd   : > { %s364_s19 = sshll.u32 (%p457_p3), %s412_s11, 4  ;;  %s351_s20 = sshll.u32 (%p457_p3), %s109_s18, 6 }
   0xe   : > { %s114_s23 = scalar_lea.vmem (%p457_p3), %s497_s0, %s364_s19  ;;  %s111_s24 = scalar_lea.vmem (%p457_p3), [#allocation2], %s351_s20 }
   0xf   : > { %v127_v0 = vld [vmem:[%s114_s23] sm:$0xff] (%p457_p3)  ;;  %v129_v1 = vld [vmem:[%s114_s23 + $0x8] sm:$0xff] (%p457_p3) }
  0x10   : > { %v131_v2 = vld [vmem:[%s114_s23 + $0x40] sm:$0xff] (%p457_p3)  ;;  %128 = vst [vmem:[%s111_s24] sm:$0xff] (%p457_p3), %v127_v0  ;;  %130 = vst [vmem:[%s111_s24 + $0x8] sm:$0xff] (%p457_p3), %v129_v1  ;;  %v133_v3 = vld [vmem:[%s114_s23 + $0x48] sm:$0xff] (%p457_p3) }
  0x11   : > { %132 = vst [vmem:[%s111_s24 + $0x10] sm:$0xff] %v131_v2  ;;  %v135_v4 = vld [vmem:[%s114_s23 + $0x80] sm:$0xff]  ;;  %v137_v5 = vld [vmem:[%s114_s23 + $0x88] sm:$0xff]  ;;  %134 = vst [vmem:[%s111_s24 + $0x18] sm:$0xff] %v133_v3 }
  0x12   : > { %136 = vst [vmem:[%s111_s24 + $0x20] sm:$0xff] %v135_v4  ;;  %138 = vst [vmem:[%s111_s24 + $0x28] sm:$0xff] %v137_v5  ;;  %v139_v6 = vld [vmem:[%s114_s23 + $0xc0] sm:$0xff]  ;;  %v141_v7 = vld [vmem:[%s114_s23 + $0xc8] sm:$0xff] }
  0x13   : > { %140 = vst [vmem:[%s111_s24 + $0x30] sm:$0xff] %v139_v6  ;;  %142 = vst [vmem:[%s111_s24 + $0x38] sm:$0xff] %v141_v7 }
  0x14 PF: > { %148 = sbr.rel (!%p457_p3) target bundleno = 28 (0x1c), region = 43  ;;  %s150_s25 = sand.u32 (%p457_p3), 1, %s408_s10  }
  0x15   : > { %s365_s26 = sshll.u32 (%p457_p3), %s412_s11, 4  ;;  %s354_s27 = sshll.u32 (%p457_p3), %s150_s25, 6 }
  0x16   : > { %s155_s30 = scalar_lea.vmem (%p457_p3), %s498_s1, %s365_s26  ;;  %s152_s3 = scalar_lea.vmem (%p457_p3), [#allocation3], %s354_s27 }
  0x17   : > { %v168_v8 = vld [vmem:[%s155_s30] sm:$0xff] (%p457_p3)  ;;  %v170_v9 = vld [vmem:[%s155_s30 + $0x8] sm:$0xff] (%p457_p3) }
  0x18   : > { %v172_v10 = vld [vmem:[%s155_s30 + $0x40] sm:$0xff] (%p457_p3)  ;;  %169 = vst [vmem:[%s152_s3] sm:$0xff] (%p457_p3), %v168_v8  ;;  %171 = vst [vmem:[%s152_s3 + $0x8] sm:$0xff] (%p457_p3), %v170_v9  ;;  %v174_v11 = vld [vmem:[%s155_s30 + $0x48] sm:$0xff] (%p457_p3) }
  0x19   : > { %173 = vst [vmem:[%s152_s3 + $0x10] sm:$0xff] %v172_v10  ;;  %v176_v12 = vld [vmem:[%s155_s30 + $0x80] sm:$0xff]  ;;  %v178_v13 = vld [vmem:[%s155_s30 + $0x88] sm:$0xff]  ;;  %175 = vst [vmem:[%s152_s3 + $0x18] sm:$0xff] %v174_v11 }
  0x1a   : > { %177 = vst [vmem:[%s152_s3 + $0x20] sm:$0xff] %v176_v12  ;;  %179 = vst [vmem:[%s152_s3 + $0x28] sm:$0xff] %v178_v13  ;;  %v180_v14 = vld [vmem:[%s155_s30 + $0xc0] sm:$0xff]  ;;  %v182_v15 = vld [vmem:[%s155_s30 + $0xc8] sm:$0xff] }
  0x1b   : > { %181 = vst [vmem:[%s152_s3 + $0x30] sm:$0xff] %v180_v14  ;;  %183 = vst [vmem:[%s152_s3 + $0x38] sm:$0xff] %v182_v15 }
  0x1c PF: > { %p357_p5 = scmp.ge.s32.totalorder %s412_s11, 1  ;;  %p188_p6 = scmp.lt.s32.totalorder %s412_s11, 5 }
  0x1e   : > { %p189_p7 = pnand %p357_p5, %p188_p6 }
  0x1f   : > { %s195_s4 = sand.u32 (!%p189_p7), 1, %s404_s9   ;;  %s360_s5 = sshll.u32 (!%p189_p7), %s347_s12, 1 }
  0x20   : > { %192 = sbr.rel (%p189_p7) target bundleno = 51 (0x33), region = 66  ;;  %s358_s6 = sshll.u32 (!%p189_p7), %s195_s4, 6 }
  0x21   : > { %p230_p8 = scmp.lt.s32.totalorder (!%p189_p7), %s360_s5, 7  ;;  %s197_s7 = scalar_lea.vmem (!%p189_p7), [#allocation2], %s358_s6 }
  0x22   : > { %s204_s8 = scalar_lea.vmem (!%p189_p7), [#allocation3], %s358_s6 }
  0x25   : > { %s505_s5 = smov (!%p230_p8, %s360_s5), 7  ;;  %v235_v16 = vld [vmem:[%s197_s7] sm:$0xff]  ;;  %v237_v17 = vld [vmem:[%s197_s7 + $0x10] sm:$0xff]  ;;  %v236_v26 = vld [vmem:[%s197_s7 + $0x8] sm:$0xff] }
  0x26   : > { %v239_v18 = vld [vmem:[%s197_s7 + $0x20] sm:$0xff]  ;;  %v241_v19 = vld [vmem:[%s197_s7 + $0x30] sm:$0xff]  ;;  %v238_v28 = vld [vmem:[%s197_s7 + $0x18] sm:$0xff]  ;;  %s361_s9 = sshll.u32 %s505_s5, 3 }
  0x27   : > { %v243_v20 = vld [vmem:[%s204_s8] sm:$0xff]  ;;  %v245_v21 = vld [vmem:[%s204_s8 + $0x10] sm:$0xff]  ;;  %v240_v29 = vld [vmem:[%s197_s7 + $0x28] sm:$0xff]  ;;  %s233_s14 = scalar_lea.vmem %s499_s2, %s361_s9 }
  0x28   : > { %v247_v22 = vld [vmem:[%s204_s8 + $0x20] sm:$0xff]  ;;  %v249_v23 = vld [vmem:[%s204_s8 + $0x30] sm:$0xff]  ;;  %v251_v24 = vmul.f32 %v243_v20, %v235_v16  ;;  %v253_v25 = vmul.f32 %v245_v21, %v237_v17  ;;  %v242_v30 = vld [vmem:[%s197_s7 + $0x38] sm:$0xff] }
  0x29   : > { %v255_v27 = vmul.f32 %v247_v22, %v239_v18  ;;  %v257_v31 = vmul.f32 %v249_v23, %v241_v19  ;;  %v244_v33 = vld [vmem:[%s204_s8 + $0x8] sm:$0xff]  ;;  %v246_v34 = vld [vmem:[%s204_s8 + $0x18] sm:$0xff] }
  0x2a   : > { %v259_v32 = vadd.f32 %v253_v25, %v251_v24  ;;  %v248_v35 = vld [vmem:[%s204_s8 + $0x28] sm:$0xff]  ;;  %v250_v36 = vld [vmem:[%s204_s8 + $0x38] sm:$0xff]  ;;  %v252_v37 = vmul.f32 %v244_v33, %v236_v26  ;;  %v254_v38 = vmul.f32 %v246_v34, %v238_v28 }
  0x2b   : > { %v256_v39 = vmul.f32 %v248_v35, %v240_v29  ;;  %v258_v41 = vmul.f32 %v250_v36, %v242_v30 }
  0x2c   : > { %v260_v40 = vadd.f32 %v259_v32, %v255_v27  ;;  %v262_v42 = vadd.f32 %v254_v38, %v252_v37 }
  0x2e   : > { %v261_v43 = vadd.f32 %v260_v40, %v257_v31  ;;  %v263_v44 = vadd.f32 %v262_v42, %v256_v39 }
  0x30   : > { %265 = vst [vmem:[%s233_s14] sm:$0xff] %v261_v43  ;;  %v264_v45 = vadd.f32 %v263_v44, %v258_v41 }
  0x32   : > { %266 = vst [vmem:[%s233_s14 + $0x8] sm:$0xff] %v264_v45 }
  0x33 PF: > { %p9_p9 = scmp.ge.s32.totalorder %s446_s13, 6   ;;  %s501_s9 = smov %s408_s10 }
  0x34   : > { %s502_s10 = smov %s455_s16  ;;  %s503_s11 = smov %s446_s13 }
  0x35   :  { %11 = sbr.rel (!%p9_p9) target bundleno = 2 (0x2), region = 117 }

// kernel: model_forward.34
= control target key start
LH: loop header
LB: loop body
LE: loop exit
PB: predicated region body
PF: predicated region fallthrough
CT: control target
= control target key end

     0   :  { %s219_s6 = smov 0   ;;  %s236_s0 = inlined_call_operand.vmem [shape: f32[128,128], index: 0, kind: input, shape index: {}]   ;;  %s237_s1 = inlined_call_operand.vmem [shape: f32[128,128], index: 1, kind: output, shape index: {}]  }
   0x1 LB: > { %s180_s7 = sadd.s32 4294967295, %s207_s6   ;;  %p184_p0 = scmp.ge.s32.totalorder %s207_s6, 1  ;;  %s207_s6 = sphi %s219_s6, %s11_s6  }
   0x2   : > { %p86_p1 = scmp.lt.s32.totalorder %s207_s6, 17 }
   0x4   : > { %p87_p2 = pnand %p184_p0, %p86_p1 }
   0x5   : > { %p104_p3 = scmp.lt.s32.totalorder (!%p87_p2), %s180_s7, 15 }
   0x6   : > { %90 = sbr.rel (%p87_p2) target bundleno = 192 (0xc0), region = 24 }
   0xb   : > { %s239_s7 = smov (!%p104_p3, %s180_s7), 15 }
   0xc   : > { %s185_s8 = sshll.u32 %s239_s7, 3 }
   0xd   : > { %s107_s11 = scalar_lea.vmem %s236_s0, %s185_s8  ;;  %s111_s14 = scalar_lea.vmem %s237_s1, %s185_s8 }
   0xe   : > { %v112_v0 = vld [vmem:[%s107_s11] sm:$0xff] }
   0xf   : > { %v113_v1 = vmul.f32 %v112_v0, %v112_v0 }
  0x11   : > { %114 = vadd.xlane.f32.xlu0 %v113_v1 }
  0x9a   : > { %v115_v2 = vpop.xlane.xlu0 %114 }
  0x9b   : > { %197 = vrsqrt.f32 %v115_v2  ;;  %vm118_vm0 = vcmp.eq.f32.partialorder %v115_v2, inf  ;;  %v121_v5 = vand.u32 2147483648, %v115_v2  ;;  %vm120_vm1 = vcmp.eq.f32.partialorder %v115_v2, 0.0 }
  0xa8   : > { %v198_v3 = vpop.eup %197 }
  0xa9   : > { %v117_v4 = vmul.f32 %v198_v3, %v115_v2 }
  0xab   : > { %v119_v6 = vsel %vm118_vm0, %v115_v2, %v117_v4 }
  0xac   : > { %v122_v7 = vsel %vm120_vm1, %v121_v5, %v119_v6 }
  0xad   : > { %v123_v8 = vadd.f32 1e-08, %v122_v7 }
  0xaf   : > { %199 = vrcp.f32 %v123_v8 }
  0xbc   : > { %v200_v9 = vpop.eup %199 }
  0xbd   : > { %v125_v10 = vmul.f32 %v200_v9, %v112_v0 }
  0xbf   : > { %126 = vst [vmem:[%s111_s14] sm:$0xff] %v125_v10 }
  0xc0 PF: > { %s11_s6 = sadd.s32 1, %s207_s6  }
  0xc1   : > { %p8_p4 = scmp.ge.s32.totalorder %s11_s6, 18  }
  0xc3   :  { %10 = sbr.rel (!%p8_p4) target bundleno = 1 (0x1), region = 54 }

// kernel: reverse.7
= control target key start
LH: loop header
LB: loop body
LE: loop exit
PB: predicated region body
PF: predicated region fallthrough
CT: control target
= control target key end

     0   :  { %v2_v0 = vlaneseq  ;;  %s414_s0 = inlined_call_operand.vmem [shape: f32[2,4,16,63], index: 0, kind: input, shape index: {}]   ;;  %s415_s1 = inlined_call_operand.vmem [shape: f32[2,4,16,63], index: 1, kind: output, shape index: {}]  }
   0x1   :  { %v67_v2 = vld [vmem:[%s414_s0 + $0x10] sm:$0xff]  ;;  %v63_v3 = vld [vmem:[%s414_s0] sm:$0xff]  ;;  %v69_v4 = vld [vmem:[%s414_s0 + $0x18] sm:$0xff] }
   0x2   :  { %v3_v1 = vsub.s32 62, %v2_v0  ;;  %v65_v5 = vld [vmem:[%s414_s0 + $0x8] sm:$0xff]  ;;  %v71_v7 = vld [vmem:[%s414_s0 + $0x20] sm:$0xff]  ;;  %v77_v8 = vld [vmem:[%s414_s0 + $0x38] sm:$0xff] }
   0x3   :  { %v73_v6 = vld [vmem:[%s414_s0 + $0x28] sm:$0xff]  ;;  %v75_v9 = vld [vmem:[%s414_s0 + $0x30] sm:$0xff]  ;;  %v79_v11 = vld [vmem:[%s414_s0 + $0x40] sm:$0xff] }
   0x4   :  { %4 = vset.pattern.permute.xlu0 %v3_v1  ;;  %307 = vset.pattern.permute.xlu1 %v3_v1  ;;  %v81_v10 = vld [vmem:[%s414_s0 + $0x48] sm:$0xff]  ;;  %v85_v12 = vld [vmem:[%s414_s0 + $0x58] sm:$0xff]  ;;  %v83_v13 = vld [vmem:[%s414_s0 + $0x50] sm:$0xff] }
   0x5   :  { %111 = vperm.xlu1 %307, %v67_v2   ;;  %99 = vperm.xlu0 %4, %v63_v3   ;;  %v89_v14 = vld [vmem:[%s414_s0 + $0x68] sm:$0xff]  ;;  %v87_v15 = vld [vmem:[%s414_s0 + $0x60] sm:$0xff]  ;;  %v93_v16 = vld [vmem:[%s414_s0 + $0x78] sm:$0xff] }
   0x6   :  { %v91_v17 = vld [vmem:[%s414_s0 + $0x70] sm:$0xff] }
   0x9   :  { %117 = vperm.xlu1 %307, %v69_v4   ;;  %105 = vperm.xlu0 %4, %v65_v5  }
   0xd   :  { %129 = vperm.xlu1 %307, %v73_v6   ;;  %123 = vperm.xlu0 %4, %v71_v7  }
  0x11   :  { %141 = vperm.xlu1 %307, %v77_v8   ;;  %135 = vperm.xlu0 %4, %v75_v9  }
  0x15   :  { %153 = vperm.xlu1 %307, %v81_v10   ;;  %147 = vperm.xlu0 %4, %v79_v11  }
  0x19   :  { %165 = vperm.xlu1 %307, %v85_v12   ;;  %159 = vperm.xlu0 %4, %v83_v13  }
  0x1d   :  { %177 = vperm.xlu1 %307, %v89_v14   ;;  %171 = vperm.xlu0 %4, %v87_v15  }
  0x21   :  { %189 = vperm.xlu1 %307, %v93_v16   ;;  %183 = vperm.xlu0 %4, %v91_v17  }
  0x80   :  { %v112_v18 = vpop.permute.xlu1 %111  ;;  %v100_v19 = vpop.permute.xlu0 %99 }
  0x81   :  { %255 = vst [vmem:[%s415_s1 + $0x10] sm:$0xff] %v112_v18  ;;  %251 = vst [vmem:[%s415_s1] sm:$0xff] %v100_v19 }
  0x84   :  { %v118_v20 = vpop.permute.xlu1 %117  ;;  %v106_v21 = vpop.permute.xlu0 %105 }
  0x85   :  { %257 = vst [vmem:[%s415_s1 + $0x18] sm:$0xff] %v118_v20  ;;  %253 = vst [vmem:[%s415_s1 + $0x8] sm:$0xff] %v106_v21 }
  0x88   :  { %v130_v22 = vpop.permute.xlu1 %129  ;;  %v124_v23 = vpop.permute.xlu0 %123 }
  0x89   :  { %261 = vst [vmem:[%s415_s1 + $0x28] sm:$0xff] %v130_v22  ;;  %259 = vst [vmem:[%s415_s1 + $0x20] sm:$0xff] %v124_v23 }
  0x8c   :  { %v142_v24 = vpop.permute.xlu1 %141  ;;  %v136_v25 = vpop.permute.xlu0 %135 }
  0x8d   :  { %265 = vst [vmem:[%s415_s1 + $0x38] sm:$0xff] %v142_v24  ;;  %263 = vst [vmem:[%s415_s1 + $0x30] sm:$0xff] %v136_v25 }
  0x90   :  { %v154_v26 = vpop.permute.xlu1 %153  ;;  %v148_v27 = vpop.permute.xlu0 %147 }
  0x91   :  { %269 = vst [vmem:[%s415_s1 + $0x48] sm:$0xff] %v154_v26  ;;  %267 = vst [vmem:[%s415_s1 + $0x40] sm:$0xff] %v148_v27 }
  0x94   :  { %v166_v28 = vpop.permute.xlu1 %165  ;;  %v160_v29 = vpop.permute.xlu0 %159 }
  0x95   :  { %273 = vst [vmem:[%s415_s1 + $0x58] sm:$0xff] %v166_v28  ;;  %271 = vst [vmem:[%s415_s1 + $0x50] sm:$0xff] %v160_v29 }
  0x98   :  { %v178_v30 = vpop.permute.xlu1 %177  ;;  %v172_v31 = vpop.permute.xlu0 %171 }
  0x99   :  { %277 = vst [vmem:[%s415_s1 + $0x68] sm:$0xff] %v178_v30  ;;  %275 = vst [vmem:[%s415_s1 + $0x60] sm:$0xff] %v172_v31 }
  0x9c   :  { %v190_v32 = vpop.permute.xlu1 %189  ;;  %v184_v33 = vpop.permute.xlu0 %183 }
  0x9d   :  { %281 = vst [vmem:[%s415_s1 + $0x78] sm:$0xff] %v190_v32  ;;  %279 = vst [vmem:[%s415_s1 + $0x70] sm:$0xff] %v184_v33 }

// kernel: model_forward.38
= control target key start
LH: loop header
LB: loop body
LE: loop exit
PB: predicated region body
PF: predicated region fallthrough
CT: control target
= control target key end

     0   :  { %s124_s0 = inlined_call_operand.vmem [shape: f32[8,1024], index: 0, kind: input, shape index: {}]   ;;  %s125_s1 = inlined_call_operand.vmem [shape: f32[8,1024], index: 1, kind: output, shape index: {}]  }
   0x1   :  { %v8_v0 = vld [vmem:[%s124_s0] sm:$0xff]  ;;  %v9_v1 = vld [vmem:[%s124_s0 + $0x8] sm:$0xff]  ;;  %v10_v2 = vld [vmem:[%s124_s0 + $0x10] sm:$0xff] }
   0x2   :  { %v11_v3 = vld [vmem:[%s124_s0 + $0x18] sm:$0xff]  ;;  %v16_v4 = vmul.f32 %v8_v0, %v8_v0  ;;  %v17_v5 = vmul.f32 %v9_v1, %v9_v1  ;;  %v18_v6 = vmul.f32 %v10_v2, %v10_v2  ;;  %v12_v7 = vld [vmem:[%s124_s0 + $0x20] sm:$0xff]  ;;  %v13_v10 = vld [vmem:[%s124_s0 + $0x28] sm:$0xff] }
   0x3   :  { %v19_v8 = vmul.f32 %v11_v3, %v11_v3  ;;  %v20_v11 = vmul.f32 %v12_v7, %v12_v7  ;;  %v14_v13 = vld [vmem:[%s124_s0 + $0x30] sm:$0xff]  ;;  %v21_v14 = vmul.f32 %v13_v10, %v13_v10  ;;  %v15_v16 = vld [vmem:[%s124_s0 + $0x38] sm:$0xff] }
   0x4   :  { %v24_v9 = vadd.f32 %v17_v5, %v16_v4  ;;  %v22_v17 = vmul.f32 %v14_v13, %v14_v13  ;;  %v23_v19 = vmul.f32 %v15_v16, %v15_v16 }
   0x6   :  { %v25_v12 = vadd.f32 %v24_v9, %v18_v6 }
   0x8   :  { %v26_v15 = vadd.f32 %v25_v12, %v19_v8 }
   0xa   :  { %v27_v18 = vadd.f32 %v26_v15, %v20_v11 }
   0xc   :  { %v28_v20 = vadd.f32 %v27_v18, %v21_v14 }
   0xe   :  { %v29_v21 = vadd.f32 %v28_v20, %v22_v17 }
  0x10   :  { %v30_v22 = vadd.f32 %v29_v21, %v23_v19 }
  0x12   :  { %31 = vadd.xlane.f32.xlu0 %v30_v22 }
  0x9b   :  { %v32_v23 = vpop.xlane.xlu0 %31 }
  0x9c   :  { %62 = vrsqrt.f32 %v32_v23  ;;  %vm35_vm0 = vcmp.eq.f32.partialorder %v32_v23, inf  ;;  %v38_v26 = vand.u32 2147483648, %v32_v23  ;;  %vm37_vm1 = vcmp.eq.f32.partialorder %v32_v23, 0.0 }
  0xa9   :  { %v63_v24 = vpop.eup %62 }
  0xaa   :  { %v34_v25 = vmul.f32 %v63_v24, %v32_v23 }
  0xac   :  { %v36_v27 = vsel %vm35_vm0, %v32_v23, %v34_v25 }
  0xad   :  { %v39_v28 = vsel %vm37_vm1, %v38_v26, %v36_v27 }
  0xae   :  { %v40_v29 = vadd.f32 1e-08, %v39_v28 }
  0xb0   :  { %64 = vrcp.f32 %v40_v29 }
  0xbd   :  { %v65_v30 = vpop.eup %64 }
  0xbe   :  { %v42_v31 = vmul.f32 %v65_v30, %v8_v0  ;;  %v43_v32 = vmul.f32 %v65_v30, %v9_v1  ;;  %v44_v33 = vmul.f32 %v65_v30, %v10_v2  ;;  %v45_v34 = vmul.f32 %v65_v30, %v11_v3 }
  0xbf   :  { %v46_v35 = vmul.f32 %v65_v30, %v12_v7  ;;  %v47_v36 = vmul.f32 %v65_v30, %v13_v10  ;;  %v48_v37 = vmul.f32 %v65_v30, %v14_v13  ;;  %v49_v38 = vmul.f32 %v65_v30, %v15_v16 }
  0xc0   :  { %50 = vst [vmem:[%s125_s1] sm:$0xff] %v42_v31  ;;  %51 = vst [vmem:[%s125_s1 + $0x8] sm:$0xff] %v43_v32 }
  0xc1   :  { %52 = vst [vmem:[%s125_s1 + $0x10] sm:$0xff] %v44_v33  ;;  %53 = vst [vmem:[%s125_s1 + $0x18] sm:$0xff] %v45_v34 }
  0xc2   :  { %54 = vst [vmem:[%s125_s1 + $0x20] sm:$0xff] %v46_v35  ;;  %55 = vst [vmem:[%s125_s1 + $0x28] sm:$0xff] %v47_v36 }
  0xc3   :  { %56 = vst [vmem:[%s125_s1 + $0x30] sm:$0xff] %v48_v37  ;;  %57 = vst [vmem:[%s125_s1 + $0x38] sm:$0xff] %v49_v38 }

// kernel: reverse.15
= control target key start
LH: loop header
LB: loop body
LE: loop exit
PB: predicated region body
PF: predicated region fallthrough
CT: control target
= control target key end

     0   :  { %v2_v0 = vlaneseq  ;;  %s382_s0 = inlined_call_operand.vmem [shape: f32[2,4,1024], index: 0, kind: input, shape index: {}]   ;;  %s383_s1 = inlined_call_operand.vmem [shape: f32[2,4,1024], index: 1, kind: output, shape index: {}]  }
   0x2   :  { %v3_v1 = vsub.s32 127, %v2_v0 }
   0x4   :  { %4 = vset.pattern.permute.xlu0 %v3_v1 }
   0x5   :  { %s342_s6 = smov 0   ;;  %s344_s7 = smov 0  }
   0x6   :  { %s346_s8 = smov 0  }
   0x7 LB: > { %s270_s9 = sadd.s32 4294967295, %s330_s8   ;;  %s22_s10 = sadd.s32 1, %s326_s7  ;;  %s330_s8 = sphi %s346_s8, %s10_s8   ;;  %s326_s7 = sphi %s344_s7, %s385_s7   ;;  %s322_s6 = sphi %s342_s6, %s384_s6  }
   0x8   : > { %p23_p0 = scmp.ge.s32.totalorder %s22_s10, 8  ;;  %p272_p1 = scmp.ge.s32.totalorder %s330_s8, 8 }
   0x9   : > { %s45_s11 = sand.u32 (!%p272_p1), 1, %s330_s8   ;;  %s48_s12 = ssub.s32 (!%p272_p1), 7, %s326_s7 }
   0xa   : > { %s387_s10 = smov (%p23_p0, %s22_s10), 0  ;;  %43 = sbr.rel (%p272_p1) target bundleno = 18 (0x12), region = 16 }
   0xb   : > { %s273_s13 = sshll.u32 (!%p272_p1), %s45_s11, 3  ;;  %s274_s14 = sshll.u32 (!%p272_p1), %s48_s12, 2 }
   0xc   : > { %s55_s17 = scalar_lea.vmem (!%p272_p1), %s382_s0, %s274_s14  ;;  %s47_s18 = scalar_lea.vmem (!%p272_p1), [#allocation1], %s273_s13 }
   0xf   : > { %v72_v2 = vld [vmem:[%s55_s17] sm:$0xf] }
  0x10   : > { %v74_v3 = vld [vmem:[%s55_s17 + $0x20] sm:$0xf]  ;;  %73 = vst [vmem:[%s47_s18] sm:$0xf] %v72_v2 }
  0x11   : > { %75 = vst [vmem:[%s47_s18 + $0x4] sm:$0xf] %v74_v3 }
  0x12 PF: > { %p275_p2 = scmp.ge.s32.totalorder %s330_s8, 1  ;;  %p102_p3 = scmp.lt.s32.totalorder %s330_s8, 9 }
  0x14   : > { %p103_p4 = pnand %p275_p2, %p102_p3 }
  0x15   : > { %s113_s19 = sand.u32 (!%p103_p4), 1, %s270_s9   ;;  %s281_s23 = sshll.u32 (!%p103_p4), %s322_s6, 2 }
  0x16   : > { %106 = sbr.rel (%p103_p4) target bundleno = 181 (0xb5), region = 57  ;;  %s276_s20 = sshll.u32 (!%p103_p4), %s113_s19, 3 }
  0x17   : > { %s115_s21 = scalar_lea.vmem (!%p103_p4), [#allocation1], %s276_s20  ;;  %s119_s22 = scalar_lea.vmem (!%p103_p4), [#allocation3], %s276_s20 }
  0x18   : > { %s166_s26 = scalar_lea.vmem (!%p103_p4), %s383_s1, %s281_s23 }
  0x1b   : > { %v127_v4 = vld [vmem:[%s115_s21] sm:$0xf]  ;;  %v278_v5 = vld [vmem:[%s115_s21 + $0x4] sm:$0xf] }
  0x1c   : > { %128 = vst [vmem:[#allocation0] sm:$0xf] %v127_v4  ;;  %126 = vst [vmem:[#allocation0 + $0x8] sm:$0xf] %v278_v5 }
  0x23   : > { %v132_v6 = vld [vmem:[#allocation0] sm:$0xff]  ;;  %v138_v7 = vld [vmem:[#allocation0 + $0x8] sm:$0xff] }
  0x24   : > { %133 = vperm.xlu0 %4, %v132_v6  }
  0x28   : > { %139 = vperm.xlu0 %4, %v138_v7  }
  0x9f   : > { %v134_v8 = vpop.permute.xlu0 %133 }
  0xa0   : > { %135 = vst [vmem:[#allocation2 + $0x8] sm:$0xff] %v134_v8 }
  0xa3   : > { %v140_v9 = vpop.permute.xlu0 %139 }
  0xa4   : > { %141 = vst [vmem:[#allocation2] sm:$0xff] %v140_v9 }
  0xa7   : > { %v146_v10 = vld [vmem:[#allocation2 + $0x8] sm:$0xf] }
  0xa8   : > { %149 = vst [vmem:[%s119_s22] sm:$0xf] %v146_v10 }
  0xab   : > { %v151_v11 = vld [vmem:[#allocation2] sm:$0xf] }
  0xac   : > { %279 = vst [vmem:[%s119_s22 + $0x4] sm:$0xf] %v151_v11 }
  0xaf   : > { %v183_v12 = vld [vmem:[%s119_s22] sm:$0xf] }
  0xb0   : > { %184 = vst [vmem:[%s166_s26] sm:$0xf] %v183_v12 }
  0xb3   : > { %v185_v13 = vld [vmem:[%s119_s22 + $0x4] sm:$0xf] }
  0xb4   : > { %186 = vst [vmem:[%s166_s26 + $0x20] sm:$0xf] %v185_v13 }
  0xb5 PF: > { %s10_s8 = sadd.s32 1, %s330_s8   ;;  %s384_s6 = smov %s326_s7 }
  0xb6   : > { %p7_p5 = scmp.ge.s32.totalorder %s10_s8, 10   ;;  %s385_s7 = smov %s387_s10 }
  0xb8   :  { %9 = sbr.rel (!%p7_p5) target bundleno = 7 (0x7), region = 130 }

// kernel: reverse.17
= control target key start
LH: loop header
LB: loop body
LE: loop exit
PB: predicated region body
PF: predicated region fallthrough
CT: control target
= control target key end

     0   :  { %v2_v0 = vlaneseq  ;;  %s336_s0 = inlined_call_operand.vmem [shape: f32[2,1,1024], index: 0, kind: input, shape index: {}]   ;;  %s337_s1 = inlined_call_operand.vmem [shape: f32[2,1,1024], index: 1, kind: output, shape index: {}]  }
   0x2   :  { %v3_v1 = vsub.s32 127, %v2_v0 }
   0x4   :  { %4 = vset.pattern.permute.xlu0 %v3_v1 }
   0x5   :  { %s296_s6 = smov 0   ;;  %s298_s7 = smov 0  }
   0x6   :  { %s300_s8 = smov 0  }
   0x7 LB: > { %s226_s9 = sadd.s32 4294967295, %s284_s8   ;;  %s22_s10 = sadd.s32 1, %s280_s7  ;;  %s284_s8 = sphi %s300_s8, %s10_s8   ;;  %s280_s7 = sphi %s298_s7, %s339_s7   ;;  %s276_s6 = sphi %s296_s6, %s338_s6  }
   0x8   : > { %p23_p0 = scmp.ge.s32.totalorder %s22_s10, 8  ;;  %p228_p1 = scmp.ge.s32.totalorder %s284_s8, 8 }
   0x9   : > { %s45_s11 = sand.u32 (!%p228_p1), 1, %s284_s8   ;;  %s48_s12 = ssub.s32 (!%p228_p1), 7, %s280_s7 }
   0xa   : > { %s341_s10 = smov (%p23_p0, %s22_s10), 0  ;;  %43 = sbr.rel (%p228_p1) target bundleno = 17 (0x11), region = 16 }
   0xb   : > { %s229_s13 = sshll.u32 (!%p228_p1), %s45_s11, 1  ;;  %s230_s14 = sshll.u32 (!%p228_p1), %s48_s12, 1 }
   0xc   : > { %s54_s17 = scalar_lea.vmem (!%p228_p1), %s336_s0, %s230_s14  ;;  %s47_s18 = scalar_lea.vmem (!%p228_p1), [#allocation1], %s229_s13 }
   0xf   : > { %v71_v2 = vld [vmem:[%s54_s17] sm:$0x3] }
  0x10   : > { %72 = vst [vmem:[%s47_s18] sm:$0x3] %v71_v2 }
  0x11 PF: > { %p231_p2 = scmp.ge.s32.totalorder %s284_s8, 1  ;;  %p89_p3 = scmp.lt.s32.totalorder %s284_s8, 9 }
  0x13   : > { %p90_p4 = pnand %p231_p2, %p89_p3 }
  0x14   : > { %s100_s19 = sand.u32 (!%p90_p4), 1, %s226_s9   ;;  %s235_s23 = sshll.u32 (!%p90_p4), %s276_s6, 1 }
  0x15   : > { %93 = sbr.rel (%p90_p4) target bundleno = 176 (0xb0), region = 50  ;;  %s232_s20 = sshll.u32 (!%p90_p4), %s100_s19, 1 }
  0x16   : > { %s102_s21 = scalar_lea.vmem (!%p90_p4), [#allocation1], %s232_s20  ;;  %s106_s22 = scalar_lea.vmem (!%p90_p4), [#allocation3], %s232_s20 }
  0x17   : > { %s134_s26 = scalar_lea.vmem (!%p90_p4), %s337_s1, %s235_s23 }
  0x1a   : > { %v110_v3 = vld [vmem:[%s102_s21] sm:$0x3] }
  0x1b   : > { %111 = vst [vmem:[#allocation0] sm:$0x3] %v110_v3 }
  0x22   : > { %v113_v4 = vld [vmem:[#allocation0] sm:$0xff] }
  0x23   : > { %114 = vperm.xlu0 %4, %v113_v4  }
  0x9e   : > { %v115_v5 = vpop.permute.xlu0 %114 }
  0x9f   : > { %116 = vst [vmem:[#allocation2] sm:$0xff] %v115_v5 }
  0xa6   : > { %v121_v6 = vld [vmem:[#allocation2] sm:$0x3] }
  0xa7   : > { %124 = vst [vmem:[%s106_s22] sm:$0x3] %v121_v6 }
  0xae   : > { %v151_v7 = vld [vmem:[%s106_s22] sm:$0x3] }
  0xaf   : > { %152 = vst [vmem:[%s134_s26] sm:$0x3] %v151_v7 }
  0xb0 PF: > { %s10_s8 = sadd.s32 1, %s284_s8   ;;  %s338_s6 = smov %s280_s7 }
  0xb1   : > { %p7_p5 = scmp.ge.s32.totalorder %s10_s8, 10   ;;  %s339_s7 = smov %s341_s10 }
  0xb3   :  { %9 = sbr.rel (!%p7_p5) target bundleno = 7 (0x7), region = 110 }

</bundles_post_ra>
